<compile_context>
chip_gen: v6e
topology: v6e:2x2x1
jax: 0.10.0
libtpu: 0.0.40
codegen_flags: <defaults>
</compile_context>

<pallas_src>
import functools

import jax
import jax.numpy as jnp
from jax.experimental import pallas as pl
from jax.experimental.pallas import tpu as pltpu


def residual_block_kernel(x_ref, w1_ref, b1_ref, w2_ref, b2_ref, o_ref,
                          src_ref, *, compute_dtype):
    nb, H, W, Cp = x_ref.shape

    # Halo rows of the shared H-padded source scratch; never written elsewhere,
    # so both convs see zero padding along H.  (Cheap: two (W, Cp) stores.)
    src_ref[0] = jnp.zeros((W, Cp), compute_dtype)
    src_ref[H + 1] = jnp.zeros((W, Cp), compute_dtype)

    # Edge masks for the +/-1 W shifts, hoisted (built once per kernel invocation).
    wcoord = jax.lax.broadcasted_iota(jnp.int32, (H, W, Cp), 1)
    edge_mask = {-1: wcoord >= 1, 1: wcoord < (W - 1)}

    def conv3x3(w_ref, b_ref):
        # All 9 tap contributions in ONE lane-dense MXU matmul (f32 accumulation):
        #   ((H+2)*W, Cp) @ (Cp, 9*Cp) -> ((H+2)*W, 9*Cp)
        src = src_ref[...]
        taps = jnp.dot(src.reshape((H + 2) * W, Cp), w_ref[...],
                       preferred_element_type=jnp.float32)
        taps = taps.reshape(H + 2, W, 9 * Cp)

        acc = None
        for ky in range(3):
            for kx in range(3):
                dx = kx - 1
                t = ky * 3 + kx
                # dy shift: aligned leading-axis slice of the H-padded result;
                # lane slice starts at a 128 multiple -> no relayout.
                c = taps[ky:ky + H, :, t * Cp:(t + 1) * Cp]
                if dx != 0:
                    # dx shift: static sublane roll (XLU) + zero the wrapped edge.
                    c = pltpu.roll(c, shift=(-dx) % W, axis=1)
                    c = jnp.where(edge_mask[dx], c, 0.0)
                acc = c if acc is None else acc + c
        # Bias folded into the epilogue: one broadcasted add.
        return acc + b_ref[...].astype(jnp.float32)

    for n in range(nb):
        x_n = x_ref[n]                                   # (H, W, Cp) compute_dtype

        # conv1
        src_ref[1:H + 1] = x_n
        h1 = conv3x3(w1_ref, b1_ref)                     # (H, W, Cp) f32

        # LeakyReLU(0.2) in f32 on the VPU; requantize as conv2's MXU operand.
        a1 = jnp.where(h1 > 0, h1, 0.2 * h1)

        # conv2
        src_ref[1:H + 1] = a1.astype(compute_dtype)
        h2 = conv3x3(w2_ref, b2_ref)

        # Residual add in f32; lane-dense full-tile (unmasked) output store.
        o_ref[n] = (h2 + x_n.astype(jnp.float32)).astype(o_ref.dtype)


def residual_block(x_nchw, w1, b1, w2, b2, *, compute_dtype=jnp.bfloat16):
    """x_nchw: (N, C, H, W); w*: (Cout, Cin, 3, 3), b*: (C,) PyTorch layout."""
    N, C, H, W = x_nchw.shape

    LANE = 128
    Cp = ((C + LANE - 1) // LANE) * LANE
    if Cp > LANE:
        # v6e/v7x MXUs are 256 wide: fill the contraction for channel counts > 128.
        # TODO(synk): keep the 128 multiple on v5e (128-wide MXU) via get_tpu_info().
        Cp = ((C + 255) // 256) * 256
    # TODO(synk): small-C fast path (C << 128) that puts H*W on the lane axis so the
    # 128-lane channel padding does not waste ~(Cp/C)x of MXU MACs and HBM bytes.

    # NHWC activations, channels zero-padded to Cp, already in compute_dtype so the
    # kernel's input DMA bytes are halved on the bf16 path.  The zero channel padding
    # stays zero through both convs because weights/biases are zero-padded too.
    x_nhwc = jnp.transpose(x_nchw, (0, 2, 3, 1))
    x_p = jnp.pad(x_nhwc, ((0, 0), (0, 0), (0, 0), (0, Cp - C))).astype(compute_dtype)

    def prep_w(w):
        # (Cout, Cin, 3, 3) -> (ky, kx, Cin, Cout) -> (Cin, 9*Cout): the 9 taps are
        # concatenated along the output/lane axis so one matmul computes them all.
        wk = jnp.transpose(w, (2, 3, 1, 0))
        wk = jnp.pad(wk, ((0, 0), (0, 0), (0, Cp - C), (0, Cp - C)))
        wk = wk.reshape(9, Cp, Cp).transpose(1, 0, 2).reshape(Cp, 9 * Cp)
        return wk.astype(compute_dtype)

    w1_k, w2_k = prep_w(w1), prep_w(w2)
    b1_k = jnp.pad(b1.astype(jnp.float32), (0, Cp - C)).reshape(1, Cp)
    b2_k = jnp.pad(b2.astype(jnp.float32), (0, Cp - C)).reshape(1, Cp)

    out_dtype = jnp.float32
    in_item = jnp.dtype(compute_dtype).itemsize
    out_item = jnp.dtype(out_dtype).itemsize

    # ---- generation-aware VMEM budget ----
    try:
        info = pltpu.get_tpu_info()
        vmem_cap = int(getattr(info, "vmem_capacity_bytes", 64 << 20))
    except Exception:                       # be robust on exotic runtimes
        vmem_cap = 64 << 20                 # conservative: v7x per-core physical VMEM
    vmem_limit = int(min(vmem_cap * 3 // 4, 100 << 20))

    per_image_in = H * W * Cp * in_item            # input block, per image
    per_image_out = H * W * Cp * out_item          # output block, per image
    weight_bytes = 2 * 2 * Cp * 9 * Cp * in_item   # 2 weight tensors, double-buffered
    bias_bytes = 2 * 2 * Cp * 4
    scratch_bytes = (H + 2) * W * Cp * in_item     # shared padded-source scratch
    # in-kernel f32 temporaries: the (H+2)*W x 9*Cp tap-matmul result, the f32
    # accumulator / activation values, plus general headroom.
    temp_bytes = (H + 2) * W * 9 * Cp * 4 + 3 * H * W * Cp * 4 + (1 << 20)

    def fits(nb_):
        need = (2 * nb_ * (per_image_in + per_image_out)    # double-buffered blocks
                + weight_bytes + bias_bytes + scratch_bytes + temp_bytes)
        return need <= vmem_limit

    # Batch tile: biggest divisor of N that fits VMEM, capped at N // 2 so the grid
    # keeps >= 2 parallel steps (keeps both TensorCores busy on 2-TC parts).
    nb = N if N == 1 else max(1, N // 2)
    while nb > 1 and (N % nb != 0 or not fits(nb)):
        nb -= 1
    if not fits(nb):
        # TODO(synk): H-tiling with 1-row halos for spatial sizes whose single-image
        # block no longer fits the per-generation VMEM budget (e.g. large images).
        raise NotImplementedError(
            "residual_block: a single (H, W, Cp) image block exceeds the VMEM "
            "budget; H-tiling is not implemented yet.")

    kernel = functools.partial(residual_block_kernel, compute_dtype=compute_dtype)

    # NOTE: the weight/bias index_maps are constant across the grid; at Cp=128 the
    # redundant second pipeline buffer is only ~0.3 MiB, so we keep default
    # double-buffering rather than forcing pl.Buffered(1).
    out_p = pl.pallas_call(
        kernel,
        out_shape=jax.ShapeDtypeStruct((N, H, W, Cp), out_dtype),
        grid_spec=pltpu.PrefetchScalarGridSpec(
            num_scalar_prefetch=0,
            grid=(N // nb,),
            in_specs=[
                pl.BlockSpec((nb, H, W, Cp), lambda i: (i, 0, 0, 0)),
                pl.BlockSpec((Cp, 9 * Cp), lambda i: (0, 0)),
                pl.BlockSpec((1, Cp), lambda i: (0, 0)),
                pl.BlockSpec((Cp, 9 * Cp), lambda i: (0, 0)),
                pl.BlockSpec((1, Cp), lambda i: (0, 0)),
            ],
            out_specs=pl.BlockSpec((nb, H, W, Cp), lambda i: (i, 0, 0, 0)),
            scratch_shapes=[
                pltpu.VMEM((H + 2, W, Cp), compute_dtype),   # shared padded source
            ],
        ),
        compiler_params=pltpu.CompilerParams(
            dimension_semantics=("parallel",),
            vmem_limit_bytes=vmem_limit),
    )(x_p, w1_k, b1_k, w2_k, b2_k)

    out = out_p[..., :C]
    return jnp.transpose(out, (0, 3, 1, 2)).astype(x_nchw.dtype)


def ref_forward(x, w1, b1, w2, b2):
    """Pure-JAX NCHW reference (mirrors the PyTorch forward)."""
    dn = jax.lax.conv_dimension_numbers(x.shape, w1.shape,
                                        ("NCHW", "OIHW", "NCHW"))
    out = jax.lax.conv_general_dilated(
        x, w1, (1, 1), ((1, 1), (1, 1)), dimension_numbers=dn)
    out = out + b1[None, :, None, None]
    out = jnp.where(out > 0, out, 0.2 * out)
    out = jax.lax.conv_general_dilated(
        out, w2, (1, 1), ((1, 1), (1, 1)), dimension_numbers=dn)
    out = out + b2[None, :, None, None]
    return out + x


if __name__ == "__main__":
    key = jax.random.PRNGKey(0)
    N, C, H, W = 2, 4, 16, 16
    k1, k2, k3, k4, k5 = jax.random.split(key, 5)

    x = jax.random.normal(k1, (N, C, H, W), jnp.float32)

    # Deterministic parameter init (uniform in +/- 1/sqrt(fan_in), like nn.Conv2d).
    fan_in = C * 3 * 3
    bound = 1.0 / (fan_in ** 0.5)
    w1 = jax.random.uniform(k2, (C, C, 3, 3), jnp.float32, -bound, bound)
    b1 = jax.random.uniform(k3, (C,), jnp.float32, -bound, bound)
    w2 = jax.random.uniform(k4, (C, C, 3, 3), jnp.float32, -bound, bound)
    b2 = jax.random.uniform(k5, (C,), jnp.float32, -bound, bound)

    ref = ref_forward(x, w1, b1, w2, b2)

    # f32 MXU-operand path — tight semantic check.  (Mosaic lowers f32 matmuls via
    # multi-pass MXU decomposition; tolerance kept at 1e-3 to stay robust across
    # TPU generations rather than assuming a specific precision mode.)
    out_f32 = residual_block(x, w1, b1, w2, b2, compute_dtype=jnp.float32)
    jax.block_until_ready(out_f32)
    assert out_f32.shape == x.shape
    if not jnp.allclose(out_f32, ref, atol=1e-3, rtol=1e-3):
        raise SystemExit("f32 kernel mismatch vs reference")

    # bf16 MXU operands + bf16 input block, f32 accumulation — the fast path.
    out_bf16 = residual_block(x, w1, b1, w2, b2, compute_dtype=jnp.bfloat16)
    jax.block_until_ready(out_bf16)
    if not jnp.allclose(out_bf16, ref, atol=3e-2, rtol=3e-2):
        raise SystemExit("bf16 kernel mismatch vs reference")

    print("KERNEL_OK")
</pallas_src>

<mosaic_0001>
module attributes {stable_mosaic.version = 11 : i64} {
  func.func @residual_block_kernel(%arg0: i32, %arg1: memref<1x16x16x128xf32, #tpu.memory_space<vmem>>, %arg2: memref<128x1152xf32, #tpu.memory_space<vmem>>, %arg3: memref<1x128xf32, #tpu.memory_space<vmem>>, %arg4: memref<128x1152xf32, #tpu.memory_space<vmem>>, %arg5: memref<1x128xf32, #tpu.memory_space<vmem>>, %arg6: memref<1x16x16x128xf32, #tpu.memory_space<vmem>>, %arg7: memref<18x16x128xf32, #tpu.memory_space<vmem>>) attributes {dimension_semantics = [#tpu.dimension_semantics<parallel>], iteration_bounds = array<i64: 2>, scalar_prefetch = 0 : i64, scratch_operands = 1 : i64, tpu.core_type = #tpu.core_type<tc>, window_params = [{transform_indices = @transform_0, window_bounds = array<i64: 1, 16, 16, 128>}, {pipeline_mode = #tpu.pipeline_mode<synchronous>, transform_indices = @transform_1, window_bounds = array<i64: 128, 1152>}, {pipeline_mode = #tpu.pipeline_mode<synchronous>, transform_indices = @transform_2, window_bounds = array<i64: 1, 128>}, {pipeline_mode = #tpu.pipeline_mode<synchronous>, transform_indices = @transform_3, window_bounds = array<i64: 128, 1152>}, {pipeline_mode = #tpu.pipeline_mode<synchronous>, transform_indices = @transform_4, window_bounds = array<i64: 1, 128>}, {transform_indices = @transform_5, window_bounds = array<i64: 1, 16, 16, 128>}]} {
    %cst = arith.constant 0.000000e+00 : f32
    %0 = vector.broadcast %cst : f32 to vector<16x128xf32>
    %c0 = arith.constant 0 : index
    %c0_0 = arith.constant 0 : index
    %c0_1 = arith.constant 0 : index
    %1 = vector.load %arg7[%c0, %c0_0, %c0_1] : memref<18x16x128xf32, #tpu.memory_space<vmem>>, vector<1x16x128xf32>
    %2 = vector.shape_cast %1 : vector<1x16x128xf32> to vector<16x128xf32>
    %3 = vector.shape_cast %0 : vector<16x128xf32> to vector<1x16x128xf32>
    tpu.vector_store %arg7[%c0, %c0_0, %c0_1], %3 {strides = array<i32>} : memref<18x16x128xf32, #tpu.memory_space<vmem>>, vector<1x16x128xf32>,
    %cst_2 = arith.constant 0.000000e+00 : f32
    %4 = vector.broadcast %cst_2 : f32 to vector<16x128xf32>
    %c17 = arith.constant 17 : index
    %c0_3 = arith.constant 0 : index
    %c0_4 = arith.constant 0 : index
    %5 = vector.load %arg7[%c17, %c0_3, %c0_4] : memref<18x16x128xf32, #tpu.memory_space<vmem>>, vector<1x16x128xf32>
    %6 = vector.shape_cast %5 : vector<1x16x128xf32> to vector<16x128xf32>
    %7 = vector.shape_cast %4 : vector<16x128xf32> to vector<1x16x128xf32>
    tpu.vector_store %arg7[%c17, %c0_3, %c0_4], %7 {strides = array<i32>} : memref<18x16x128xf32, #tpu.memory_space<vmem>>, vector<1x16x128xf32>,
    %8 = tpu.iota {dimensions = array<i32: 1>} : vector<16x16x128xi32>
    %c1_i32 = arith.constant 1 : i32
    %9 = vector.broadcast %c1_i32 : i32 to vector<16x16x128xi32>
    %10 = arith.cmpi sge, %8, %9 : vector<16x16x128xi32>
    %c15_i32 = arith.constant 15 : i32
    %11 = vector.broadcast %c15_i32 : i32 to vector<16x16x128xi32>
    %12 = arith.cmpi slt, %8, %11 : vector<16x16x128xi32>
    %c0_5 = arith.constant 0 : index
    %c0_6 = arith.constant 0 : index
    %c0_7 = arith.constant 0 : index
    %c0_8 = arith.constant 0 : index
    %13 = vector.load %arg1[%c0_5, %c0_6, %c0_7, %c0_8] : memref<1x16x16x128xf32, #tpu.memory_space<vmem>>, vector<1x16x16x128xf32>
    %14 = vector.shape_cast %13 : vector<1x16x16x128xf32> to vector<16x16x128xf32>
    %c1 = arith.constant 1 : index
    %c0_9 = arith.constant 0 : index
    %c0_10 = arith.constant 0 : index
    %15 = vector.load %arg7[%c1, %c0_9, %c0_10] : memref<18x16x128xf32, #tpu.memory_space<vmem>>, vector<16x16x128xf32>
    tpu.vector_store %arg7[%c1, %c0_9, %c0_10], %14 {strides = array<i32>} : memref<18x16x128xf32, #tpu.memory_space<vmem>>, vector<16x16x128xf32>,
    %c0_11 = arith.constant 0 : index
    %c0_12 = arith.constant 0 : index
    %c0_13 = arith.constant 0 : index
    %16 = vector.load %arg7[%c0_11, %c0_12, %c0_13] : memref<18x16x128xf32, #tpu.memory_space<vmem>>, vector<18x16x128xf32>
    %17 = vector.shape_cast %16 : vector<18x16x128xf32> to vector<288x128xf32>
    %c0_14 = arith.constant 0 : index
    %c0_15 = arith.constant 0 : index
    %18 = vector.load %arg2[%c0_14, %c0_15] : memref<128x1152xf32, #tpu.memory_space<vmem>>, vector<128x1152xf32>
    %cst_16 = arith.constant dense<0.000000e+00> : vector<288x1152xf32>
    %19 = tpu.matmul %17, %18, %cst_16 {dimension_numbers = #tpu.dot_dimension_numbers<[1], [0], [0], [1], [0, 0, 1, 1], [], []>} : vector<288x128xf32>, vector<128x1152xf32>, vector<288x1152xf32> -> vector<288x1152xf32>
    %20 = vector.shape_cast %19 : vector<288x1152xf32> to vector<18x16x1152xf32>
    %21 = vector.extract_strided_slice %20 {offsets = [0, 0, 0], sizes = [16, 16, 128], strides = [1, 1, 1]} : vector<18x16x1152xf32> to vector<16x16x128xf32>
    %c1_i32_17 = arith.constant 1 : i32
    %22 = tpu.dynamic_rotate %21 by %c1_i32_17 dim 1 : vector<16x16x128xf32>, i32 -> vector<16x16x128xf32>
    %cst_18 = arith.constant 0.000000e+00 : f32
    %23 = vector.broadcast %cst_18 : f32 to vector<16x16x128xf32>
    %24 = arith.select %10, %22, %23 : vector<16x16x128xi1>, vector<16x16x128xf32>
    %25 = vector.extract_strided_slice %20 {offsets = [0, 0, 128], sizes = [16, 16, 128], strides = [1, 1, 1]} : vector<18x16x1152xf32> to vector<16x16x128xf32>
    %26 = arith.addf %24, %25 : vector<16x16x128xf32>
    %27 = vector.extract_strided_slice %20 {offsets = [0, 0, 256], sizes = [16, 16, 128], strides = [1, 1, 1]} : vector<18x16x1152xf32> to vector<16x16x128xf32>
    %c15_i32_19 = arith.constant 15 : i32
    %28 = tpu.dynamic_rotate %27 by %c15_i32_19 dim 1 : vector<16x16x128xf32>, i32 -> vector<16x16x128xf32>
    %cst_20 = arith.constant 0.000000e+00 : f32
    %29 = vector.broadcast %cst_20 : f32 to vector<16x16x128xf32>
    %30 = arith.select %12, %28, %29 : vector<16x16x128xi1>, vector<16x16x128xf32>
    %31 = arith.addf %26, %30 : vector<16x16x128xf32>
    %32 = vector.extract_strided_slice %20 {offsets = [1, 0, 384], sizes = [16, 16, 128], strides = [1, 1, 1]} : vector<18x16x1152xf32> to vector<16x16x128xf32>
    %c1_i32_21 = arith.constant 1 : i32
    %33 = tpu.dynamic_rotate %32 by %c1_i32_21 dim 1 : vector<16x16x128xf32>, i32 -> vector<16x16x128xf32>
    %cst_22 = arith.constant 0.000000e+00 : f32
    %34 = vector.broadcast %cst_22 : f32 to vector<16x16x128xf32>
    %35 = arith.select %10, %33, %34 : vector<16x16x128xi1>, vector<16x16x128xf32>
    %36 = arith.addf %31, %35 : vector<16x16x128xf32>
    %37 = vector.extract_strided_slice %20 {offsets = [1, 0, 512], sizes = [16, 16, 128], strides = [1, 1, 1]} : vector<18x16x1152xf32> to vector<16x16x128xf32>
    %38 = arith.addf %36, %37 : vector<16x16x128xf32>
    %39 = vector.extract_strided_slice %20 {offsets = [1, 0, 640], sizes = [16, 16, 128], strides = [1, 1, 1]} : vector<18x16x1152xf32> to vector<16x16x128xf32>
    %c15_i32_23 = arith.constant 15 : i32
    %40 = tpu.dynamic_rotate %39 by %c15_i32_23 dim 1 : vector<16x16x128xf32>, i32 -> vector<16x16x128xf32>
    %cst_24 = arith.constant 0.000000e+00 : f32
    %41 = vector.broadcast %cst_24 : f32 to vector<16x16x128xf32>
    %42 = arith.select %12, %40, %41 : vector<16x16x128xi1>, vector<16x16x128xf32>
    %43 = arith.addf %38, %42 : vector<16x16x128xf32>
    %44 = vector.extract_strided_slice %20 {offsets = [2, 0, 768], sizes = [16, 16, 128], strides = [1, 1, 1]} : vector<18x16x1152xf32> to vector<16x16x128xf32>
    %c1_i32_25 = arith.constant 1 : i32
    %45 = tpu.dynamic_rotate %44 by %c1_i32_25 dim 1 : vector<16x16x128xf32>, i32 -> vector<16x16x128xf32>
    %cst_26 = arith.constant 0.000000e+00 : f32
    %46 = vector.broadcast %cst_26 : f32 to vector<16x16x128xf32>
    %47 = arith.select %10, %45, %46 : vector<16x16x128xi1>, vector<16x16x128xf32>
    %48 = arith.addf %43, %47 : vector<16x16x128xf32>
    %49 = vector.extract_strided_slice %20 {offsets = [2, 0, 896], sizes = [16, 16, 128], strides = [1, 1, 1]} : vector<18x16x1152xf32> to vector<16x16x128xf32>
    %50 = arith.addf %48, %49 : vector<16x16x128xf32>
    %51 = vector.extract_strided_slice %20 {offsets = [2, 0, 1024], sizes = [16, 16, 128], strides = [1, 1, 1]} : vector<18x16x1152xf32> to vector<16x16x128xf32>
    %c15_i32_27 = arith.constant 15 : i32
    %52 = tpu.dynamic_rotate %51 by %c15_i32_27 dim 1 : vector<16x16x128xf32>, i32 -> vector<16x16x128xf32>
    %cst_28 = arith.constant 0.000000e+00 : f32
    %53 = vector.broadcast %cst_28 : f32 to vector<16x16x128xf32>
    %54 = arith.select %12, %52, %53 : vector<16x16x128xi1>, vector<16x16x128xf32>
    %55 = arith.addf %50, %54 : vector<16x16x128xf32>
    %c0_29 = arith.constant 0 : index
    %c0_30 = arith.constant 0 : index
    %56 = vector.load %arg3[%c0_29, %c0_30] : memref<1x128xf32, #tpu.memory_space<vmem>>, vector<1x128xf32>
    %57 = vector.shape_cast %56 : vector<1x128xf32> to vector<1x1x128xf32>
    %58 = vector.broadcast %57 : vector<1x1x128xf32> to vector<16x16x128xf32>
    %59 = arith.addf %55, %58 : vector<16x16x128xf32>
    %cst_31 = arith.constant 0.000000e+00 : f32
    %60 = vector.broadcast %cst_31 : f32 to vector<16x16x128xf32>
    %61 = arith.cmpf ogt, %59, %60 : vector<16x16x128xf32>
    %cst_32 = arith.constant 2.000000e-01 : f32
    %62 = vector.broadcast %cst_32 : f32 to vector<16x16x128xf32>
    %63 = arith.mulf %62, %59 : vector<16x16x128xf32>
    %64 = arith.select %61, %59, %63 : vector<16x16x128xi1>, vector<16x16x128xf32>
    %c1_33 = arith.constant 1 : index
    %c0_34 = arith.constant 0 : index
    %c0_35 = arith.constant 0 : index
    %65 = vector.load %arg7[%c1_33, %c0_34, %c0_35] : memref<18x16x128xf32, #tpu.memory_space<vmem>>, vector<16x16x128xf32>
    tpu.vector_store %arg7[%c1_33, %c0_34, %c0_35], %64 {strides = array<i32>} : memref<18x16x128xf32, #tpu.memory_space<vmem>>, vector<16x16x128xf32>,
    %c0_36 = arith.constant 0 : index
    %c0_37 = arith.constant 0 : index
    %c0_38 = arith.constant 0 : index
    %66 = vector.load %arg7[%c0_36, %c0_37, %c0_38] : memref<18x16x128xf32, #tpu.memory_space<vmem>>, vector<18x16x128xf32>
    %67 = vector.shape_cast %66 : vector<18x16x128xf32> to vector<288x128xf32>
    %c0_39 = arith.constant 0 : index
    %c0_40 = arith.constant 0 : index
    %68 = vector.load %arg4[%c0_39, %c0_40] : memref<128x1152xf32, #tpu.memory_space<vmem>>, vector<128x1152xf32>
    %cst_41 = arith.constant dense<0.000000e+00> : vector<288x1152xf32>
    %69 = tpu.matmul %67, %68, %cst_41 {dimension_numbers = #tpu.dot_dimension_numbers<[1], [0], [0], [1], [0, 0, 1, 1], [], []>} : vector<288x128xf32>, vector<128x1152xf32>, vector<288x1152xf32> -> vector<288x1152xf32>
    %70 = vector.shape_cast %69 : vector<288x1152xf32> to vector<18x16x1152xf32>
    %71 = vector.extract_strided_slice %70 {offsets = [0, 0, 0], sizes = [16, 16, 128], strides = [1, 1, 1]} : vector<18x16x1152xf32> to vector<16x16x128xf32>
    %c1_i32_42 = arith.constant 1 : i32
    %72 = tpu.dynamic_rotate %71 by %c1_i32_42 dim 1 : vector<16x16x128xf32>, i32 -> vector<16x16x128xf32>
    %cst_43 = arith.constant 0.000000e+00 : f32
    %73 = vector.broadcast %cst_43 : f32 to vector<16x16x128xf32>
    %74 = arith.select %10, %72, %73 : vector<16x16x128xi1>, vector<16x16x128xf32>
    %75 = vector.extract_strided_slice %70 {offsets = [0, 0, 128], sizes = [16, 16, 128], strides = [1, 1, 1]} : vector<18x16x1152xf32> to vector<16x16x128xf32>
    %76 = arith.addf %74, %75 : vector<16x16x128xf32>
    %77 = vector.extract_strided_slice %70 {offsets = [0, 0, 256], sizes = [16, 16, 128], strides = [1, 1, 1]} : vector<18x16x1152xf32> to vector<16x16x128xf32>
    %c15_i32_44 = arith.constant 15 : i32
    %78 = tpu.dynamic_rotate %77 by %c15_i32_44 dim 1 : vector<16x16x128xf32>, i32 -> vector<16x16x128xf32>
    %cst_45 = arith.constant 0.000000e+00 : f32
    %79 = vector.broadcast %cst_45 : f32 to vector<16x16x128xf32>
    %80 = arith.select %12, %78, %79 : vector<16x16x128xi1>, vector<16x16x128xf32>
    %81 = arith.addf %76, %80 : vector<16x16x128xf32>
    %82 = vector.extract_strided_slice %70 {offsets = [1, 0, 384], sizes = [16, 16, 128], strides = [1, 1, 1]} : vector<18x16x1152xf32> to vector<16x16x128xf32>
    %c1_i32_46 = arith.constant 1 : i32
    %83 = tpu.dynamic_rotate %82 by %c1_i32_46 dim 1 : vector<16x16x128xf32>, i32 -> vector<16x16x128xf32>
    %cst_47 = arith.constant 0.000000e+00 : f32
    %84 = vector.broadcast %cst_47 : f32 to vector<16x16x128xf32>
    %85 = arith.select %10, %83, %84 : vector<16x16x128xi1>, vector<16x16x128xf32>
    %86 = arith.addf %81, %85 : vector<16x16x128xf32>
    %87 = vector.extract_strided_slice %70 {offsets = [1, 0, 512], sizes = [16, 16, 128], strides = [1, 1, 1]} : vector<18x16x1152xf32> to vector<16x16x128xf32>
    %88 = arith.addf %86, %87 : vector<16x16x128xf32>
    %89 = vector.extract_strided_slice %70 {offsets = [1, 0, 640], sizes = [16, 16, 128], strides = [1, 1, 1]} : vector<18x16x1152xf32> to vector<16x16x128xf32>
    %c15_i32_48 = arith.constant 15 : i32
    %90 = tpu.dynamic_rotate %89 by %c15_i32_48 dim 1 : vector<16x16x128xf32>, i32 -> vector<16x16x128xf32>
    %cst_49 = arith.constant 0.000000e+00 : f32
    %91 = vector.broadcast %cst_49 : f32 to vector<16x16x128xf32>
    %92 = arith.select %12, %90, %91 : vector<16x16x128xi1>, vector<16x16x128xf32>
    %93 = arith.addf %88, %92 : vector<16x16x128xf32>
    %94 = vector.extract_strided_slice %70 {offsets = [2, 0, 768], sizes = [16, 16, 128], strides = [1, 1, 1]} : vector<18x16x1152xf32> to vector<16x16x128xf32>
    %c1_i32_50 = arith.constant 1 : i32
    %95 = tpu.dynamic_rotate %94 by %c1_i32_50 dim 1 : vector<16x16x128xf32>, i32 -> vector<16x16x128xf32>
    %cst_51 = arith.constant 0.000000e+00 : f32
    %96 = vector.broadcast %cst_51 : f32 to vector<16x16x128xf32>
    %97 = arith.select %10, %95, %96 : vector<16x16x128xi1>, vector<16x16x128xf32>
    %98 = arith.addf %93, %97 : vector<16x16x128xf32>
    %99 = vector.extract_strided_slice %70 {offsets = [2, 0, 896], sizes = [16, 16, 128], strides = [1, 1, 1]} : vector<18x16x1152xf32> to vector<16x16x128xf32>
    %100 = arith.addf %98, %99 : vector<16x16x128xf32>
    %101 = vector.extract_strided_slice %70 {offsets = [2, 0, 1024], sizes = [16, 16, 128], strides = [1, 1, 1]} : vector<18x16x1152xf32> to vector<16x16x128xf32>
    %c15_i32_52 = arith.constant 15 : i32
    %102 = tpu.dynamic_rotate %101 by %c15_i32_52 dim 1 : vector<16x16x128xf32>, i32 -> vector<16x16x128xf32>
    %cst_53 = arith.constant 0.000000e+00 : f32
    %103 = vector.broadcast %cst_53 : f32 to vector<16x16x128xf32>
    %104 = arith.select %12, %102, %103 : vector<16x16x128xi1>, vector<16x16x128xf32>
    %105 = arith.addf %100, %104 : vector<16x16x128xf32>
    %c0_54 = arith.constant 0 : index
    %c0_55 = arith.constant 0 : index
    %106 = vector.load %arg5[%c0_54, %c0_55] : memref<1x128xf32, #tpu.memory_space<vmem>>, vector<1x128xf32>
    %107 = vector.shape_cast %106 : vector<1x128xf32> to vector<1x1x128xf32>
    %108 = vector.broadcast %107 : vector<1x1x128xf32> to vector<16x16x128xf32>
    %109 = arith.addf %105, %108 : vector<16x16x128xf32>
    %110 = arith.addf %109, %14 : vector<16x16x128xf32>
    %c0_56 = arith.constant 0 : index
    %c0_57 = arith.constant 0 : index
    %c0_58 = arith.constant 0 : index
    %c0_59 = arith.constant 0 : index
    %111 = vector.load %arg6[%c0_56, %c0_57, %c0_58, %c0_59] : memref<1x16x16x128xf32, #tpu.memory_space<vmem>>, vector<1x16x16x128xf32>
    %112 = vector.shape_cast %111 : vector<1x16x16x128xf32> to vector<16x16x128xf32>
    %113 = vector.shape_cast %110 : vector<16x16x128xf32> to vector<1x16x16x128xf32>
    tpu.vector_store %arg6[%c0_56, %c0_57, %c0_58, %c0_59], %113 {strides = array<i32>} : memref<1x16x16x128xf32, #tpu.memory_space<vmem>>, vector<1x16x16x128xf32>,
    return
  }
  func.func @transform_0(%arg0: i32) -> (i32, i32, i32, i32) {
    %c0_i32 = arith.constant 0 : i32
    %c0_i32_0 = arith.constant 0 : i32
    %c0_i32_1 = arith.constant 0 : i32
    %c0_i32_2 = arith.constant 0 : i32
    return %arg0, %c0_i32, %c0_i32_0, %c0_i32_1 : i32, i32, i32, i32
  }
  func.func @transform_1(%arg0: i32) -> (i32, i32) {
    %c0_i32 = arith.constant 0 : i32
    %c0_i32_0 = arith.constant 0 : i32
    %c0_i32_1 = arith.constant 0 : i32
    return %c0_i32, %c0_i32_0 : i32, i32
  }
  func.func @transform_2(%arg0: i32) -> (i32, i32) {
    %c0_i32 = arith.constant 0 : i32
    %c0_i32_0 = arith.constant 0 : i32
    %c0_i32_1 = arith.constant 0 : i32
    return %c0_i32, %c0_i32_0 : i32, i32
  }
  func.func @transform_3(%arg0: i32) -> (i32, i32) {
    %c0_i32 = arith.constant 0 : i32
    %c0_i32_0 = arith.constant 0 : i32
    %c0_i32_1 = arith.constant 0 : i32
    return %c0_i32, %c0_i32_0 : i32, i32
  }
  func.func @transform_4(%arg0: i32) -> (i32, i32) {
    %c0_i32 = arith.constant 0 : i32
    %c0_i32_0 = arith.constant 0 : i32
    %c0_i32_1 = arith.constant 0 : i32
    return %c0_i32, %c0_i32_0 : i32, i32
  }
  func.func @transform_5(%arg0: i32) -> (i32, i32, i32, i32) {
    %c0_i32 = arith.constant 0 : i32
    %c0_i32_0 = arith.constant 0 : i32
    %c0_i32_1 = arith.constant 0 : i32
    %c0_i32_2 = arith.constant 0 : i32
    return %arg0, %c0_i32, %c0_i32_0, %c0_i32_1 : i32, i32, i32, i32
  }
}

</mosaic_0001>

<bundles_post_ra>
// kernel: tpu_custom_call.1
= control target key start
LH: loop header
LB: loop body
LE: loop exit
PB: predicated region body
PF: predicated region fallthrough
CT: control target
= control target key end

     0   :  { %10 = vsyncpa [#allocation4], 0  ;;  %s9568_s0 = inlined_call_operand.hbm [shape: f32[2,16,16,128], index: 0, kind: input, shape index: {}]   ;;  %s9569_s1 = inlined_call_operand.hbm [shape: f32[128,1152], index: 1, kind: input, shape index: {}]   ;;  %s9570_s2 = inlined_call_operand.vmem [shape: f32[1,128], index: 2, kind: input, shape index: {}]   ;;  %s9571_s3 = inlined_call_operand.hbm [shape: f32[128,1152], index: 3, kind: input, shape index: {}]   ;;  %s9572_s4 = inlined_call_operand.vmem [shape: f32[1,128], index: 4, kind: input, shape index: {}]   ;;  %s9573_s5 = inlined_call_operand.hbm [shape: f32[2,16,16,128], index: 5, kind: output, shape index: {}]  }
   0x1   :  { %12 = vsyncpa [#allocation4 + $0x1], 0 }
   0x2   :  { %13 = vsyncpa [#allocation7], 0 }
   0x3   :  { %14 = vsyncpa [#allocation5], 0 }
   0x4   :  { %16 = vsyncpa [#allocation5 + $0x1], 0  ;;  %s6044_s18 = smov 0   ;;  %s6046_s19 = smov 0  }
   0x5   :  { %s6048_s20 = smov 0   ;;  %s6050_s21 = smov 0  }
   0x6 LB: > { %s6065_s22 = sadd.s32 4294967295, %s6001_s21   ;;  %s5417_s23 = sadd.s32 4294967294, %s6001_s21   ;;  %s6001_s21 = sphi %s6050_s21, %s9840_s21   ;;  %s5997_s20 = sphi %s6048_s20, %s9839_s20   ;;  %s5993_s19 = sphi %s6046_s19, %s9838_s19   ;;  %s5989_s18 = sphi %s6044_s18, %s9837_s18  }
   0x7   : > { %p42_p0 = scmp.ne.s32.totalorder %s5993_s19, %s5989_s18  ;;  %p9574_p1 = scmp.eq.s32.totalorder %s6065_s22, 0 }
   0x8   : > { %p156_p3 = scmp.eq.s32.totalorder %s5417_s23, 1  ;;  %p5418_p5 = scmp.ge.s32.totalorder %s6001_s21, 1 }
   0x9   : > { %p6074_p4 = por %p9574_p1, %p42_p0  ;;  %p163_p7 = scmp.lt.s32.totalorder %s6001_s21, 3 }
   0xa   : > { %p6079_p6 = por %p156_p3, %p42_p0  ;;  %s6003_s27 = smov [#allocation6]  }
   0xb   : > { %s9589_s24 = scalar_select %p6074_p4, 1, 0 }
   0xc   : > { %s9590_s25 = scalar_select %p6079_p6, 1, 0 }
   0xd   : > { %p6084_p8 = pnand %p5418_p5, %p163_p7  ;;  %s175_s28 = sshll.u32 %s6003_s27, 4  ;;  %s176_s28 = int_to_ptr.vmem [resolvable:$true] %s175_s28 }
   0xe   : > { %s6004_s30 = smov [#allocation8]   ;;  %s5864_s7 = scalar_lea.vmem %s176_s28, 18432 }
   0xf   : > { %s9591_s26 = scalar_select %p6084_p8, 1, 0 }
  0x10   : > { %p5727_p9 = pneg %p6084_p8  ;;  %s191_s6 = sshll.u32 %s6004_s30, 4  ;;  %s192_s6 = int_to_ptr.vmem [resolvable:$true] %s191_s6 }
  0x11   : > { %p5865_p13 = scmp.ne.s32.totalorder %s176_s28, %s5864_s7  ;;  %p5872_p5 = scmp.lt.s32.totalorder %s176_s28, %s176_s28 }
  0x12   : > { %p6093_p11 = pnand %p5727_p9, %p9574_p1  ;;  %p5873_p7 = scmp.lt.s32.totalorder %s5864_s7, %s5864_s7 }
  0x14   : > { %p5855_p12 = pneg %p6093_p11  ;;  %p5874_p10 = por %p5873_p7, %p5872_p5 }
  0x16   : > { %p5867_p0 = pnand %p5865_p13, %p5855_p12 }
  0x18   : > { %p5868_p3 = pneg %p5867_p0 }
  0x1a   : > { %p5875_p9 = pnand %p5874_p10, %p5868_p3 }
  0x1c   : > { %5878 = shalt.err (!%p5875_p9)
}
  0x1d   : > { %s6005_s8 = smov 1152   ;;  %s6006_s9 = smov 72  }
  0x1e   : > { %5730 = dma.hbm_to_vmem [thread:$0]  (!%p6093_p11), %s9569_s1, 18432, %s176_s28, [#allocation7], %s6005_s8, %s6005_s8, %s6006_s9  }
  0x1f   : > { %s5890_s12 = scalar_lea.vmem %s192_s6, 18432  ;;  %p5898_p2 = scmp.lt.s32.totalorder %s192_s6, %s192_s6 }
  0x20   : > { %p5891_p1 = scmp.ne.s32.totalorder %s192_s6, %s5890_s12  ;;  %p5899_p6 = scmp.lt.s32.totalorder %s5890_s12, %s5890_s12 }
  0x22   : > { %p5893_p13 = pnand %p5891_p1, %p5855_p12  ;;  %p5900_p5 = por %p5899_p6, %p5898_p2 }
  0x24   : > { %p5894_p0 = pneg %p5893_p13 }
  0x26   : > { %p5901_p10 = pnand %p5900_p5, %p5894_p0 }
  0x28   : > { %5904 = shalt.err (!%p5901_p10)
}
  0x29   : > { %5733 = dma.hbm_to_vmem [thread:$0]  (!%p6093_p11), %s9571_s3, 18432, %s192_s6, [#allocation7], %s6005_s8, %s6005_s8, %s6006_s9  }
  0x2a   : > { %s6116_s15 = sadd.s32 1, %s6001_s21   ;;  %s29_s16 = sadd.s32 1, %s5997_s20 }
  0x2b   : > { %s26_s17 = ssub.s32 %s6001_s21, %s6116_s15  ;;  %p36_p1 = scmp.ne.s32.totalorder %s5997_s20, %s5993_s19 }
  0x2c   : > { %p27_p2 = scmp.eq.s32.totalorder %s26_s17, 0  ;;  %p37_p6 = scmp.eq.s32.totalorder %s6001_s21, 0 }
  0x2d   : > { %p9593_p12 = scmp.eq.s32.totalorder %s6065_s22, 1  ;;  %p5744_p7 = scmp.lt.s32.totalorder %s6001_s21, 2 }
  0x2e   : > { %s6132_s27 = scalar_select %p27_p2, %s5997_s20, %s29_s16  }
  0x2f   : > { %p6126_p3 = por %p9593_p12, %p36_p1  ;;  %p38_p9 = por %p37_p6, %p36_p1 }
  0x30   : > { %s208_s28 = sand.u32 1, %s5997_s20   ;;  %s5437_s30 = sshll.u32 %s6001_s21, 12 }
  0x31   : > { %s9594_s23 = scalar_select %p6126_p3, 1, 0 }
  0x32   : > { %s5422_s29 = sshll.u32 %s208_s28, 8  ;;  %s6139_s8 = scalar_lea.hbm %s9568_s0, %s5437_s30 }
  0x33   : > { %s212_s9 = scalar_lea.vmem [#allocation3], %s5422_s29  ;;  %p6143_p11 = pnand %p5744_p7, %p38_p9 }
  0x34   : > { %s219_s10 = sshll.u32 %s212_s9, 4  ;;  %s6147_s12 = scalar_lea.sflag [#allocation4], %s208_s28  ;;  %s6141_s10 = int_to_ptr.vmem [resolvable:$true] %s219_s10 }
  0x35   : > { %s5905_s13 = scalar_lea.hbm %s6139_s8, 4096  ;;  %p5907_p0 = pneg %p6143_p11 }
  0x36   : > { %p5906_p13 = scmp.ne.s32.totalorder %s6139_s8, %s5905_s13  ;;  %s5910_s17 = scalar_lea.hbm %s9568_s0, 8192 }
  0x37   : > { %p5911_p1 = scmp.lt.s32.totalorder %s6139_s8, %s9568_s0  ;;  %p5912_p2 = scmp.lt.s32.totalorder %s5910_s17, %s5905_s13 }
  0x38   : > { %p5908_p5 = pnand %p5907_p0, %p5906_p13 }
  0x39   : > { %p5913_p6 = por %p5912_p2, %p5911_p1 }
  0x3a   : > { %p5909_p10 = pneg %p5908_p5 }
  0x3c   : > { %p5914_p12 = pnand %p5913_p6, %p5909_p10 }
  0x3e   : > { %5917 = shalt.err (!%p5914_p12)
}
  0x3f   : > { %s5918_s28 = scalar_lea.vmem %s6141_s10, 4096  ;;  %s6007_s6 = smov [#allocation3]  }
  0x40   : > { %p5919_p7 = scmp.ne.s32.totalorder %s6141_s10, %s5918_s28  ;;  %s5923_s7 = sshll.u32 %s6007_s6, 4  ;;  %s5924_s7 = int_to_ptr.vmem [resolvable:$false] %s5923_s7 }
  0x41   : > { %s5925_s9 = scalar_lea.vmem %s5924_s7, 8192  ;;  %p5926_p5 = scmp.lt.s32.totalorder %s6141_s10, %s5924_s7 }
  0x42   : > { %p5921_p9 = pnand %p5919_p7, %p5907_p0  ;;  %p5927_p3 = scmp.lt.s32.totalorder %s5925_s9, %s5918_s28 }
  0x44   : > { %p5922_p13 = pneg %p5921_p9  ;;  %p5928_p4 = por %p5927_p3, %p5926_p5 }
  0x46   : > { %p5929_p8 = pnand %p5928_p4, %p5922_p13 }
  0x48   : > { %5932 = shalt.err (!%p5929_p8)
}
  0x49   : > { %s6008_s13 = smov 128   ;;  %s6009_s14 = smov 8  }
  0x4a   : > { %5737 = dma.hbm_to_vmem [thread:$0]  (!%p6143_p11), %s6139_s8, 4096, %s6141_s10, %s6147_s12, %s6008_s13, %s6008_s13, %s6009_s14  }
  0x4b   : > { %p9596_p0 = scmp.ne.s32.totalorder %s9591_s26, 0 }
  0x4d   : > { %231 = sbr.rel (%p9596_p0) target bundleno = 1191 (0x4a7), region = 40 }
  0x52   : > { %s6171_s16 = sand.u32 1, %s5993_s19   ;;  %p9597_p4 = scmp.ne.s32.totalorder %s9589_s24, 0 }
  0x53   : > { %s5426_s17 = sshll.u32 %s6171_s16, 8  ;;  %s234_s29 = scalar_lea.sflag [#allocation4], %s6171_s16 }
  0x54   : > { %s6177_s30 = scalar_lea.vmem [#allocation3], %s5426_s17 }
  0x55   : > { %5976 = dma.done.wait (%p9597_p4), %s234_s29, 4096  }
  0x56   : > { %5978 = vsyncadd (%p9597_p4), %s234_s29, 4294963200  ;;  %p9598_p8 = scmp.eq.s32.totalorder %s6065_s22, 0 }
  0x58   : > { %5980 = dma.done.wait (%p9598_p8), [#allocation7], 36864   ;;  %p9599_p3 = pmov %p9598_p8 }
  0x59   : > { %v9578_v0 = vmov 0.0   ;;  %v521_v1 = vld [vmem:[#allocation6 + $0x440] sm:$0xff]  ;;  %v523_v2 = vld [vmem:[#allocation6 + $0x450] sm:$0xff]  ;;  %v520_v3 = vld [vmem:[#allocation6 + $0x438] sm:$0xff]  ;;  %s9204_s11 = scalar_lea.vmem [#allocation9], %s5426_s17  ;;  %s5438_s12 = sshll.u32 %s6065_s22, 12 }
  0x5a   : > { %5982 = vsyncadd (%p9599_p3), [#allocation7], 4294930432  ;;  %593 = vmatprep.mubr.f32.mxu0 %v9578_v0  ;;  %866 = vmatprep.mubr.f32.mxu1 %v9578_v0  ;;  %v522_v4 = vld [vmem:[#allocation6 + $0x448] sm:$0xff]  ;;  %v512_v5 = vld [vmem:[#allocation6 + $0x3f8] sm:$0xff]  ;;  %s5325_s28 = sshll.u32 %s9204_s11, 4  ;;  %s9520_s9 = scalar_lea.hbm %s9573_s5, %s5438_s12  ;;  %s9522_s28 = int_to_ptr.vmem [resolvable:$true] %s5325_s28 }
  0x5b   : > { %529 = vmatprep.subr.mxu0 %v521_v1  ;;  %802 = vmatprep.subr.mxu1 %v523_v2  ;;  %v514_v6 = vld [vmem:[#allocation6 + $0x408] sm:$0xff]  ;;  %v511_v7 = vld [vmem:[#allocation6 + $0x3f0] sm:$0xff]  ;;  %v513_v8 = vld [vmem:[#allocation6 + $0x400] sm:$0xff]  ;;  %s5312_s22 = scalar_lea.sflag [#allocation5], %s6171_s16  ;;  %s5933_s13 = scalar_lea.vmem %s9522_s28, 4096 }
  0x5c   : > { %530 = vmatpush1.msra.mxu0 %v520_v3  ;;  %803 = vmatpush1.msra.mxu1 %v522_v4  ;;  %v503_v9 = vld [vmem:[#allocation6 + $0x3b0] sm:$0xff]  ;;  %v505_v10 = vld [vmem:[#allocation6 + $0x3c0] sm:$0xff]  ;;  %v502_v11 = vld [vmem:[#allocation6 + $0x3a8] sm:$0xff]  ;;  %p5934_p11 = scmp.ne.s32.totalorder %s9522_s28, %s5933_s13  ;;  %p9834_p10 = scmp.ne.s32.totalorder %s9594_s23, 0 }
  0x5d   : > { %531 = vmatprep.subr.mxu0 %v512_v5  ;;  %804 = vmatprep.subr.mxu1 %v514_v6  ;;  %v504_v12 = vld [vmem:[#allocation6 + $0x3b8] sm:$0xff]  ;;  %v494_v13 = vld [vmem:[#allocation6 + $0x368] sm:$0xff]  ;;  %v493_v15 = vld [vmem:[#allocation6 + $0x360] sm:$0xff]  ;;  %s6011_s14 = smov [#allocation9]  }
  0x5e   : > { %532 = vmatpush1.msra.mxu0 %v511_v7  ;;  %805 = vmatpush1.msra.mxu1 %v513_v8  ;;  %v496_v14 = vld [vmem:[#allocation6 + $0x378] sm:$0xff]  ;;  %v495_v16 = vld [vmem:[#allocation6 + $0x370] sm:$0xff]  ;;  %v485_v17 = vld [vmem:[#allocation6 + $0x320] sm:$0xff]  ;;  %p5935_p1 = pnand %p5934_p11, %p9834_p10  ;;  %s5937_s17 = sshll.u32 %s6011_s14, 4  ;;  %s5938_s17 = int_to_ptr.vmem [resolvable:$false] %s5937_s17 }
  0x5f   : > { %533 = vmatprep.subr.mxu0 %v503_v9  ;;  %806 = vmatprep.subr.mxu1 %v505_v10  ;;  %v487_v18 = vld [vmem:[#allocation6 + $0x330] sm:$0xff]  ;;  %v484_v19 = vld [vmem:[#allocation6 + $0x318] sm:$0xff]  ;;  %v486_v20 = vld [vmem:[#allocation6 + $0x328] sm:$0xff]  ;;  %s5939_s29 = scalar_lea.vmem %s5938_s17, 8192  ;;  %p5940_p6 = scmp.lt.s32.totalorder %s9522_s28, %s5938_s17 }
  0x60   : > { %534 = vmatpush1.msra.mxu0 %v502_v11  ;;  %807 = vmatpush1.msra.mxu1 %v504_v12  ;;  %v476_v21 = vld [vmem:[#allocation6 + $0x2d8] sm:$0xff]  ;;  %v478_v22 = vld [vmem:[#allocation6 + $0x2e8] sm:$0xff]  ;;  %v475_v23 = vld [vmem:[#allocation6 + $0x2d0] sm:$0xff]  ;;  %p5936_p2 = pneg %p5935_p1  ;;  %p5941_p12 = scmp.lt.s32.totalorder %s5939_s29, %s5933_s13 }
  0x61   : > { %535 = vmatprep.subr.mxu0 %v494_v13  ;;  %808 = vmatprep.subr.mxu1 %v496_v14  ;;  %v477_v24 = vld [vmem:[#allocation6 + $0x2e0] sm:$0xff]  ;;  %v467_v25 = vld [vmem:[#allocation6 + $0x290] sm:$0xff]  ;;  %v466_v27 = vld [vmem:[#allocation6 + $0x288] sm:$0xff] }
  0x62   : > { %536 = vmatpush1.msra.mxu0 %v493_v15  ;;  %809 = vmatpush1.msra.mxu1 %v495_v16  ;;  %v469_v26 = vld [vmem:[#allocation6 + $0x2a0] sm:$0xff]  ;;  %v468_v28 = vld [vmem:[#allocation6 + $0x298] sm:$0xff]  ;;  %v458_v29 = vld [vmem:[#allocation6 + $0x248] sm:$0xff]  ;;  %p5942_p7 = por %p5941_p12, %p5940_p6 }
  0x63   : > { %537 = vmatprep.subr.mxu0 %v485_v17  ;;  %810 = vmatprep.subr.mxu1 %v487_v18  ;;  %v460_v30 = vld [vmem:[#allocation6 + $0x258] sm:$0xff]  ;;  %v457_v31 = vld [vmem:[#allocation6 + $0x240] sm:$0xff]  ;;  %v459_v32 = vld [vmem:[#allocation6 + $0x250] sm:$0xff] }
  0x64   : > { %538 = vmatpush1.msra.mxu0 %v484_v19  ;;  %811 = vmatpush1.msra.mxu1 %v486_v20  ;;  %v449_v33 = vld [vmem:[#allocation6 + $0x200] sm:$0xff]  ;;  %v451_v34 = vld [vmem:[#allocation6 + $0x210] sm:$0xff]  ;;  %v448_v35 = vld [vmem:[#allocation6 + $0x1f8] sm:$0xff]  ;;  %p5943_p9 = pnand %p5942_p7, %p5936_p2 }
  0x65   : > { %539 = vmatprep.subr.mxu0 %v476_v21  ;;  %812 = vmatprep.subr.mxu1 %v478_v22  ;;  %v450_v36 = vld [vmem:[#allocation6 + $0x208] sm:$0xff]  ;;  %v440_v37 = vld [vmem:[#allocation6 + $0x1b8] sm:$0xff]  ;;  %v439_v39 = vld [vmem:[#allocation6 + $0x1b0] sm:$0xff] }
  0x66   : > { %540 = vmatpush1.msra.mxu0 %v475_v23  ;;  %813 = vmatpush1.msra.mxu1 %v477_v24  ;;  %v442_v38 = vld [vmem:[#allocation6 + $0x1c8] sm:$0xff]  ;;  %v441_v40 = vld [vmem:[#allocation6 + $0x1c0] sm:$0xff]  ;;  %v431_v41 = vld [vmem:[#allocation6 + $0x170] sm:$0xff] }
  0x67   : > { %541 = vmatprep.subr.mxu0 %v467_v25  ;;  %814 = vmatprep.subr.mxu1 %v469_v26  ;;  %v433_v42 = vld [vmem:[#allocation6 + $0x180] sm:$0xff]  ;;  %v430_v43 = vld [vmem:[#allocation6 + $0x168] sm:$0xff]  ;;  %v432_v44 = vld [vmem:[#allocation6 + $0x178] sm:$0xff] }
  0x68   : > { %542 = vmatpush1.msra.mxu0 %v466_v27  ;;  %815 = vmatpush1.msra.mxu1 %v468_v28  ;;  %v422_v45 = vld [vmem:[#allocation6 + $0x128] sm:$0xff]  ;;  %v424_v46 = vld [vmem:[#allocation6 + $0x138] sm:$0xff]  ;;  %v421_v47 = vld [vmem:[#allocation6 + $0x120] sm:$0xff] }
  0x69   : > { %543 = vmatprep.subr.mxu0 %v458_v29  ;;  %816 = vmatprep.subr.mxu1 %v460_v30  ;;  %v423_v48 = vld [vmem:[#allocation6 + $0x130] sm:$0xff]  ;;  %v413_v49 = vld [vmem:[#allocation6 + $0xe0] sm:$0xff]  ;;  %v412_v51 = vld [vmem:[#allocation6 + $0xd8] sm:$0xff] }
  0x6a   : > { %544 = vmatpush1.msra.mxu0 %v457_v31  ;;  %817 = vmatpush1.msra.mxu1 %v459_v32  ;;  %v415_v50 = vld [vmem:[#allocation6 + $0xf0] sm:$0xff]  ;;  %v414_v52 = vld [vmem:[#allocation6 + $0xe8] sm:$0xff]  ;;  %v404_v53 = vld [vmem:[#allocation6 + $0x98] sm:$0xff] }
  0x6b   : > { %545 = vmatprep.subr.mxu0 %v449_v33  ;;  %818 = vmatprep.subr.mxu1 %v451_v34  ;;  %v406_v54 = vld [vmem:[#allocation6 + $0xa8] sm:$0xff]  ;;  %v403_v55 = vld [vmem:[#allocation6 + $0x90] sm:$0xff]  ;;  %v405_v56 = vld [vmem:[#allocation6 + $0xa0] sm:$0xff] }
  0x6c   : > { %546 = vmatpush1.msra.mxu0 %v448_v35  ;;  %819 = vmatpush1.msra.mxu1 %v450_v36  ;;  %v395_v57 = vld [vmem:[#allocation6 + $0x50] sm:$0xff]  ;;  %v397_v58 = vld [vmem:[#allocation6 + $0x60] sm:$0xff]  ;;  %v394_v59 = vld [vmem:[#allocation6 + $0x48] sm:$0xff] }
  0x6d   : > { %547 = vmatprep.subr.mxu0 %v440_v37  ;;  %820 = vmatprep.subr.mxu1 %v442_v38  ;;  %v396_v60 = vld [vmem:[#allocation6 + $0x58] sm:$0xff]  ;;  %v386_v61 = vld [vmem:[#allocation6 + $0x8] sm:$0xff]  ;;  %v385_v63 = vld [vmem:[#allocation6] sm:$0xff] }
  0x6e   : > { %548 = vmatpush1.msra.mxu0 %v439_v39  ;;  %821 = vmatpush1.msra.mxu1 %v441_v40  ;;  %v388_v62 = vld [vmem:[#allocation6 + $0x18] sm:$0xff]  ;;  %v387_v1 = vld [vmem:[#allocation6 + $0x10] sm:$0xff]  ;;  %v525_v2 = vld [vmem:[#allocation6 + $0x460] sm:$0xff] }
  0x6f   : > { %549 = vmatprep.subr.mxu0 %v431_v41  ;;  %822 = vmatprep.subr.mxu1 %v433_v42  ;;  %v524_v3 = vld [vmem:[#allocation6 + $0x458] sm:$0xff]  ;;  %v515_v5 = vld [vmem:[#allocation6 + $0x410] sm:$0xff]  ;;  %v6198_v7 = vld [vmem:[%s6177_s30] sm:$0xff] }
  0x70   : > { %550 = vmatpush1.msra.mxu0 %v430_v43  ;;  %823 = vmatpush1.msra.mxu1 %v432_v44  ;;  %v516_v4 = vld [vmem:[#allocation6 + $0x418] sm:$0xff]  ;;  %v507_v6 = vld [vmem:[#allocation6 + $0x3d0] sm:$0xff]  ;;  %v506_v9 = vld [vmem:[#allocation6 + $0x3c8] sm:$0xff] }
  0x71   : > { %551 = vmatprep.subr.mxu0 %v422_v45  ;;  %824 = vmatprep.subr.mxu1 %v424_v46  ;;  %v527_v8 = vld [vmem:[#allocation6 + $0x470] sm:$0xff]  ;;  %v526_v10 = vld [vmem:[#allocation6 + $0x468] sm:$0xff]  ;;  %v497_v14 = vld [vmem:[#allocation6 + $0x380] sm:$0xff] }
  0x72   : > { %552 = vmatpush1.msra.mxu0 %v421_v47  ;;  %825 = vmatpush1.msra.mxu1 %v423_v48  ;;  %v498_v11 = vld [vmem:[#allocation6 + $0x388] sm:$0xff]  ;;  %v517_v15 = vld [vmem:[#allocation6 + $0x420] sm:$0xff]  ;;  %v6212_v18 = vld [vmem:[%s6177_s30 + $0x10] sm:$0xff] }
  0x73   : > { %553 = vmatprep.subr.mxu0 %v413_v49  ;;  %826 = vmatprep.subr.mxu1 %v415_v50  ;;  %v518_v12 = vld [vmem:[#allocation6 + $0x428] sm:$0xff]  ;;  %v489_v16 = vld [vmem:[#allocation6 + $0x340] sm:$0xff]  ;;  %v488_v19 = vld [vmem:[#allocation6 + $0x338] sm:$0xff] }
  0x74   : > { %554 = vmatpush1.msra.mxu0 %v412_v51  ;;  %827 = vmatpush1.msra.mxu1 %v414_v52  ;;  %v6205_v13 = vld [vmem:[%s6177_s30 + $0x8] sm:$0xff]  ;;  %v509_v17 = vld [vmem:[#allocation6 + $0x3e0] sm:$0xff]  ;;  %v508_v20 = vld [vmem:[#allocation6 + $0x3d8] sm:$0xff] }
  0x75   : > { %555 = vmatprep.subr.mxu0 %v404_v53  ;;  %828 = vmatprep.subr.mxu1 %v406_v54  ;;  %v480_v21 = vld [vmem:[#allocation6 + $0x2f8] sm:$0xff]  ;;  %v479_v24 = vld [vmem:[#allocation6 + $0x2f0] sm:$0xff]  ;;  %v6226_v28 = vld [vmem:[%s6177_s30 + $0x20] sm:$0xff] }
  0x76   : > { %556 = vmatpush1.msra.mxu0 %v403_v55  ;;  %829 = vmatpush1.msra.mxu1 %v405_v56  ;;  %v500_v22 = vld [vmem:[#allocation6 + $0x398] sm:$0xff]  ;;  %v499_v25 = vld [vmem:[#allocation6 + $0x390] sm:$0xff]  ;;  %v470_v29 = vld [vmem:[#allocation6 + $0x2a8] sm:$0xff] }
  0x77   : > { %557 = vmatprep.subr.mxu0 %v395_v57  ;;  %830 = vmatprep.subr.mxu1 %v397_v58  ;;  %v6219_v23 = vld [vmem:[%s6177_s30 + $0x18] sm:$0xff]  ;;  %v471_v26 = vld [vmem:[#allocation6 + $0x2b0] sm:$0xff]  ;;  %v490_v30 = vld [vmem:[#allocation6 + $0x348] sm:$0xff] }
  0x78   : > { %558 = vmatpush1.msra.mxu0 %v394_v59  ;;  %831 = vmatpush1.msra.mxu1 %v396_v60  ;;  %v491_v27 = vld [vmem:[#allocation6 + $0x350] sm:$0xff]  ;;  %v462_v31 = vld [vmem:[#allocation6 + $0x268] sm:$0xff]  ;;  %v461_v34 = vld [vmem:[#allocation6 + $0x260] sm:$0xff] }
  0x79   : > { %559 = vmatprep.subr.mxu0 %v386_v61  ;;  %832 = vmatprep.subr.mxu1 %v388_v62  ;;  %v482_v32 = vld [vmem:[#allocation6 + $0x308] sm:$0xff]  ;;  %v481_v35 = vld [vmem:[#allocation6 + $0x300] sm:$0xff]  ;;  %v6240_v38 = vld [vmem:[%s6177_s30 + $0x30] sm:$0xff] }
  0x7a   : > { %560 = vmatpush1.msra.mxu0 %v385_v63  ;;  %833 = vmatpush1.msra.mxu1 %v387_v1  ;;  %v6233_v33 = vld [vmem:[%s6177_s30 + $0x28] sm:$0xff]  ;;  %v453_v36 = vld [vmem:[#allocation6 + $0x220] sm:$0xff]  ;;  %v452_v39 = vld [vmem:[#allocation6 + $0x218] sm:$0xff] }
  0x7b   : > { %594 = vmatmul.mubr.f32.vlgmr.msra.gmra.mxu0 %v9578_v0  ;;  %867 = vmatmul.mubr.f32.vlgmr.msra.gmra.mxu1 %v9578_v0  ;;  %v473_v37 = vld [vmem:[#allocation6 + $0x2c0] sm:$0xff]  ;;  %v472_v40 = vld [vmem:[#allocation6 + $0x2b8] sm:$0xff]  ;;  %v443_v44 = vld [vmem:[#allocation6 + $0x1d0] sm:$0xff] }
  0x7c   : > { %1075 = vmatprep.subr.mxu0 %v525_v2  ;;  %599 = vmatprep.mubr.f32.mxu0 %v9578_v0  ;;  %v444_v41 = vld [vmem:[#allocation6 + $0x1d8] sm:$0xff]  ;;  %v463_v45 = vld [vmem:[#allocation6 + $0x270] sm:$0xff]  ;;  %v6254_v48 = vld [vmem:[%s6177_s30 + $0x40] sm:$0xff] }
  0x7d   : > { %1076 = vmatpush1.msra.mxu0 %v524_v3  ;;  %871 = vmatprep.mubr.f32.mxu1 %v9578_v0  ;;  %v464_v42 = vld [vmem:[#allocation6 + $0x278] sm:$0xff]  ;;  %v435_v46 = vld [vmem:[#allocation6 + $0x190] sm:$0xff]  ;;  %v434_v49 = vld [vmem:[#allocation6 + $0x188] sm:$0xff] }
  0x7e   : > { %1077 = vmatprep.subr.mxu0 %v516_v4  ;;  %1348 = vmatprep.subr.mxu1 %v527_v8  ;;  %v6247_v43 = vld [vmem:[%s6177_s30 + $0x38] sm:$0xff]  ;;  %v455_v47 = vld [vmem:[#allocation6 + $0x230] sm:$0xff]  ;;  %v454_v50 = vld [vmem:[#allocation6 + $0x228] sm:$0xff] }
  0x7f   : > { %600 = vmatmul.mubr.f32.gmra.mxu0 %v9578_v0  ;;  %872 = vmatmul.mubr.f32.gmra.mxu1 %v9578_v0  ;;  %v426_v51 = vld [vmem:[#allocation6 + $0x148] sm:$0xff]  ;;  %v425_v54 = vld [vmem:[#allocation6 + $0x140] sm:$0xff]  ;;  %v6268_v58 = vld [vmem:[%s6177_s30 + $0x50] sm:$0xff] }
  0x80   : > { %605 = vmatprep.mubr.f32.mxu0 %v9578_v0  ;;  %876 = vmatprep.mubr.f32.mxu1 %v9578_v0  ;;  %v446_v52 = vld [vmem:[#allocation6 + $0x1e8] sm:$0xff]  ;;  %v445_v55 = vld [vmem:[#allocation6 + $0x1e0] sm:$0xff]  ;;  %v416_v59 = vld [vmem:[#allocation6 + $0xf8] sm:$0xff] }
  0x81   : > { %1078 = vmatpush1.msra.mxu0 %v515_v5  ;;  %1349 = vmatpush1.msra.mxu1 %v526_v10  ;;  %v6261_v53 = vld [vmem:[%s6177_s30 + $0x48] sm:$0xff]  ;;  %v417_v56 = vld [vmem:[#allocation6 + $0x100] sm:$0xff]  ;;  %v436_v60 = vld [vmem:[#allocation6 + $0x198] sm:$0xff] }
  0x82   : > { %1079 = vmatprep.subr.mxu0 %v507_v6  ;;  %1350 = vmatprep.subr.mxu1 %v518_v12  ;;  %v437_v57 = vld [vmem:[#allocation6 + $0x1a0] sm:$0xff]  ;;  %v408_v61 = vld [vmem:[#allocation6 + $0xb8] sm:$0xff]  ;;  %v407_v1 = vld [vmem:[#allocation6 + $0xb0] sm:$0xff] }
  0x83   : > { %606 = vmatmul.mubr.f32.gmra.mxu0 %v6198_v7  ;;  %877 = vmatmul.mubr.f32.gmra.mxu1 %v6198_v7  ;;  %v428_v62 = vld [vmem:[#allocation6 + $0x158] sm:$0xff]  ;;  %v427_v2 = vld [vmem:[#allocation6 + $0x150] sm:$0xff]  ;;  %v6282_v5 = vld [vmem:[%s6177_s30 + $0x60] sm:$0xff] }
  0x84   : > { %611 = vmatprep.mubr.f32.mxu0 %v9578_v0  ;;  %882 = vmatprep.mubr.f32.mxu1 %v9578_v0  ;;  %v6275_v63 = vld [vmem:[%s6177_s30 + $0x58] sm:$0xff]  ;;  %v399_v3 = vld [vmem:[#allocation6 + $0x70] sm:$0xff]  ;;  %v398_v6 = vld [vmem:[#allocation6 + $0x68] sm:$0xff] }
  0x85   : > { %1080 = vmatpush1.msra.mxu0 %v506_v9  ;;  %1351 = vmatpush1.msra.mxu1 %v517_v15  ;;  %v419_v4 = vld [vmem:[#allocation6 + $0x110] sm:$0xff]  ;;  %v418_v8 = vld [vmem:[#allocation6 + $0x108] sm:$0xff]  ;;  %v389_v12 = vld [vmem:[#allocation6 + $0x20] sm:$0xff] }
  0x86   : > { %1081 = vmatprep.subr.mxu0 %v498_v11  ;;  %1352 = vmatprep.subr.mxu1 %v509_v17  ;;  %v390_v9 = vld [vmem:[#allocation6 + $0x28] sm:$0xff]  ;;  %v401_v15 = vld [vmem:[#allocation6 + $0x80] sm:$0xff]  ;;  %v6298_v17 = vld [vmem:[%s6177_s30 + $0x70] sm:$0xff] }
  0x87   : > { %612 = vmatmul.mubr.f32.gmra.mxu0 %v6205_v13  ;;  %883 = vmatmul.mubr.f32.gmra.mxu1 %v6205_v13  ;;  %v410_v10 = vld [vmem:[#allocation6 + $0xc8] sm:$0xff] }
  0x88   : > { %617 = vmatprep.mubr.f32.mxu0 %v9578_v0  ;;  %888 = vmatprep.mubr.f32.mxu1 %v9578_v0  ;;  %v6289_v11 = vld [vmem:[%s6177_s30 + $0x68] sm:$0xff] }
  0x89   : > { %1082 = vmatpush1.msra.mxu0 %v497_v14  ;;  %1353 = vmatpush1.msra.mxu1 %v508_v20  ;;  %v409_v14 = vld [vmem:[#allocation6 + $0xc0] sm:$0xff]  ;;  %v392_v20 = vld [vmem:[#allocation6 + $0x38] sm:$0xff] }
  0x8a   : > { %1083 = vmatprep.subr.mxu0 %v489_v16  ;;  %1354 = vmatprep.subr.mxu1 %v500_v22  ;;  %v6293_v16 = vld [vmem:[#allocation6 + $0x478] sm:$0xff]  ;;  %v391_v22 = vld [vmem:[#allocation6 + $0x30] sm:$0xff] }
  0x8b   : > { %618 = vmatmul.mubr.f32.gmra.mxu0 %v6212_v18  ;;  %889 = vmatmul.mubr.f32.gmra.mxu1 %v6212_v18 }
  0x8c   : > { %623 = vmatprep.mubr.f32.mxu0 %v9578_v0  ;;  %894 = vmatprep.mubr.f32.mxu1 %v9578_v0 }
  0x8d   : > { %1084 = vmatpush1.msra.mxu0 %v488_v19  ;;  %1355 = vmatpush1.msra.mxu1 %v499_v25  ;;  %v400_v19 = vld [vmem:[#allocation6 + $0x78] sm:$0xff]  ;;  %v6320_v25 = vld [vmem:[%s6177_s30 + $0x88] sm:$0xff] }
  0x8e   : > { %1085 = vmatprep.subr.mxu0 %v480_v21  ;;  %1356 = vmatprep.subr.mxu1 %v491_v27  ;;  %v6306_v21 = vld [vmem:[%s6177_s30 + $0x78] sm:$0xff] }
  0x8f   : > { %624 = vmatmul.mubr.f32.gmra.mxu0 %v6219_v23  ;;  %895 = vmatmul.mubr.f32.gmra.mxu1 %v6219_v23  ;;  %v6334_v27 = vld [vmem:[%s6177_s30 + $0x98] sm:$0xff] }
  0x90   : > { %629 = vmatprep.mubr.f32.mxu0 %v9578_v0  ;;  %900 = vmatprep.mubr.f32.mxu1 %v9578_v0 }
  0x91   : > { %1086 = vmatpush1.msra.mxu0 %v479_v24  ;;  %1357 = vmatpush1.msra.mxu1 %v490_v30  ;;  %v6313_v24 = vld [vmem:[%s6177_s30 + $0x80] sm:$0xff]  ;;  %v6348_v30 = vld [vmem:[%s6177_s30 + $0xa8] sm:$0xff] }
  0x92   : > { %1087 = vmatprep.subr.mxu0 %v471_v26  ;;  %1358 = vmatprep.subr.mxu1 %v482_v32  ;;  %v6327_v26 = vld [vmem:[%s6177_s30 + $0x90] sm:$0xff]  ;;  %v6362_v32 = vld [vmem:[%s6177_s30 + $0xb8] sm:$0xff] }
  0x93   : > { %630 = vmatmul.mubr.f32.gmra.mxu0 %v6226_v28  ;;  %901 = vmatmul.mubr.f32.gmra.mxu1 %v6226_v28 }
  0x94   : > { %635 = vmatprep.mubr.f32.mxu0 %v9578_v0  ;;  %906 = vmatprep.mubr.f32.mxu1 %v9578_v0 }
  0x95   : > { %1088 = vmatpush1.msra.mxu0 %v470_v29  ;;  %1359 = vmatpush1.msra.mxu1 %v481_v35  ;;  %v6341_v29 = vld [vmem:[%s6177_s30 + $0xa0] sm:$0xff]  ;;  %v6376_v35 = vld [vmem:[%s6177_s30 + $0xc8] sm:$0xff] }
  0x96   : > { %1089 = vmatprep.subr.mxu0 %v462_v31  ;;  %1360 = vmatprep.subr.mxu1 %v473_v37  ;;  %v6355_v31 = vld [vmem:[%s6177_s30 + $0xb0] sm:$0xff]  ;;  %v6390_v37 = vld [vmem:[%s6177_s30 + $0xd8] sm:$0xff] }
  0x97   : > { %636 = vmatmul.mubr.f32.gmra.mxu0 %v6233_v33  ;;  %907 = vmatmul.mubr.f32.gmra.mxu1 %v6233_v33 }
  0x98   : > { %641 = vmatprep.mubr.f32.mxu0 %v9578_v0  ;;  %912 = vmatprep.mubr.f32.mxu1 %v9578_v0 }
  0x99   : > { %1090 = vmatpush1.msra.mxu0 %v461_v34  ;;  %1361 = vmatpush1.msra.mxu1 %v472_v40  ;;  %v6369_v34 = vld [vmem:[%s6177_s30 + $0xc0] sm:$0xff]  ;;  %v6404_v40 = vld [vmem:[%s6177_s30 + $0xe8] sm:$0xff] }
  0x9a   : > { %1091 = vmatprep.subr.mxu0 %v453_v36  ;;  %1362 = vmatprep.subr.mxu1 %v464_v42  ;;  %v6383_v36 = vld [vmem:[%s6177_s30 + $0xd0] sm:$0xff]  ;;  %v6418_v42 = vld [vmem:[%s6177_s30 + $0xf8] sm:$0xff] }
  0x9b   : > { %642 = vmatmul.mubr.f32.gmra.mxu0 %v6240_v38  ;;  %913 = vmatmul.mubr.f32.gmra.mxu1 %v6240_v38 }
  0x9c   : > { %647 = vmatprep.mubr.f32.mxu0 %v9578_v0  ;;  %918 = vmatprep.mubr.f32.mxu1 %v9578_v0 }
  0x9d   : > { %1092 = vmatpush1.msra.mxu0 %v452_v39  ;;  %1363 = vmatpush1.msra.mxu1 %v463_v45  ;;  %v6397_v39 = vld [vmem:[%s6177_s30 + $0xe0] sm:$0xff]  ;;  %v510_v45 = vld [vmem:[#allocation6 + $0x3e8] sm:$0xff] }
  0x9e   : > { %1093 = vmatprep.subr.mxu0 %v444_v41  ;;  %1364 = vmatprep.subr.mxu1 %v455_v47  ;;  %v6411_v41 = vld [vmem:[%s6177_s30 + $0xf0] sm:$0xff]  ;;  %v492_v47 = vld [vmem:[#allocation6 + $0x358] sm:$0xff] }
  0x9f   : > { %648 = vmatmul.mubr.f32.gmra.mxu0 %v6247_v43  ;;  %919 = vmatmul.mubr.f32.gmra.mxu1 %v6247_v43 }
  0xa0   : > { %653 = vmatprep.mubr.f32.mxu0 %v9578_v0  ;;  %924 = vmatprep.mubr.f32.mxu1 %v9578_v0 }
  0xa1   : > { %1094 = vmatpush1.msra.mxu0 %v443_v44  ;;  %1365 = vmatpush1.msra.mxu1 %v454_v50  ;;  %v519_v44 = vld [vmem:[#allocation6 + $0x430] sm:$0xff]  ;;  %v420_v50 = vld [vmem:[#allocation6 + $0x118] sm:$0xff] }
  0xa2   : > { %1095 = vmatprep.subr.mxu0 %v435_v46  ;;  %1366 = vmatprep.subr.mxu1 %v446_v52  ;;  %v501_v46 = vld [vmem:[#allocation6 + $0x3a0] sm:$0xff] }
  0xa3   : > { %654 = vmatmul.mubr.f32.gmra.mxu0 %v6254_v48  ;;  %925 = vmatmul.mubr.f32.gmra.mxu1 %v6254_v48 }
  0xa4   : > { %659 = vmatprep.mubr.f32.mxu0 %v9578_v0  ;;  %930 = vmatprep.mubr.f32.mxu1 %v9578_v0 }
  0xa5   : > { %1096 = vmatpush1.msra.mxu0 %v434_v49  ;;  %1367 = vmatpush1.msra.mxu1 %v445_v55  ;;  %v483_v49 = vld [vmem:[#allocation6 + $0x310] sm:$0xff] }
  0xa6   : > { %1097 = vmatprep.subr.mxu0 %v426_v51  ;;  %1368 = vmatprep.subr.mxu1 %v437_v57  ;;  %v402_v57 = vld [vmem:[#allocation6 + $0x88] sm:$0xff] }
  0xa7   : > { %660 = vmatmul.mubr.f32.gmra.mxu0 %v6261_v53  ;;  %931 = vmatmul.mubr.f32.gmra.mxu1 %v6261_v53 }
  0xa8   : > { %665 = vmatprep.mubr.f32.mxu0 %v9578_v0  ;;  %936 = vmatprep.mubr.f32.mxu1 %v9578_v0 }
  0xa9   : > { %1098 = vmatpush1.msra.mxu0 %v425_v54  ;;  %1369 = vmatpush1.msra.mxu1 %v436_v60 }
  0xaa   : > { %1099 = vmatprep.subr.mxu0 %v417_v56  ;;  %1370 = vmatprep.subr.mxu1 %v428_v62 }
  0xab   : > { %666 = vmatmul.mubr.f32.gmra.mxu0 %v6268_v58  ;;  %937 = vmatmul.mubr.f32.gmra.mxu1 %v6268_v58 }
  0xac   : > { %671 = vmatprep.mubr.f32.mxu0 %v9578_v0  ;;  %942 = vmatprep.mubr.f32.mxu1 %v9578_v0 }
  0xad   : > { %1100 = vmatpush1.msra.mxu0 %v416_v59  ;;  %1371 = vmatpush1.msra.mxu1 %v427_v2 }
  0xae   : > { %1101 = vmatprep.subr.mxu0 %v408_v61  ;;  %1372 = vmatprep.subr.mxu1 %v419_v4 }
  0xaf   : > { %672 = vmatmul.mubr.f32.gmra.mxu0 %v6275_v63  ;;  %943 = vmatmul.mubr.f32.gmra.mxu1 %v6275_v63 }
  0xb0   : > { %677 = vmatprep.mubr.f32.mxu0 %v9578_v0  ;;  %948 = vmatprep.mubr.f32.mxu1 %v9578_v0 }
  0xb1   : > { %1102 = vmatpush1.msra.mxu0 %v407_v1  ;;  %1373 = vmatpush1.msra.mxu1 %v418_v8  ;;  %v393_v8 = vld [vmem:[#allocation6 + $0x40] sm:$0xff] }
  0xb2   : > { %1103 = vmatprep.subr.mxu0 %v399_v3  ;;  %1374 = vmatprep.subr.mxu1 %v410_v10 }
  0xb3   : > { %678 = vmatmul.mubr.f32.gmra.mxu0 %v6282_v5  ;;  %949 = vmatmul.mubr.f32.gmra.mxu1 %v6282_v5 }
  0xb4   : > { %683 = vmatprep.mubr.f32.mxu0 %v9578_v0  ;;  %954 = vmatprep.mubr.f32.mxu1 %v9578_v0 }
  0xb5   : > { %1104 = vmatpush1.msra.mxu0 %v398_v6  ;;  %1375 = vmatpush1.msra.mxu1 %v409_v14 }
  0xb6   : > { %1105 = vmatprep.subr.mxu0 %v390_v9  ;;  %1376 = vmatprep.subr.mxu1 %v401_v15 }
  0xb7   : > { %684 = vmatmul.mubr.f32.gmra.mxu0 %v6289_v11  ;;  %955 = vmatmul.mubr.f32.gmra.mxu1 %v6289_v11 }
  0xb8   : > { %689 = vmatprep.mubr.f32.mxu0 %v9578_v0  ;;  %960 = vmatprep.mubr.f32.mxu1 %v9578_v0 }
  0xb9   : > { %1106 = vmatpush1.msra.mxu0 %v389_v12  ;;  %1377 = vmatpush1.msra.mxu1 %v400_v19 }
  0xba   : > { %5543 = vmatprep.subr.mxu0 %v6293_v16  ;;  %1378 = vmatprep.subr.mxu1 %v392_v20 }
  0xbb   : > { %690 = vmatmul.mubr.f32.gmra.mxu0 %v6298_v17  ;;  %961 = vmatmul.mubr.f32.gmra.mxu1 %v6298_v17 }
  0xbc   : > { %695 = vmatprep.mubr.f32.mxu0 %v9578_v0  ;;  %966 = vmatprep.mubr.f32.mxu1 %v9578_v0 }
  0xbd   : > { %1379 = vmatpush1.msra.mxu1 %v391_v22 }
  0xbf   : > { %696 = vmatmul.mubr.f32.gmra.mxu0 %v6306_v21  ;;  %967 = vmatmul.mubr.f32.gmra.mxu1 %v6306_v21 }
  0xc0   : > { %701 = vmatprep.mubr.f32.mxu0 %v9578_v0  ;;  %972 = vmatprep.mubr.f32.mxu1 %v9578_v0 }
  0xc3   : > { %702 = vmatmul.mubr.f32.gmra.mxu0 %v6313_v24  ;;  %973 = vmatmul.mubr.f32.gmra.mxu1 %v6313_v24 }
  0xc4   : > { %707 = vmatprep.mubr.f32.mxu0 %v9578_v0  ;;  %978 = vmatprep.mubr.f32.mxu1 %v9578_v0 }
  0xc7   : > { %708 = vmatmul.mubr.f32.gmra.mxu0 %v6320_v25  ;;  %979 = vmatmul.mubr.f32.gmra.mxu1 %v6320_v25 }
  0xc8   : > { %713 = vmatprep.mubr.f32.mxu0 %v9578_v0  ;;  %984 = vmatprep.mubr.f32.mxu1 %v9578_v0 }
  0xcb   : > { %714 = vmatmul.mubr.f32.gmra.mxu0 %v6327_v26  ;;  %985 = vmatmul.mubr.f32.gmra.mxu1 %v6327_v26 }
  0xcc   : > { %719 = vmatprep.mubr.f32.mxu0 %v9578_v0  ;;  %990 = vmatprep.mubr.f32.mxu1 %v9578_v0 }
  0xcf   : > { %720 = vmatmul.mubr.f32.gmra.mxu0 %v6334_v27  ;;  %991 = vmatmul.mubr.f32.gmra.mxu1 %v6334_v27 }
  0xd0   : > { %725 = vmatprep.mubr.f32.mxu0 %v9578_v0  ;;  %996 = vmatprep.mubr.f32.mxu1 %v9578_v0 }
  0xd3   : > { %726 = vmatmul.mubr.f32.gmra.mxu0 %v6341_v29  ;;  %997 = vmatmul.mubr.f32.gmra.mxu1 %v6341_v29 }
  0xd4   : > { %731 = vmatprep.mubr.f32.mxu0 %v9578_v0  ;;  %1002 = vmatprep.mubr.f32.mxu1 %v9578_v0 }
  0xd7   : > { %732 = vmatmul.mubr.f32.gmra.mxu0 %v6348_v30  ;;  %1003 = vmatmul.mubr.f32.gmra.mxu1 %v6348_v30 }
  0xd8   : > { %737 = vmatprep.mubr.f32.mxu0 %v9578_v0  ;;  %1008 = vmatprep.mubr.f32.mxu1 %v9578_v0 }
  0xdb   : > { %738 = vmatmul.mubr.f32.gmra.mxu0 %v6355_v31  ;;  %1009 = vmatmul.mubr.f32.gmra.mxu1 %v6355_v31 }
  0xdc   : > { %743 = vmatprep.mubr.f32.mxu0 %v9578_v0  ;;  %1014 = vmatprep.mubr.f32.mxu1 %v9578_v0 }
  0xdf   : > { %744 = vmatmul.mubr.f32.gmra.mxu0 %v6362_v32  ;;  %1015 = vmatmul.mubr.f32.gmra.mxu1 %v6362_v32 }
  0xe0   : > { %749 = vmatprep.mubr.f32.mxu0 %v9578_v0  ;;  %1020 = vmatprep.mubr.f32.mxu1 %v9578_v0 }
  0xe3   : > { %750 = vmatmul.mubr.f32.gmra.mxu0 %v6369_v34  ;;  %1021 = vmatmul.mubr.f32.gmra.mxu1 %v6369_v34 }
  0xe4   : > { %755 = vmatprep.mubr.f32.mxu0 %v9578_v0  ;;  %1026 = vmatprep.mubr.f32.mxu1 %v9578_v0 }
  0xe7   : > { %756 = vmatmul.mubr.f32.gmra.mxu0 %v6376_v35  ;;  %1027 = vmatmul.mubr.f32.gmra.mxu1 %v6376_v35 }
  0xe8   : > { %761 = vmatprep.mubr.f32.mxu0 %v9578_v0  ;;  %1032 = vmatprep.mubr.f32.mxu1 %v9578_v0 }
  0xeb   : > { %762 = vmatmul.mubr.f32.gmra.mxu0 %v6383_v36  ;;  %1033 = vmatmul.mubr.f32.gmra.mxu1 %v6383_v36 }
  0xec   : > { %767 = vmatprep.mubr.f32.mxu0 %v9578_v0  ;;  %1038 = vmatprep.mubr.f32.mxu1 %v9578_v0 }
  0xef   : > { %768 = vmatmul.mubr.f32.gmra.mxu0 %v6390_v37  ;;  %1039 = vmatmul.mubr.f32.gmra.mxu1 %v6390_v37 }
  0xf0   : > { %773 = vmatprep.mubr.f32.mxu0 %v9578_v0  ;;  %1044 = vmatprep.mubr.f32.mxu1 %v9578_v0 }
  0xf3   : > { %774 = vmatmul.mubr.f32.gmra.mxu0 %v6397_v39  ;;  %1045 = vmatmul.mubr.f32.gmra.mxu1 %v6397_v39 }
  0xf4   : > { %779 = vmatprep.mubr.f32.mxu0 %v9578_v0  ;;  %1050 = vmatprep.mubr.f32.mxu1 %v9578_v0 }
  0xf7   : > { %780 = vmatmul.mubr.f32.gmra.mxu0 %v6404_v40  ;;  %1051 = vmatmul.mubr.f32.gmra.mxu1 %v6404_v40 }
  0xf8   : > { %785 = vmatprep.mubr.f32.mxu0 %v9578_v0  ;;  %1056 = vmatprep.mubr.f32.mxu1 %v9578_v0 }
  0xfb   : > { %786 = vmatmul.mubr.f32.gmra.mxu0 %v6411_v41  ;;  %1057 = vmatmul.mubr.f32.gmra.mxu1 %v6411_v41 }
  0xfc   : > { %789 = vmatprep.mubr.f32.mxu0 %v9578_v0  ;;  %1061 = vmatprep.mubr.f32.mxu1 %v9578_v0 }
  0xff   : > { %790 = vmatmul.mubr.f32.gmra.mxu0 %v6418_v42  ;;  %1062 = vmatmul.mubr.f32.gmra.mxu1 %v6418_v42 }
 0x100   : > { %793 = vmatprep.mubr.f32.mxu0 %v9578_v0  ;;  %1066 = vmatprep.mubr.f32.mxu1 %v9578_v0 }
 0x103   : > { %794 = vmatmul.mubr.f32.gmra.mxu0 %v9578_v0  ;;  %1067 = vmatmul.mubr.f32.gmra.mxu1 %v9578_v0 }
 0x104   : > { %797 = vmatprep.mubr.f32.mxu0 %v9578_v0  ;;  %1070 = vmatprep.mubr.f32.mxu1 %v9578_v0 }
 0x107   : > { %798 = vmatmul.mubr.f32.gmra.mxu0 %v9578_v0  ;;  %1071 = vmatmul.mubr.f32.gmra.mxu1 %v9578_v0 }
 0x108   : > { %1139 = vmatprep.mubr.f32.mxu0 %v9578_v0  ;;  %1412 = vmatprep.mubr.f32.mxu1 %v9578_v0 }
 0x10b   : > { %1140 = vmatmul.mubr.f32.vlgmr.msra.gmra.mxu0 %v9578_v0  ;;  %1413 = vmatmul.mubr.f32.vlgmr.msra.gmra.mxu1 %v9578_v0 }
 0x10c   : > { %5544 = vmatpush3.msra.mxu0 %v6293_v16  ;;  %1143 = vmatprep.mubr.f32.mxu0 %v9578_v0 }
 0x10d   : > { %1416 = vmatprep.mubr.f32.mxu1 %v9578_v0  ;;  %5545 = vmatprep.subr.mxu0 %v519_v44 }
 0x10e   : > { %5546 = vmatpush3.msra.mxu0 %v519_v44 }
 0x10f   : > { %1144 = vmatmul.mubr.f32.gmra.mxu0 %v9578_v0  ;;  %1417 = vmatmul.mubr.f32.gmra.mxu1 %v9578_v0 }
 0x110   : > { %1147 = vmatprep.mubr.f32.mxu0 %v9578_v0  ;;  %1420 = vmatprep.mubr.f32.mxu1 %v9578_v0 }
 0x111   : > { %5547 = vmatprep.subr.mxu0 %v510_v45 }
 0x112   : > { %5548 = vmatpush3.msra.mxu0 %v510_v45 }
 0x113   : > { %1148 = vmatmul.mubr.f32.gmra.mxu0 %v6198_v7  ;;  %1421 = vmatmul.mubr.f32.gmra.mxu1 %v6198_v7  ;;  %v474_v7 = vld [vmem:[#allocation6 + $0x2c8] sm:$0xff] }
 0x114   : > { %1153 = vmatprep.mubr.f32.mxu0 %v9578_v0  ;;  %1424 = vmatprep.mubr.f32.mxu1 %v9578_v0 }
 0x115   : > { %5549 = vmatprep.subr.mxu0 %v501_v46 }
 0x116   : > { %5550 = vmatpush3.msra.mxu0 %v501_v46 }
 0x117   : > { %1154 = vmatmul.mubr.f32.gmra.mxu0 %v6205_v13  ;;  %1425 = vmatmul.mubr.f32.gmra.mxu1 %v6205_v13  ;;  %v465_v13 = vld [vmem:[#allocation6 + $0x280] sm:$0xff] }
 0x118   : > { %1159 = vmatprep.mubr.f32.mxu0 %v9578_v0  ;;  %1428 = vmatprep.mubr.f32.mxu1 %v9578_v0 }
 0x119   : > { %5551 = vmatprep.subr.mxu0 %v492_v47 }
 0x11a   : > { %5552 = vmatpush3.msra.mxu0 %v492_v47 }
 0x11b   : > { %1160 = vmatmul.mubr.f32.gmra.mxu0 %v6212_v18  ;;  %1429 = vmatmul.mubr.f32.gmra.mxu1 %v6212_v18  ;;  %v456_v18 = vld [vmem:[#allocation6 + $0x238] sm:$0xff] }
 0x11c   : > { %1165 = vmatprep.mubr.f32.mxu0 %v9578_v0  ;;  %1434 = vmatprep.mubr.f32.mxu1 %v9578_v0 }
 0x11d   : > { %5553 = vmatprep.subr.mxu0 %v483_v49 }
 0x11e   : > { %5554 = vmatpush3.msra.mxu0 %v483_v49 }
 0x11f   : > { %1166 = vmatmul.mubr.f32.gmra.mxu0 %v6219_v23  ;;  %1435 = vmatmul.mubr.f32.gmra.mxu1 %v6219_v23  ;;  %v447_v23 = vld [vmem:[#allocation6 + $0x1f0] sm:$0xff] }
 0x120   : > { %1171 = vmatprep.mubr.f32.mxu0 %v9578_v0  ;;  %1440 = vmatprep.mubr.f32.mxu1 %v9578_v0 }
 0x121   : > { %5555 = vmatprep.subr.mxu0 %v474_v7 }
 0x122   : > { %5556 = vmatpush3.msra.mxu0 %v474_v7 }
 0x123   : > { %1172 = vmatmul.mubr.f32.gmra.mxu0 %v6226_v28  ;;  %1441 = vmatmul.mubr.f32.gmra.mxu1 %v6226_v28  ;;  %v438_v28 = vld [vmem:[#allocation6 + $0x1a8] sm:$0xff] }
 0x124   : > { %1177 = vmatprep.mubr.f32.mxu0 %v9578_v0  ;;  %1446 = vmatprep.mubr.f32.mxu1 %v9578_v0 }
 0x125   : > { %5557 = vmatprep.subr.mxu0 %v465_v13 }
 0x126   : > { %5558 = vmatpush3.msra.mxu0 %v465_v13 }
 0x127   : > { %1178 = vmatmul.mubr.f32.gmra.mxu0 %v6233_v33  ;;  %1447 = vmatmul.mubr.f32.gmra.mxu1 %v6233_v33  ;;  %v429_v33 = vld [vmem:[#allocation6 + $0x160] sm:$0xff] }
 0x128   : > { %1183 = vmatprep.mubr.f32.mxu0 %v9578_v0  ;;  %1452 = vmatprep.mubr.f32.mxu1 %v9578_v0 }
 0x129   : > { %5559 = vmatprep.subr.mxu0 %v456_v18 }
 0x12a   : > { %5560 = vmatpush3.msra.mxu0 %v456_v18 }
 0x12b   : > { %1184 = vmatmul.mubr.f32.gmra.mxu0 %v6240_v38  ;;  %1453 = vmatmul.mubr.f32.gmra.mxu1 %v6240_v38  ;;  %v277_v38 = vlaneseq }
 0x12c   : > { %1189 = vmatprep.mubr.f32.mxu0 %v9578_v0  ;;  %1458 = vmatprep.mubr.f32.mxu1 %v9578_v0 }
 0x12d   : > { %5561 = vmatprep.subr.mxu0 %v447_v23 }
 0x12e   : > { %5562 = vmatpush3.msra.mxu0 %v447_v23 }
 0x12f   : > { %1190 = vmatmul.mubr.f32.gmra.mxu0 %v6247_v43  ;;  %1459 = vmatmul.mubr.f32.gmra.mxu1 %v6247_v43  ;;  %v6481_v43 = vshrl.u32 %v277_v38, 7 }
 0x130   : > { %1195 = vmatprep.mubr.f32.mxu0 %v9578_v0  ;;  %1464 = vmatprep.mubr.f32.mxu1 %v9578_v0 }
 0x131   : > { %5563 = vmatprep.subr.mxu0 %v438_v28  ;;  %vm280_vm0 = vcmp.ge.s32.totalorder %v6481_v43, 1  ;;  %vm1894_vm1 = vcmp.lt.s32.totalorder %v6481_v43, 1  ;;  %vm2023_vm2 = vcmp.lt.s32.totalorder %v6481_v43, 7 }
 0x132   : > { %5564 = vmatpush3.msra.mxu0 %v438_v28 }
 0x133   : > { %1196 = vmatmul.mubr.f32.gmra.mxu0 %v6254_v48  ;;  %1465 = vmatmul.mubr.f32.gmra.mxu1 %v6254_v48  ;;  %v411_v48 = vld [vmem:[#allocation6 + $0xd0] sm:$0xff] }
 0x134   : > { %1201 = vmatprep.mubr.f32.mxu0 %v9578_v0  ;;  %1470 = vmatprep.mubr.f32.mxu1 %v9578_v0 }
 0x135   : > { %5565 = vmatprep.subr.mxu0 %v429_v33 }
 0x136   : > { %5566 = vmatpush3.msra.mxu0 %v429_v33 }
 0x137   : > { %1202 = vmatmul.mubr.f32.gmra.mxu0 %v6261_v53  ;;  %1471 = vmatmul.mubr.f32.gmra.mxu1 %v6261_v53  ;;  %v6488_v53 = vadd.s32 8, %v6481_v43 }
 0x138   : > { %1207 = vmatprep.mubr.f32.mxu0 %v9578_v0  ;;  %1476 = vmatprep.mubr.f32.mxu1 %v9578_v0 }
 0x139   : > { %5567 = vmatprep.subr.mxu0 %v420_v50  ;;  %vm283_vm3 = vcmp.lt.s32.totalorder %v6488_v53, 15 }
 0x13a   : > { %5568 = vmatpush3.msra.mxu0 %v420_v50 }
 0x13b   : > { %v595_v51 = vpop.f32.mrf.mxu0  ;;  %v868_v52 = vpop.f32.mrf.mxu1  ;;  %1208 = vmatmul.mubr.f32.gmra.mxu0 %v6268_v58  ;;  %1477 = vmatmul.mubr.f32.gmra.mxu1 %v6268_v58 }
 0x13c   : > { %1213 = vmatprep.mubr.f32.mxu0 %v9578_v0  ;;  %1482 = vmatprep.mubr.f32.mxu1 %v9578_v0  ;;  %v1991_v56 = vrot.slane %v868_v52, 1  ;;  %v1862_v58 = vrot.slane %v595_v51, 7 }
 0x13d   : > { %v597_v54 = vpop.f32.mrf.mxu0  ;;  %v870_v55 = vpop.f32.mrf.mxu1  ;;  %5569 = vmatprep.subr.mxu0 %v411_v48 }
 0x13e   : > { %5570 = vmatpush3.msra.mxu0 %v411_v48 }
 0x13f   : > { %v601_v59 = vpop.f32.mrf.mxu0  ;;  %v873_v60 = vpop.f32.mrf.mxu1  ;;  %1214 = vmatmul.mubr.f32.gmra.mxu0 %v6275_v63  ;;  %1483 = vmatmul.mubr.f32.gmra.mxu1 %v6275_v63 }
 0x140   : > { %v1878_v61 = vrot.slane %v601_v59, 7  ;;  %v2007_v62 = vrot.slane %v873_v60, 1  ;;  %1219 = vmatprep.mubr.f32.mxu0 %v9578_v0  ;;  %1488 = vmatprep.mubr.f32.mxu1 %v9578_v0 }
 0x141   : > { %v603_v1 = vpop.f32.mrf.mxu0  ;;  %v875_v2 = vpop.f32.mrf.mxu1  ;;  %5571 = vmatprep.subr.mxu0 %v402_v57 }
 0x142   : > { %v1911_v3 = vsel %vm1894_vm1, %v1878_v61, %v1862_v58  ;;  %v2024_v4 = vsel %vm2023_vm2, %v1991_v56, %v2007_v62  ;;  %v2040_v63 = vsel %vm2023_vm2, %v2007_v62, %v1991_v56  ;;  %v1895_v6 = vsel %vm1894_vm1, %v1862_v58, %v1878_v61  ;;  %5572 = vmatpush3.msra.mxu0 %v402_v57 }
 0x143   : > { %v1927_v9 = vsel %vm280_vm0, %v1911_v3, 0.0  ;;  %v1960_v10 = vadd.f32 %v1895_v6, %v603_v1  ;;  %v2057_v12 = vsel %vm283_vm3, %v2040_v63, 0.0  ;;  %v607_v14 = vpop.f32.mrf.mxu0  ;;  %v878_v15 = vpop.f32.mrf.mxu1  ;;  %1220 = vmatmul.mubr.f32.gmra.mxu0 %v6282_v5  ;;  %1489 = vmatmul.mubr.f32.gmra.mxu1 %v6282_v5 }
 0x144   : > { %1225 = vmatprep.mubr.f32.mxu0 %v9578_v0  ;;  %1494 = vmatprep.mubr.f32.mxu1 %v9578_v0  ;;  %v1959_v16 = vadd.f32 %v1927_v9, %v597_v54  ;;  %v1992_v44 = vrot.slane %v878_v15, 1  ;;  %v1863_v49 = vrot.slane %v607_v14, 7 }
 0x145   : > { %v2089_v19 = vadd.f32 %v2057_v12, %v1960_v10  ;;  %v609_v20 = vpop.f32.mrf.mxu0  ;;  %v880_v22 = vpop.f32.mrf.mxu1  ;;  %5573 = vmatprep.subr.mxu0 %v393_v8 }
 0x146   : > { %5574 = vmatpush3.msra.mxu0 %v393_v8  ;;  %v2088_v45 = vadd.f32 %v2024_v4, %v1959_v16  ;;  %v2120_v13 = vrot.slane %v880_v22, 7 }
 0x147   : > { %v613_v46 = vpop.f32.mrf.mxu0  ;;  %v884_v47 = vpop.f32.mrf.mxu1  ;;  %1226 = vmatmul.mubr.f32.gmra.mxu0 %v6289_v11  ;;  %1495 = vmatmul.mubr.f32.gmra.mxu1 %v6289_v11 }
 0x148   : > { %v1879_v5 = vrot.slane %v613_v46, 7  ;;  %v2008_v7 = vrot.slane %v884_v47, 1  ;;  %1231 = vmatprep.mubr.f32.mxu0 %v9578_v0  ;;  %1500 = vmatprep.mubr.f32.mxu1 %v9578_v0 }
 0x149   : > { %v615_v18 = vpop.f32.mrf.mxu0  ;;  %v886_v23 = vpop.f32.mrf.mxu1 }
 0x14a   : > { %v1912_v28 = vsel %vm1894_vm1, %v1879_v5, %v1863_v49  ;;  %v2025_v33 = vsel %vm2023_vm2, %v1992_v44, %v2008_v7  ;;  %v2041_v38 = vsel %vm2023_vm2, %v2008_v7, %v1992_v44  ;;  %v1896_v11 = vsel %vm1894_vm1, %v1863_v49, %v1879_v5 }
 0x14b   : > { %v1929_v50 = vsel %vm280_vm0, %v1912_v28, 0.0  ;;  %v1962_v48 = vadd.f32 %v1896_v11, %v615_v18  ;;  %v2059_v51 = vsel %vm283_vm3, %v2041_v38, 0.0  ;;  %v2136_v52 = vrot.slane %v886_v23, 7  ;;  %v619_v54 = vpop.f32.mrf.mxu0  ;;  %v890_v55 = vpop.f32.mrf.mxu1  ;;  %1232 = vmatmul.mubr.f32.gmra.mxu0 %v6298_v17  ;;  %1501 = vmatmul.mubr.f32.gmra.mxu1 %v6298_v17 }
 0x14c   : > { %1237 = vmatprep.mubr.f32.mxu0 %v9578_v0  ;;  %1506 = vmatprep.mubr.f32.mxu1 %v9578_v0  ;;  %v1961_v56 = vadd.f32 %v1929_v50, %v609_v20  ;;  %v1993_v62 = vrot.slane %v890_v55, 1  ;;  %v1864_v6 = vrot.slane %v619_v54, 7  ;;  %v3035_v55 = vld [vmem:[#allocation8 + $0x440] sm:$0xff] }
 0x14d   : > { %v2091_v57 = vadd.f32 %v2059_v51, %v1962_v48  ;;  %v621_v59 = vpop.f32.mrf.mxu0  ;;  %v892_v60 = vpop.f32.mrf.mxu1  ;;  %v2168_v58 = vsel %vm1894_vm1, %v2136_v52, %v2120_v13  ;;  %v2152_v61 = vsel %vm1894_vm1, %v2120_v13, %v2136_v52  ;;  %3043 = vmatprep.subr.mxu1 %v3035_v55 }
 0x14e   : > { %v2184_v1 = vsel %vm280_vm0, %v2168_v58, 0.0  ;;  %v6540_v2 = vadd.f32 %v2152_v61, %v2089_v19  ;;  %v2090_v17 = vadd.f32 %v2025_v33, %v1961_v56  ;;  %v2121_v10 = vrot.slane %v892_v60, 7 }
 0x14f   : > { %v625_v3 = vpop.f32.mrf.mxu0  ;;  %v896_v4 = vpop.f32.mrf.mxu1  ;;  %1238 = vmatmul.mubr.f32.gmra.mxu0 %v6306_v21  ;;  %1507 = vmatmul.mubr.f32.gmra.mxu1 %v6306_v21  ;;  %v6544_v63 = vadd.f32 %v2184_v1, %v2088_v45 }
 0x150   : > { %v1880_v8 = vrot.slane %v625_v3, 7  ;;  %v2009_v9 = vrot.slane %v896_v4, 1  ;;  %1243 = vmatprep.mubr.f32.mxu0 %v9578_v0  ;;  %1512 = vmatprep.mubr.f32.mxu1 %v9578_v0 }
 0x151   : > { %v627_v12 = vpop.f32.mrf.mxu0  ;;  %v898_v14 = vpop.f32.mrf.mxu1 }
 0x152   : > { %v1913_v15 = vsel %vm1894_vm1, %v1880_v8, %v1864_v6  ;;  %v2026_v16 = vsel %vm2023_vm2, %v1993_v62, %v2009_v9  ;;  %v2042_v21 = vsel %vm2023_vm2, %v2009_v9, %v1993_v62  ;;  %v1897_v19 = vsel %vm1894_vm1, %v1864_v6, %v1880_v8 }
 0x153   : > { %v1931_v20 = vsel %vm280_vm0, %v1913_v15, 0.0  ;;  %v1964_v22 = vadd.f32 %v1897_v19, %v627_v12  ;;  %v2061_v44 = vsel %vm283_vm3, %v2042_v21, 0.0  ;;  %v2137_v45 = vrot.slane %v898_v14, 7  ;;  %v631_v46 = vpop.f32.mrf.mxu0  ;;  %v902_v47 = vpop.f32.mrf.mxu1  ;;  %1244 = vmatmul.mubr.f32.gmra.mxu0 %v6313_v24  ;;  %1513 = vmatmul.mubr.f32.gmra.mxu1 %v6313_v24  ;;  %v3034_v14 = vld [vmem:[#allocation8 + $0x438] sm:$0xff] }
 0x154   : > { %1249 = vmatprep.mubr.f32.mxu0 %v9578_v0  ;;  %1518 = vmatprep.mubr.f32.mxu1 %v9578_v0  ;;  %v1963_v49 = vadd.f32 %v1931_v20, %v621_v59  ;;  %v1994_v28 = vrot.slane %v902_v47, 1  ;;  %v1865_v51 = vrot.slane %v631_v46, 7 }
 0x155   : > { %v2093_v5 = vadd.f32 %v2061_v44, %v1964_v22  ;;  %v633_v7 = vpop.f32.mrf.mxu0  ;;  %v904_v13 = vpop.f32.mrf.mxu1  ;;  %v2169_v18 = vsel %vm1894_vm1, %v2137_v45, %v2121_v10  ;;  %v2153_v23 = vsel %vm1894_vm1, %v2121_v10, %v2137_v45  ;;  %3044 = vmatpush1.msra.mxu1 %v3034_v14 }
 0x156   : > { %v2186_v33 = vsel %vm280_vm0, %v2169_v18, 0.0  ;;  %v6570_v38 = vadd.f32 %v2153_v23, %v2091_v57  ;;  %v2092_v24 = vadd.f32 %v2026_v16, %v1963_v49  ;;  %v2122_v56 = vrot.slane %v904_v13, 7 }
 0x157   : > { %v637_v11 = vpop.f32.mrf.mxu0  ;;  %v908_v50 = vpop.f32.mrf.mxu1  ;;  %1250 = vmatmul.mubr.f32.gmra.mxu0 %v6320_v25  ;;  %1519 = vmatmul.mubr.f32.gmra.mxu1 %v6320_v25  ;;  %v6574_v48 = vadd.f32 %v2186_v33, %v2090_v17 }
 0x158   : > { %v1881_v52 = vrot.slane %v637_v11, 7  ;;  %v2010_v54 = vrot.slane %v908_v50, 1  ;;  %1255 = vmatprep.mubr.f32.mxu0 %v9578_v0  ;;  %1524 = vmatprep.mubr.f32.mxu1 %v9578_v0 }
 0x159   : > { %v639_v57 = vpop.f32.mrf.mxu0  ;;  %v910_v59 = vpop.f32.mrf.mxu1 }
 0x15a   : > { %v1914_v60 = vsel %vm1894_vm1, %v1881_v52, %v1865_v51  ;;  %v2027_v25 = vsel %vm2023_vm2, %v1994_v28, %v2010_v54  ;;  %v2043_v58 = vsel %vm2023_vm2, %v2010_v54, %v1994_v28  ;;  %v1898_v61 = vsel %vm1894_vm1, %v1865_v51, %v1881_v52 }
 0x15b   : > { %v1933_v62 = vsel %vm280_vm0, %v1914_v60, 0.0  ;;  %v1966_v1 = vadd.f32 %v1898_v61, %v639_v57  ;;  %v2063_v17 = vsel %vm283_vm3, %v2043_v58, 0.0  ;;  %v2138_v3 = vrot.slane %v910_v59, 7  ;;  %v643_v4 = vpop.f32.mrf.mxu0  ;;  %v914_v6 = vpop.f32.mrf.mxu1  ;;  %1256 = vmatmul.mubr.f32.gmra.mxu0 %v6327_v26  ;;  %1525 = vmatmul.mubr.f32.gmra.mxu1 %v6327_v26  ;;  %v3026_v58 = vld [vmem:[#allocation8 + $0x3f8] sm:$0xff] }
 0x15c   : > { %1261 = vmatprep.mubr.f32.mxu0 %v9578_v0  ;;  %1530 = vmatprep.mubr.f32.mxu1 %v9578_v0  ;;  %v1965_v8 = vadd.f32 %v1933_v62, %v633_v7  ;;  %v1995_v21 = vrot.slane %v914_v6, 1  ;;  %v1866_v46 = vrot.slane %v643_v4, 7 }
 0x15d   : > { %v2095_v9 = vadd.f32 %v2063_v17, %v1966_v1  ;;  %v645_v10 = vpop.f32.mrf.mxu0  ;;  %v916_v12 = vpop.f32.mrf.mxu1  ;;  %v2170_v15 = vsel %vm1894_vm1, %v2138_v3, %v2122_v56  ;;  %v2154_v16 = vsel %vm1894_vm1, %v2122_v56, %v2138_v3  ;;  %v3025_v3 = vld [vmem:[#allocation8 + $0x3f0] sm:$0xff]  ;;  %3045 = vmatprep.subr.mxu1 %v3026_v58 }
 0x15e   : > { %v2188_v26 = vsel %vm280_vm0, %v2170_v15, 0.0  ;;  %v6600_v19 = vadd.f32 %v2154_v16, %v2093_v5  ;;  %v2094_v20 = vadd.f32 %v2027_v25, %v1965_v8  ;;  %v2123_v7 = vrot.slane %v916_v12, 7  ;;  %3046 = vmatpush1.msra.mxu1 %v3025_v3 }
 0x15f   : > { %v649_v22 = vpop.f32.mrf.mxu0  ;;  %v920_v44 = vpop.f32.mrf.mxu1  ;;  %1262 = vmatmul.mubr.f32.gmra.mxu0 %v6334_v27  ;;  %1531 = vmatmul.mubr.f32.gmra.mxu1 %v6334_v27  ;;  %v6604_v45 = vadd.f32 %v2188_v26, %v2092_v24 }
 0x160   : > { %v1882_v47 = vrot.slane %v649_v22, 7  ;;  %v2011_v49 = vrot.slane %v920_v44, 1  ;;  %1267 = vmatprep.mubr.f32.mxu0 %v9578_v0  ;;  %1536 = vmatprep.mubr.f32.mxu1 %v9578_v0 }
 0x161   : > { %v651_v13 = vpop.f32.mrf.mxu0  ;;  %v922_v5 = vpop.f32.mrf.mxu1 }
 0x162   : > { %v1915_v18 = vsel %vm1894_vm1, %v1882_v47, %v1866_v46  ;;  %v2028_v23 = vsel %vm2023_vm2, %v1995_v21, %v2011_v49  ;;  %v2044_v27 = vsel %vm2023_vm2, %v2011_v49, %v1995_v21  ;;  %v1899_v28 = vsel %vm1894_vm1, %v1866_v46, %v1882_v47 }
 0x163   : > { %v1935_v33 = vsel %vm280_vm0, %v1915_v18, 0.0  ;;  %v1968_v24 = vadd.f32 %v1899_v28, %v651_v13  ;;  %v2065_v11 = vsel %vm283_vm3, %v2044_v27, 0.0  ;;  %v2139_v50 = vrot.slane %v922_v5, 7  ;;  %v655_v51 = vpop.f32.mrf.mxu0  ;;  %v926_v52 = vpop.f32.mrf.mxu1  ;;  %1268 = vmatmul.mubr.f32.gmra.mxu0 %v6341_v29  ;;  %1537 = vmatmul.mubr.f32.gmra.mxu1 %v6341_v29  ;;  %v3017_v28 = vld [vmem:[#allocation8 + $0x3b0] sm:$0xff] }
 0x164   : > { %1273 = vmatprep.mubr.f32.mxu0 %v9578_v0  ;;  %1542 = vmatprep.mubr.f32.mxu1 %v9578_v0  ;;  %v1967_v54 = vadd.f32 %v1935_v33, %v645_v10  ;;  %v1996_v25 = vrot.slane %v926_v52, 1  ;;  %v1867_v6 = vrot.slane %v655_v51, 7  ;;  %v3016_v51 = vld [vmem:[#allocation8 + $0x3a8] sm:$0xff] }
 0x165   : > { %v2097_v55 = vadd.f32 %v2065_v11, %v1968_v24  ;;  %v657_v56 = vpop.f32.mrf.mxu0  ;;  %v928_v57 = vpop.f32.mrf.mxu1  ;;  %v2171_v59 = vsel %vm1894_vm1, %v2139_v50, %v2123_v7  ;;  %v2155_v60 = vsel %vm1894_vm1, %v2123_v7, %v2139_v50  ;;  %3047 = vmatprep.subr.mxu1 %v3017_v28 }
 0x166   : > { %v2190_v61 = vsel %vm280_vm0, %v2171_v59, 0.0  ;;  %v6630_v29 = vadd.f32 %v2155_v60, %v2095_v9  ;;  %v2096_v62 = vadd.f32 %v2028_v23, %v1967_v54  ;;  %v2124_v12 = vrot.slane %v928_v57, 7  ;;  %3048 = vmatpush1.msra.mxu1 %v3016_v51 }
 0x167   : > { %v661_v1 = vpop.f32.mrf.mxu0  ;;  %v932_v17 = vpop.f32.mrf.mxu1  ;;  %1274 = vmatmul.mubr.f32.gmra.mxu0 %v6348_v30  ;;  %1543 = vmatmul.mubr.f32.gmra.mxu1 %v6348_v30  ;;  %v6634_v4 = vadd.f32 %v2190_v61, %v2094_v20 }
 0x168   : > { %v1883_v8 = vrot.slane %v661_v1, 7  ;;  %v2012_v10 = vrot.slane %v932_v17, 1  ;;  %1279 = vmatprep.mubr.f32.mxu0 %v9578_v0  ;;  %1548 = vmatprep.mubr.f32.mxu1 %v9578_v0 }
 0x169   : > { %v663_v9 = vpop.f32.mrf.mxu0  ;;  %v934_v14 = vpop.f32.mrf.mxu1 }
 0x16a   : > { %v1916_v15 = vsel %vm1894_vm1, %v1883_v8, %v1867_v6  ;;  %v2029_v30 = vsel %vm2023_vm2, %v1996_v25, %v2012_v10  ;;  %v2045_v16 = vsel %vm2023_vm2, %v2012_v10, %v1996_v25  ;;  %v1900_v21 = vsel %vm1894_vm1, %v1867_v6, %v1883_v8 }
 0x16b   : > { %v1937_v26 = vsel %vm280_vm0, %v1916_v15, 0.0  ;;  %v1970_v20 = vadd.f32 %v1900_v21, %v663_v9  ;;  %v2067_v22 = vsel %vm283_vm3, %v2045_v16, 0.0  ;;  %v2140_v44 = vrot.slane %v934_v14, 7  ;;  %v667_v46 = vpop.f32.mrf.mxu0  ;;  %v938_v47 = vpop.f32.mrf.mxu1  ;;  %1280 = vmatmul.mubr.f32.gmra.mxu0 %v6355_v31  ;;  %1549 = vmatmul.mubr.f32.gmra.mxu1 %v6355_v31  ;;  %v3008_v21 = vld [vmem:[#allocation8 + $0x368] sm:$0xff] }
 0x16c   : > { %1285 = vmatprep.mubr.f32.mxu0 %v9578_v0  ;;  %1554 = vmatprep.mubr.f32.mxu1 %v9578_v0  ;;  %v1969_v49 = vadd.f32 %v1937_v26, %v657_v56  ;;  %v1997_v27 = vrot.slane %v938_v47, 1  ;;  %v1868_v54 = vrot.slane %v667_v46, 7  ;;  %v3007_v46 = vld [vmem:[#allocation8 + $0x360] sm:$0xff] }
 0x16d   : > { %v2099_v7 = vadd.f32 %v2067_v22, %v1970_v20  ;;  %v669_v13 = vpop.f32.mrf.mxu0  ;;  %v940_v5 = vpop.f32.mrf.mxu1  ;;  %v2172_v18 = vsel %vm1894_vm1, %v2140_v44, %v2124_v12  ;;  %v2156_v23 = vsel %vm1894_vm1, %v2124_v12, %v2140_v44  ;;  %3049 = vmatprep.subr.mxu1 %v3008_v21 }
 0x16e   : > { %v2192_v33 = vsel %vm280_vm0, %v2172_v18, 0.0  ;;  %v6660_v31 = vadd.f32 %v2156_v23, %v2097_v55  ;;  %v2098_v24 = vadd.f32 %v2029_v30, %v1969_v49  ;;  %v2125_v59 = vrot.slane %v940_v5, 7  ;;  %3050 = vmatpush1.msra.mxu1 %v3007_v46 }
 0x16f   : > { %v673_v11 = vpop.f32.mrf.mxu0  ;;  %v944_v50 = vpop.f32.mrf.mxu1  ;;  %1286 = vmatmul.mubr.f32.gmra.mxu0 %v6362_v32  ;;  %1555 = vmatmul.mubr.f32.gmra.mxu1 %v6362_v32  ;;  %v6664_v52 = vadd.f32 %v2192_v33, %v2096_v62 }
 0x170   : > { %v1884_v56 = vrot.slane %v673_v11, 7  ;;  %v2013_v57 = vrot.slane %v944_v50, 1  ;;  %1291 = vmatprep.mubr.f32.mxu0 %v9578_v0  ;;  %1560 = vmatprep.mubr.f32.mxu1 %v9578_v0 }
 0x171   : > { %v675_v55 = vpop.f32.mrf.mxu0  ;;  %v946_v60 = vpop.f32.mrf.mxu1 }
 0x172   : > { %v1917_v25 = vsel %vm1894_vm1, %v1884_v56, %v1868_v54  ;;  %v2030_v32 = vsel %vm2023_vm2, %v1997_v27, %v2013_v57  ;;  %v2046_v58 = vsel %vm2023_vm2, %v2013_v57, %v1997_v27  ;;  %v1901_v61 = vsel %vm1894_vm1, %v1868_v54, %v1884_v56 }
 0x173   : > { %v1939_v62 = vsel %vm280_vm0, %v1917_v25, 0.0  ;;  %v1972_v1 = vadd.f32 %v1901_v61, %v675_v55  ;;  %v2069_v17 = vsel %vm283_vm3, %v2046_v58, 0.0  ;;  %v2141_v3 = vrot.slane %v946_v60, 7  ;;  %v679_v6 = vpop.f32.mrf.mxu0  ;;  %v950_v8 = vpop.f32.mrf.mxu1  ;;  %1292 = vmatmul.mubr.f32.gmra.mxu0 %v6369_v34  ;;  %1561 = vmatmul.mubr.f32.gmra.mxu1 %v6369_v34  ;;  %v2999_v61 = vld [vmem:[#allocation8 + $0x320] sm:$0xff] }
 0x174   : > { %1297 = vmatprep.mubr.f32.mxu0 %v9578_v0  ;;  %1566 = vmatprep.mubr.f32.mxu1 %v9578_v0  ;;  %v1971_v10 = vadd.f32 %v1939_v62, %v669_v13  ;;  %v1998_v16 = vrot.slane %v950_v8, 1  ;;  %v1869_v49 = vrot.slane %v679_v6, 7  ;;  %v2998_v6 = vld [vmem:[#allocation8 + $0x318] sm:$0xff] }
 0x175   : > { %v2101_v12 = vadd.f32 %v2069_v17, %v1972_v1  ;;  %v681_v9 = vpop.f32.mrf.mxu0  ;;  %v952_v14 = vpop.f32.mrf.mxu1  ;;  %v2173_v15 = vsel %vm1894_vm1, %v2141_v3, %v2125_v59  ;;  %v2157_v30 = vsel %vm1894_vm1, %v2125_v59, %v2141_v3  ;;  %3051 = vmatprep.subr.mxu1 %v2999_v61 }
 0x176   : > { %v2194_v26 = vsel %vm280_vm0, %v2173_v15, 0.0  ;;  %v6690_v34 = vadd.f32 %v2157_v30, %v2099_v7  ;;  %v2100_v20 = vadd.f32 %v2030_v32, %v1971_v10  ;;  %v2126_v18 = vrot.slane %v952_v14, 7  ;;  %3052 = vmatpush1.msra.mxu1 %v2998_v6 }
 0x177   : > { %v685_v22 = vpop.f32.mrf.mxu0  ;;  %v956_v44 = vpop.f32.mrf.mxu1  ;;  %1298 = vmatmul.mubr.f32.gmra.mxu0 %v6376_v35  ;;  %1567 = vmatmul.mubr.f32.gmra.mxu1 %v6376_v35  ;;  %v6694_v47 = vadd.f32 %v2194_v26, %v2098_v24 }
 0x178   : > { %v1885_v13 = vrot.slane %v685_v22, 7  ;;  %v2014_v5 = vrot.slane %v956_v44, 1  ;;  %1303 = vmatprep.mubr.f32.mxu0 %v9578_v0  ;;  %1572 = vmatprep.mubr.f32.mxu1 %v9578_v0 }
 0x179   : > { %v687_v7 = vpop.f32.mrf.mxu0  ;;  %v958_v23 = vpop.f32.mrf.mxu1 }
 0x17a   : > { %v1918_v27 = vsel %vm1894_vm1, %v1885_v13, %v1869_v49  ;;  %v2031_v35 = vsel %vm2023_vm2, %v1998_v16, %v2014_v5  ;;  %v2047_v28 = vsel %vm2023_vm2, %v2014_v5, %v1998_v16  ;;  %v1902_v33 = vsel %vm1894_vm1, %v1869_v49, %v1885_v13 }
 0x17b   : > { %v1941_v24 = vsel %vm280_vm0, %v1918_v27, 0.0  ;;  %v1974_v11 = vadd.f32 %v1902_v33, %v687_v7  ;;  %v2071_v50 = vsel %vm283_vm3, %v2047_v28, 0.0  ;;  %v2142_v51 = vrot.slane %v958_v23, 7  ;;  %v691_v54 = vpop.f32.mrf.mxu0  ;;  %v962_v56 = vpop.f32.mrf.mxu1  ;;  %1304 = vmatmul.mubr.f32.gmra.mxu0 %v6383_v36  ;;  %1573 = vmatmul.mubr.f32.gmra.mxu1 %v6383_v36  ;;  %v2990_v23 = vld [vmem:[#allocation8 + $0x2d8] sm:$0xff] }
 0x17c   : > { %1309 = vmatprep.mubr.f32.mxu0 %v9578_v0  ;;  %1578 = vmatprep.mubr.f32.mxu1 %v9578_v0  ;;  %v1973_v57 = vadd.f32 %v1941_v24, %v681_v9  ;;  %v1999_v58 = vrot.slane %v962_v56, 1  ;;  %v1870_v10 = vrot.slane %v691_v54, 7 }
 0x17d   : > { %v6714_v59 = vadd.f32 %v2071_v50, %v1974_v11  ;;  %v693_v55 = vpop.f32.mrf.mxu0  ;;  %v6716_v60 = vpop.f32.mrf.mxu1  ;;  %v2174_v25 = vsel %vm1894_vm1, %v2142_v51, %v2126_v18  ;;  %v2158_v32 = vsel %vm1894_vm1, %v2126_v18, %v2142_v51  ;;  %3053 = vmatprep.subr.mxu1 %v2990_v23 }
 0x17e   : > { %v2196_v36 = vsel %vm280_vm0, %v2174_v25, 0.0  ;;  %v6724_v62 = vadd.f32 %v2158_v32, %v2101_v12  ;;  %v6726_v1 = vadd.f32 %v2031_v35, %v1973_v57 }
 0x17f   : > { %v697_v17 = vpop.f32.mrf.mxu0  ;;  %v968_v3 = vpop.f32.mrf.mxu1  ;;  %1310 = vmatmul.mubr.f32.gmra.mxu0 %v6390_v37  ;;  %1579 = vmatmul.mubr.f32.gmra.mxu1 %v6390_v37  ;;  %v6730_v8 = vadd.f32 %v2196_v36, %v2100_v20 }
 0x180   : > { %v1886_v9 = vrot.slane %v697_v17, 7  ;;  %v2015_v14 = vrot.slane %v968_v3, 1  ;;  %1315 = vmatprep.mubr.f32.mxu0 %v9578_v0  ;;  %1584 = vmatprep.mubr.f32.mxu1 %v9578_v0 }
 0x181   : > { %v699_v12 = vpop.f32.mrf.mxu0  ;;  %v6734_v15 = vpop.f32.mrf.mxu1 }
 0x182   : > { %v1919_v30 = vsel %vm1894_vm1, %v1886_v9, %v1870_v10  ;;  %v2032_v37 = vsel %vm2023_vm2, %v1999_v58, %v2015_v14  ;;  %v2048_v16 = vsel %vm2023_vm2, %v2015_v14, %v1999_v58  ;;  %v1903_v21 = vsel %vm1894_vm1, %v1870_v10, %v1886_v9  ;;  %v2981_v9 = vld [vmem:[#allocation8 + $0x290] sm:$0xff] }
 0x183   : > { %v1943_v26 = vsel %vm280_vm0, %v1919_v30, 0.0  ;;  %v1976_v20 = vadd.f32 %v1903_v21, %v699_v12  ;;  %v2073_v22 = vsel %vm283_vm3, %v2048_v16, 0.0  ;;  %v703_v44 = vpop.f32.mrf.mxu0  ;;  %v974_v46 = vpop.f32.mrf.mxu1  ;;  %1316 = vmatmul.mubr.f32.gmra.mxu0 %v6397_v39  ;;  %1585 = vmatmul.mubr.f32.gmra.mxu1 %v6397_v39  ;;  %v2989_v39 = vld [vmem:[#allocation8 + $0x2d0] sm:$0xff] }
 0x184   : > { %1321 = vmatprep.mubr.f32.mxu0 %v9578_v0  ;;  %1590 = vmatprep.mubr.f32.mxu1 %v9578_v0  ;;  %v1975_v49 = vadd.f32 %v1943_v26, %v693_v55  ;;  %v2000_v7 = vrot.slane %v974_v46, 1  ;;  %v1871_v33 = vrot.slane %v703_v44, 7 }
 0x185   : > { %v6752_v13 = vadd.f32 %v2073_v22, %v1976_v20  ;;  %v705_v5 = vpop.f32.mrf.mxu0  ;;  %v6754_v18 = vpop.f32.mrf.mxu1  ;;  %3054 = vmatpush1.msra.mxu1 %v2989_v39 }
 0x186   : > { %v6756_v27 = vadd.f32 %v2032_v37, %v1975_v49  ;;  %3055 = vmatprep.subr.mxu1 %v2981_v9 }
 0x187   : > { %v709_v35 = vpop.f32.mrf.mxu0  ;;  %v980_v28 = vpop.f32.mrf.mxu1  ;;  %1322 = vmatmul.mubr.f32.gmra.mxu0 %v6404_v40  ;;  %1591 = vmatmul.mubr.f32.gmra.mxu1 %v6404_v40 }
 0x188   : > { %v1887_v24 = vrot.slane %v709_v35, 7  ;;  %v2016_v11 = vrot.slane %v980_v28, 1  ;;  %1327 = vmatprep.mubr.f32.mxu0 %v9578_v0  ;;  %1596 = vmatprep.mubr.f32.mxu1 %v9578_v0 }
 0x189   : > { %v711_v50 = vpop.f32.mrf.mxu0  ;;  %v6762_v51 = vpop.f32.mrf.mxu1 }
 0x18a   : > { %v1920_v54 = vsel %vm1894_vm1, %v1887_v24, %v1871_v33  ;;  %v2033_v56 = vsel %vm2023_vm2, %v2000_v7, %v2016_v11  ;;  %v2049_v40 = vsel %vm2023_vm2, %v2016_v11, %v2000_v7  ;;  %v1904_v57 = vsel %vm1894_vm1, %v1871_v33, %v1887_v24  ;;  %v2980_v11 = vld [vmem:[#allocation8 + $0x288] sm:$0xff] }
 0x18b   : > { %v1945_v55 = vsel %vm280_vm0, %v1920_v54, 0.0  ;;  %v1978_v25 = vadd.f32 %v1904_v57, %v711_v50  ;;  %v2075_v32 = vsel %vm283_vm3, %v2049_v40, 0.0  ;;  %v715_v58 = vpop.f32.mrf.mxu0  ;;  %v986_v61 = vpop.f32.mrf.mxu1  ;;  %1328 = vmatmul.mubr.f32.gmra.mxu0 %v6411_v41  ;;  %1597 = vmatmul.mubr.f32.gmra.mxu1 %v6411_v41 }
 0x18c   : > { %1333 = vmatprep.mubr.f32.mxu0 %v9578_v0  ;;  %1602 = vmatprep.mubr.f32.mxu1 %v9578_v0  ;;  %v1977_v36 = vadd.f32 %v1945_v55, %v705_v5  ;;  %v2001_v10 = vrot.slane %v986_v61, 1  ;;  %v1872_v41 = vrot.slane %v715_v58, 7 }
 0x18d   : > { %v6780_v17 = vadd.f32 %v2075_v32, %v1978_v25  ;;  %v717_v3 = vpop.f32.mrf.mxu0  ;;  %v6782_v6 = vpop.f32.mrf.mxu1  ;;  %3056 = vmatpush1.msra.mxu1 %v2980_v11  ;;  %v5791_v11 = vld [vmem:[%s6177_s30 + $0x10] sm:$0xff] }
 0x18e   : > { %v6784_v14 = vadd.f32 %v2033_v56, %v1977_v36 }
 0x18f   : > { %v721_v12 = vpop.f32.mrf.mxu0  ;;  %v992_v30 = vpop.f32.mrf.mxu1  ;;  %1334 = vmatmul.mubr.f32.gmra.mxu0 %v6418_v42  ;;  %1603 = vmatmul.mubr.f32.gmra.mxu1 %v6418_v42 }
 0x190   : > { %v1888_v37 = vrot.slane %v721_v12, 7  ;;  %v2017_v16 = vrot.slane %v992_v30, 1  ;;  %1339 = vmatprep.mubr.f32.mxu0 %v9578_v0  ;;  %1608 = vmatprep.mubr.f32.mxu1 %v9578_v0 }
 0x191   : > { %v723_v21 = vpop.f32.mrf.mxu0  ;;  %v6790_v26 = vpop.f32.mrf.mxu1 }
 0x192   : > { %v1921_v20 = vsel %vm1894_vm1, %v1888_v37, %v1872_v41  ;;  %v2034_v22 = vsel %vm2023_vm2, %v2001_v10, %v2017_v16  ;;  %v2050_v42 = vsel %vm2023_vm2, %v2017_v16, %v2001_v10  ;;  %v1905_v44 = vsel %vm1894_vm1, %v1872_v41, %v1888_v37  ;;  %v5789_v37 = vld [vmem:[%s6177_s30] sm:$0xff] }
 0x193   : > { %v1947_v46 = vsel %vm280_vm0, %v1921_v20, 0.0  ;;  %v1980_v49 = vadd.f32 %v1905_v44, %v723_v21  ;;  %v2077_v5 = vsel %vm283_vm3, %v2050_v42, 0.0  ;;  %v727_v7 = vpop.f32.mrf.mxu0  ;;  %v998_v23 = vpop.f32.mrf.mxu1  ;;  %1340 = vmatmul.mubr.f32.gmra.mxu0 %v9578_v0  ;;  %1609 = vmatmul.mubr.f32.gmra.mxu1 %v9578_v0  ;;  %v2972_v44 = vld [vmem:[#allocation8 + $0x248] sm:$0xff] }
 0x194   : > { %1343 = vmatprep.mubr.f32.mxu0 %v9578_v0  ;;  %1614 = vmatprep.mubr.f32.mxu1 %v9578_v0  ;;  %v1979_v35 = vadd.f32 %v1947_v46, %v717_v3  ;;  %v2002_v24 = vrot.slane %v998_v23, 1  ;;  %v1873_v40 = vrot.slane %v727_v7, 7  ;;  %v2971_v46 = vld [vmem:[#allocation8 + $0x240] sm:$0xff]  ;;  %v5790_v23 = vld [vmem:[%s6177_s30 + $0x8] sm:$0xff] }
 0x195   : > { %v6808_v28 = vadd.f32 %v2077_v5, %v1980_v49  ;;  %v729_v39 = vpop.f32.mrf.mxu0  ;;  %v6810_v33 = vpop.f32.mrf.mxu1  ;;  %3057 = vmatprep.subr.mxu1 %v2972_v44  ;;  %v2963_v44 = vld [vmem:[#allocation8 + $0x200] sm:$0xff] }
 0x196   : > { %v6812_v50 = vadd.f32 %v2034_v22, %v1979_v35  ;;  %3058 = vmatpush1.msra.mxu1 %v2971_v46  ;;  %v2962_v46 = vld [vmem:[#allocation8 + $0x1f8] sm:$0xff] }
 0x197   : > { %v733_v54 = vpop.f32.mrf.mxu0  ;;  %v1004_v56 = vpop.f32.mrf.mxu1  ;;  %1344 = vmatmul.mubr.f32.gmra.mxu0 %v9578_v0  ;;  %1615 = vmatmul.mubr.f32.gmra.mxu1 %v9578_v0 }
 0x198   : > { %v1889_v57 = vrot.slane %v733_v54, 7  ;;  %v2018_v55 = vrot.slane %v1004_v56, 1  ;;  %5575 = vmatprep.mubr.f32.mxu0 %v9578_v0  ;;  %3107 = vmatprep.mubr.f32.mxu1 %v9578_v0 }
 0x199   : > { %v735_v25 = vpop.f32.mrf.mxu0  ;;  %v6817_v32 = vpop.f32.mrf.mxu1  ;;  %3059 = vmatprep.subr.mxu1 %v2963_v44 }
 0x19a   : > { %v1922_v58 = vsel %vm1894_vm1, %v1889_v57, %v1873_v40  ;;  %v2035_v61 = vsel %vm2023_vm2, %v2002_v24, %v2018_v55  ;;  %v2051_v36 = vsel %vm2023_vm2, %v2018_v55, %v2002_v24  ;;  %v1906_v3 = vsel %vm1894_vm1, %v1873_v40, %v1889_v57  ;;  %3060 = vmatpush1.msra.mxu1 %v2962_v46 }
 0x19b   : > { %v1949_v10 = vsel %vm280_vm0, %v1922_v58, 0.0  ;;  %v1982_v9 = vadd.f32 %v1906_v3, %v735_v25  ;;  %v2079_v12 = vsel %vm283_vm3, %v2051_v36, 0.0  ;;  %v739_v30 = vpop.f32.mrf.mxu0  ;;  %v1010_v41 = vpop.f32.mrf.mxu1  ;;  %5576 = vmatmul.mubr.f32.vlgmr.msra.gmra.mxu0 %v9578_v0  ;;  %v5802_v0 = vld [vmem:[%s6177_s30 + $0x68] sm:$0xff] }
 0x19c   : > { %5578 = vmatprep.mubr.f32.mxu0 %v5789_v37  ;;  %v1981_v16 = vadd.f32 %v1949_v10, %v729_v39  ;;  %v2003_v42 = vrot.slane %v1010_v41, 1  ;;  %v1874_v35 = vrot.slane %v739_v30, 7 }
 0x19d   : > { %v6834_v21 = vadd.f32 %v2079_v12, %v1982_v9  ;;  %v741_v20 = vpop.f32.mrf.mxu0  ;;  %v6836_v22 = vpop.f32.mrf.mxu1  ;;  %v5792_v9 = vld [vmem:[%s6177_s30 + $0x18] sm:$0xff]  ;;  %v5793_v12 = vld [vmem:[%s6177_s30 + $0x20] sm:$0xff] }
 0x19e   : > { %v6838_v49 = vadd.f32 %v2035_v61, %v1981_v16 }
 0x19f   : > { %v745_v5 = vpop.f32.mrf.mxu0  ;;  %v1016_v7 = vpop.f32.mrf.mxu1  ;;  %5579 = vmatmul.mubr.f32.gmra.mxu0 %v5790_v23 }
 0x1a0   : > { %v1890_v24 = vrot.slane %v745_v5, 7  ;;  %v2019_v39 = vrot.slane %v1016_v7, 1  ;;  %5581 = vmatprep.mubr.f32.mxu0 %v5791_v11  ;;  %v5795_v11 = vld [vmem:[%s6177_s30 + $0x30] sm:$0xff] }
 0x1a1   : > { %v747_v54 = vpop.f32.mrf.mxu0  ;;  %v6842_v56 = vpop.f32.mrf.mxu1 }
 0x1a2   : > { %v1923_v40 = vsel %vm1894_vm1, %v1890_v24, %v1874_v35  ;;  %v2036_v57 = vsel %vm2023_vm2, %v2003_v42, %v2019_v39  ;;  %v2052_v55 = vsel %vm2023_vm2, %v2019_v39, %v2003_v42  ;;  %v1907_v25 = vsel %vm1894_vm1, %v1874_v35, %v1890_v24  ;;  %v5794_v35 = vld [vmem:[%s6177_s30 + $0x28] sm:$0xff] }
 0x1a3   : > { %v1951_v58 = vsel %vm280_vm0, %v1923_v40, 0.0  ;;  %v1984_v61 = vadd.f32 %v1907_v25, %v747_v54  ;;  %v2081_v36 = vsel %vm283_vm3, %v2052_v55, 0.0  ;;  %v751_v3 = vpop.f32.mrf.mxu0  ;;  %v1022_v10 = vpop.f32.mrf.mxu1  ;;  %5582 = vmatmul.mubr.f32.gmra.mxu0 %v5792_v9 }
 0x1a4   : > { %5584 = vmatprep.mubr.f32.mxu0 %v5793_v12  ;;  %v1983_v30 = vadd.f32 %v1951_v58, %v741_v20  ;;  %v2004_v42 = vrot.slane %v1022_v10, 1  ;;  %v1875_v24 = vrot.slane %v751_v3, 7  ;;  %v5796_v12 = vld [vmem:[%s6177_s30 + $0x38] sm:$0xff] }
 0x1a5   : > { %v6858_v41 = vadd.f32 %v2081_v36, %v1984_v61  ;;  %v753_v37 = vpop.f32.mrf.mxu0  ;;  %v6860_v16 = vpop.f32.mrf.mxu1 }
 0x1a6   : > { %v6862_v5 = vadd.f32 %v2036_v57, %v1983_v30  ;;  %v5797_v30 = vld [vmem:[%s6177_s30 + $0x40] sm:$0xff] }
 0x1a7   : > { %v757_v7 = vpop.f32.mrf.mxu0  ;;  %v1028_v23 = vpop.f32.mrf.mxu1  ;;  %5585 = vmatmul.mubr.f32.gmra.mxu0 %v5794_v35  ;;  %v2954_v35 = vld [vmem:[#allocation8 + $0x1b8] sm:$0xff] }
 0x1a8   : > { %v1891_v39 = vrot.slane %v757_v7, 7  ;;  %v2020_v20 = vrot.slane %v1028_v23, 1  ;;  %5587 = vmatprep.mubr.f32.mxu0 %v5795_v11  ;;  %3061 = vmatprep.subr.mxu1 %v2954_v35 }
 0x1a9   : > { %v759_v54 = vpop.f32.mrf.mxu0  ;;  %v6866_v40 = vpop.f32.mrf.mxu1 }
 0x1aa   : > { %v1924_v57 = vsel %vm1894_vm1, %v1891_v39, %v1875_v24  ;;  %v2037_v55 = vsel %vm2023_vm2, %v2004_v42, %v2020_v20  ;;  %v2053_v25 = vsel %vm2023_vm2, %v2020_v20, %v2004_v42  ;;  %v1908_v58 = vsel %vm1894_vm1, %v1875_v24, %v1891_v39  ;;  %v2953_v24 = vld [vmem:[#allocation8 + $0x1b0] sm:$0xff] }
 0x1ab   : > { %v1953_v61 = vsel %vm280_vm0, %v1924_v57, 0.0  ;;  %v1986_v36 = vadd.f32 %v1908_v58, %v759_v54  ;;  %v2083_v3 = vsel %vm283_vm3, %v2053_v25, 0.0  ;;  %v763_v10 = vpop.f32.mrf.mxu0  ;;  %v1034_v9 = vpop.f32.mrf.mxu1  ;;  %5588 = vmatmul.mubr.f32.gmra.mxu0 %v5796_v12  ;;  %v5798_v54 = vld [vmem:[%s6177_s30 + $0x48] sm:$0xff]  ;;  %v5799_v58 = vld [vmem:[%s6177_s30 + $0x50] sm:$0xff]  ;;  %3062 = vmatpush1.msra.mxu1 %v2953_v24 }
 0x1ac   : > { %5590 = vmatprep.mubr.f32.mxu0 %v5797_v30  ;;  %v1985_v44 = vadd.f32 %v1953_v61, %v753_v37  ;;  %v2005_v23 = vrot.slane %v1034_v9, 1  ;;  %v1876_v57 = vrot.slane %v763_v10, 7 }
 0x1ad   : > { %v6882_v42 = vadd.f32 %v2083_v3, %v1986_v36  ;;  %v765_v46 = vpop.f32.mrf.mxu0  ;;  %v6884_v7 = vpop.f32.mrf.mxu1 }
 0x1ae   : > { %v6886_v39 = vadd.f32 %v2037_v55, %v1985_v44 }
 0x1af   : > { %v769_v20 = vpop.f32.mrf.mxu0  ;;  %v1040_v11 = vpop.f32.mrf.mxu1  ;;  %5591 = vmatmul.mubr.f32.gmra.mxu0 %v5798_v54 }
 0x1b0   : > { %9600 = vst [vmem:[#allocation13_spill] sm:$0xff] %v6886_v39  ;;  %v1892_v25 = vrot.slane %v769_v20, 7  ;;  %v2021_v37 = vrot.slane %v1040_v11, 1  ;;  %5593 = vmatprep.mubr.f32.mxu0 %v5799_v58  ;;  %v5800_v20 = vld [vmem:[%s6177_s30 + $0x58] sm:$0xff]  ;;  %v5801_v11 = vld [vmem:[%s6177_s30 + $0x60] sm:$0xff]  ;;  %v2945_v58 = vld [vmem:[#allocation8 + $0x170] sm:$0xff] }
 0x1b1   : > { %v771_v61 = vpop.f32.mrf.mxu0  ;;  %v6890_v36 = vpop.f32.mrf.mxu1  ;;  %3063 = vmatprep.subr.mxu1 %v2945_v58 }
 0x1b2   : > { %v1925_v55 = vsel %vm1894_vm1, %v1892_v25, %v1876_v57  ;;  %v2038_v3 = vsel %vm2023_vm2, %v2005_v23, %v2021_v37  ;;  %v2054_v9 = vsel %vm2023_vm2, %v2021_v37, %v2005_v23  ;;  %v1909_v10 = vsel %vm1894_vm1, %v1876_v57, %v1892_v25 }
 0x1b3   : > { %v1955_v12 = vsel %vm280_vm0, %v1925_v55, 0.0  ;;  %v1988_v30 = vadd.f32 %v1909_v10, %v771_v61  ;;  %v2085_v44 = vsel %vm283_vm3, %v2054_v9, 0.0  ;;  %v775_v35 = vpop.f32.mrf.mxu0  ;;  %v1046_v24 = vpop.f32.mrf.mxu1  ;;  %5594 = vmatmul.mubr.f32.gmra.mxu0 %v5800_v20  ;;  %v2944_v61 = vld [vmem:[#allocation8 + $0x168] sm:$0xff] }
 0x1b4   : > { %5596 = vmatprep.mubr.f32.mxu0 %v5801_v11  ;;  %v1987_v54 = vadd.f32 %v1955_v12, %v765_v46  ;;  %v2006_v25 = vrot.slane %v1046_v24, 1  ;;  %v1877_v20 = vrot.slane %v775_v35, 7  ;;  %v5803_v12 = vld [vmem:[%s6177_s30 + $0x70] sm:$0xff]  ;;  %3064 = vmatpush1.msra.mxu1 %v2944_v61 }
 0x1b5   : > { %v6906_v23 = vadd.f32 %v2085_v44, %v1988_v30  ;;  %v777_v37 = vpop.f32.mrf.mxu0  ;;  %v6908_v57 = vpop.f32.mrf.mxu1 }
 0x1b6   : > { %v6910_v55 = vadd.f32 %v2038_v3, %v1987_v54 }
 0x1b7   : > { %9601 = vst [vmem:[#allocation14_spill] sm:$0xff] %v6906_v23  ;;  %v781_v9 = vpop.f32.mrf.mxu0  ;;  %v1052_v10 = vpop.f32.mrf.mxu1  ;;  %5597 = vmatmul.mubr.f32.gmra.mxu0 %v5802_v0 }
 0x1b8   : > { %9602 = vst [vmem:[#allocation15_spill] sm:$0xff] %v6910_v55  ;;  %v1893_v39 = vrot.slane %v781_v9, 7  ;;  %v2022_v46 = vrot.slane %v1052_v10, 1  ;;  %5599 = vmatprep.mubr.f32.mxu0 %v5803_v12  ;;  %v5804_v10 = vld [vmem:[%s6177_s30 + $0x78] sm:$0xff]  ;;  %v5805_v12 = vld [vmem:[%s6177_s30 + $0x80] sm:$0xff] }
 0x1b9   : > { %v783_v30 = vpop.f32.mrf.mxu0  ;;  %v6914_v44 = vpop.f32.mrf.mxu1 }
 0x1ba   : > { %v1926_v3 = vsel %vm1894_vm1, %v1893_v39, %v1877_v20  ;;  %v2039_v24 = vsel %vm2023_vm2, %v2006_v25, %v2022_v46  ;;  %v2055_v0 = vsel %vm2023_vm2, %v2022_v46, %v2006_v25  ;;  %v1910_v35 = vsel %vm1894_vm1, %v1877_v20, %v1893_v39  ;;  %v2936_v20 = vld [vmem:[#allocation8 + $0x128] sm:$0xff] }
 0x1bb   : > { %v1957_v11 = vsel %vm280_vm0, %v1926_v3, 0.0  ;;  %v1990_v54 = vadd.f32 %v1910_v35, %v783_v30  ;;  %v2087_v58 = vsel %vm283_vm3, %v2055_v0, 0.0  ;;  %v787_v61 = vpop.f32.mrf.mxu0  ;;  %v1058_v9 = vpop.f32.mrf.mxu1  ;;  %5600 = vmatmul.mubr.f32.gmra.mxu0 %v5804_v10  ;;  %v2935_v30 = vld [vmem:[#allocation8 + $0x120] sm:$0xff]  ;;  %3065 = vmatprep.subr.mxu1 %v2936_v20  ;;  %v5808_v10 = vld [vmem:[%s6177_s30 + $0x98] sm:$0xff]  ;;  %v3028_v20 = vld [vmem:[#allocation8 + $0x408] sm:$0xff] }
 0x1bc   : > { %5602 = vmatprep.mubr.f32.mxu0 %v5805_v12  ;;  %v1989_v55 = vadd.f32 %v1957_v11, %v777_v37  ;;  %v5806_v61 = vld [vmem:[%s6177_s30 + $0x88] sm:$0xff]  ;;  %v5807_v9 = vld [vmem:[%s6177_s30 + $0x90] sm:$0xff]  ;;  %3066 = vmatpush1.msra.mxu1 %v2935_v30  ;;  %v2926_v30 = vld [vmem:[#allocation8 + $0xd8] sm:$0xff] }
 0x1bd   : > { %v6930_v25 = vadd.f32 %v2087_v58, %v1990_v54  ;;  %v788_v46 = vpop.f32.mrf.mxu0  ;;  %v6932_v39 = vpop.f32.mrf.mxu1  ;;  %v3037_v12 = vld [vmem:[#allocation8 + $0x450] sm:$0xff] }
 0x1be   : > { %v6934_v3 = vadd.f32 %v2039_v24, %v1989_v55  ;;  %v5809_v55 = vld [vmem:[%s6177_s30 + $0xa0] sm:$0xff]  ;;  %3316 = vmatprep.subr.mxu0 %v3037_v12  ;;  %v3036_v24 = vld [vmem:[#allocation8 + $0x448] sm:$0xff] }
 0x1bf   : > { %9603 = vst [vmem:[#allocation16_spill] sm:$0xff] %v6930_v25  ;;  %v791_v0 = vpop.f32.mrf.mxu0  ;;  %v1063_v35 = vpop.f32.mrf.mxu1  ;;  %5603 = vmatmul.mubr.f32.gmra.mxu0 %v5806_v61  ;;  %v3027_v61 = vld [vmem:[#allocation8 + $0x400] sm:$0xff]  ;;  %v5812_v25 = vld [vmem:[%s6177_s30 + $0xb8] sm:$0xff] }
 0x1c0   : > { %9604 = vst [vmem:[#allocation17_spill] sm:$0xff] %v6934_v3  ;;  %5605 = vmatprep.mubr.f32.mxu0 %v5807_v9  ;;  %3317 = vmatpush1.msra.mxu0 %v3036_v24  ;;  %v2927_v35 = vld [vmem:[#allocation8 + $0xe0] sm:$0xff]  ;;  %v3018_v24 = vld [vmem:[#allocation8 + $0x3b8] sm:$0xff] }
 0x1c1   : > { %v792_v37 = vpop.f32.mrf.mxu0  ;;  %v6938_v11 = vpop.f32.mrf.mxu1  ;;  %3318 = vmatprep.subr.mxu0 %v3028_v20  ;;  %3067 = vmatprep.subr.mxu1 %v2927_v35  ;;  %v3001_v35 = vld [vmem:[#allocation8 + $0x330] sm:$0xff] }
 0x1c2   : > { %3068 = vmatpush1.msra.mxu1 %v2926_v30  ;;  %3319 = vmatpush1.msra.mxu0 %v3027_v61  ;;  %v2918_v30 = vld [vmem:[#allocation8 + $0x98] sm:$0xff]  ;;  %v3000_v61 = vld [vmem:[#allocation8 + $0x328] sm:$0xff] }
 0x1c3   : > { %v795_v54 = vpop.f32.mrf.mxu0  ;;  %v1068_v58 = vpop.f32.mrf.mxu1  ;;  %5606 = vmatmul.mubr.f32.gmra.mxu0 %v5808_v10  ;;  %v5811_v10 = vld [vmem:[%s6177_s30 + $0xb0] sm:$0xff]  ;;  %3069 = vmatprep.subr.mxu1 %v2918_v30  ;;  %v2974_v30 = vld [vmem:[#allocation8 + $0x258] sm:$0xff] }
 0x1c4   : > { %5608 = vmatprep.mubr.f32.mxu0 %v5809_v55  ;;  %v5810_v54 = vld [vmem:[%s6177_s30 + $0xa8] sm:$0xff]  ;;  %v3019_v58 = vld [vmem:[#allocation8 + $0x3c0] sm:$0xff] }
 0x1c5   : > { %v796_v46 = vpop.f32.mrf.mxu0  ;;  %v1069_v0 = vpop.f32.mrf.mxu1  ;;  %3320 = vmatprep.subr.mxu0 %v3019_v58 }
 0x1c6   : > { %v3010_v46 = vld [vmem:[#allocation8 + $0x378] sm:$0xff]  ;;  %3321 = vmatpush1.msra.mxu0 %v3018_v24 }
 0x1c7   : > { %v799_v9 = vpop.f32.mrf.mxu0  ;;  %v1072_v37 = vpop.f32.mrf.mxu1  ;;  %5609 = vmatmul.mubr.f32.gmra.mxu0 %v5810_v54  ;;  %3322 = vmatprep.subr.mxu0 %v3010_v46  ;;  %v2991_v46 = vld [vmem:[#allocation8 + $0x2e0] sm:$0xff] }
 0x1c8   : > { %5611 = vmatprep.mubr.f32.mxu0 %v5811_v10  ;;  %v3009_v9 = vld [vmem:[#allocation8 + $0x370] sm:$0xff]  ;;  %v5813_v37 = vld [vmem:[%s6177_s30 + $0xc0] sm:$0xff] }
 0x1c9   : > { %v800_v12 = vpop.f32.mrf.mxu0  ;;  %v1073_v55 = vpop.f32.mrf.mxu1  ;;  %3323 = vmatpush1.msra.mxu0 %v3009_v9  ;;  %v2983_v9 = vld [vmem:[#allocation8 + $0x2a0] sm:$0xff] }
 0x1ca   : > { %v2917_v12 = vld [vmem:[#allocation8 + $0x90] sm:$0xff]  ;;  %3324 = vmatprep.subr.mxu0 %v3001_v35 }
 0x1cb   : > { %v1141_v0 = vpop.f32.mrf.mxu0  ;;  %v1414_v20 = vpop.f32.mrf.mxu1  ;;  %5612 = vmatmul.mubr.f32.gmra.mxu0 %v5812_v25  ;;  %v2992_v25 = vld [vmem:[#allocation8 + $0x2e8] sm:$0xff]  ;;  %3070 = vmatpush1.msra.mxu1 %v2917_v12  ;;  %v2973_v12 = vld [vmem:[#allocation8 + $0x250] sm:$0xff] }
 0x1cc   : > { %5614 = vmatprep.mubr.f32.mxu0 %v5813_v37  ;;  %v5814_v0 = vld [vmem:[%s6177_s30 + $0xc8] sm:$0xff]  ;;  %v5815_v20 = vld [vmem:[%s6177_s30 + $0xd0] sm:$0xff]  ;;  %3325 = vmatpush1.msra.mxu0 %v3000_v61 }
 0x1cd   : > { %v1142_v54 = vpop.f32.mrf.mxu0  ;;  %v1415_v10 = vpop.f32.mrf.mxu1  ;;  %3326 = vmatprep.subr.mxu0 %v2992_v25  ;;  %v2965_v25 = vld [vmem:[#allocation8 + $0x210] sm:$0xff] }
 0x1ce   : > { %3327 = vmatpush1.msra.mxu0 %v2991_v46  ;;  %v5819_v46 = vld [vmem:[%s6177_s30 + $0xf0] sm:$0xff] }
 0x1cf   : > { %v1145_v58 = vpop.f32.mrf.mxu0  ;;  %v1418_v55 = vpop.f32.mrf.mxu1  ;;  %5615 = vmatmul.mubr.f32.gmra.mxu0 %v5814_v0  ;;  %v5817_v0 = vld [vmem:[%s6177_s30 + $0xe0] sm:$0xff]  ;;  %3328 = vmatprep.subr.mxu0 %v2983_v9 }
 0x1d0   : > { %5617 = vmatprep.mubr.f32.mxu0 %v5815_v20  ;;  %v5816_v58 = vld [vmem:[%s6177_s30 + $0xd8] sm:$0xff] }
 0x1d1   : > { %v1146_v24 = vpop.f32.mrf.mxu0  ;;  %v1419_v37 = vpop.f32.mrf.mxu1  ;;  %v2982_v55 = vld [vmem:[#allocation8 + $0x298] sm:$0xff] }
 0x1d2   : > { %3329 = vmatpush1.msra.mxu0 %v2982_v55  ;;  %v2909_v24 = vld [vmem:[#allocation8 + $0x50] sm:$0xff]  ;;  %v2955_v55 = vld [vmem:[#allocation8 + $0x1c0] sm:$0xff] }
 0x1d3   : > { %v1149_v54 = vpop.f32.mrf.mxu0  ;;  %v1422_v10 = vpop.f32.mrf.mxu1  ;;  %5618 = vmatmul.mubr.f32.gmra.mxu0 %v5816_v58  ;;  %v5818_v58 = vld [vmem:[%s6177_s30 + $0xe8] sm:$0xff]  ;;  %3330 = vmatprep.subr.mxu0 %v2974_v30  ;;  %v5820_v30 = vld [vmem:[%s6177_s30 + $0xf8] sm:$0xff] }
 0x1d4   : > { %v6950_v35 = vadd.f32 %v6544_v63, %v1149_v54  ;;  %5620 = vmatprep.mubr.f32.mxu0 %v5817_v0  ;;  %v2964_v63 = vld [vmem:[#allocation8 + $0x208] sm:$0xff]  ;;  %3331 = vmatpush1.msra.mxu0 %v2973_v12  ;;  %v9608_v12 = vmov 0.0  }
 0x1d5   : > { %v6953_v20 = vpop.f32.mrf.mxu0  ;;  %v1423_v61 = vpop.f32.mrf.mxu1  ;;  %v2956_v0 = vld [vmem:[#allocation8 + $0x1c8] sm:$0xff]  ;;  %3332 = vmatprep.subr.mxu0 %v2965_v25  ;;  %3071 = vmatprep.subr.mxu1 %v2909_v24 }
 0x1d6   : > { %9605 = vst [vmem:[#allocation18_spill] sm:$0xff] %v6950_v35  ;;  %3333 = vmatpush1.msra.mxu0 %v2964_v63  ;;  %v2908_v24 = vld [vmem:[#allocation8 + $0x48] sm:$0xff]  ;;  %v2937_v63 = vld [vmem:[#allocation8 + $0x130] sm:$0xff] }
 0x1d7   : > { %v1155_v37 = vpop.f32.mrf.mxu0  ;;  %v1426_v10 = vpop.f32.mrf.mxu1  ;;  %5621 = vmatmul.mubr.f32.gmra.mxu0 %v5818_v58  ;;  %3334 = vmatprep.subr.mxu0 %v2956_v0 }
 0x1d8   : > { %v6957_v54 = vadd.f32 %v6540_v2, %v1155_v37  ;;  %5623 = vmatprep.mubr.f32.mxu0 %v5819_v46  ;;  %v2947_v10 = vld [vmem:[#allocation8 + $0x180] sm:$0xff]  ;;  %v2946_v2 = vld [vmem:[#allocation8 + $0x178] sm:$0xff]  ;;  %3335 = vmatpush1.msra.mxu0 %v2955_v55 }
 0x1d9   : > { %v6960_v61 = vpop.f32.mrf.mxu0  ;;  %v1427_v9 = vpop.f32.mrf.mxu1  ;;  %v2938_v46 = vld [vmem:[#allocation8 + $0x138] sm:$0xff]  ;;  %3336 = vmatprep.subr.mxu0 %v2947_v10  ;;  %3072 = vmatpush1.msra.mxu1 %v2908_v24 }
 0x1da   : > { %9606 = vst [vmem:[#allocation19_spill] sm:$0xff] %v6957_v54  ;;  %3337 = vmatpush1.msra.mxu0 %v2946_v2  ;;  %v2929_v54 = vld [vmem:[#allocation8 + $0xf0] sm:$0xff]  ;;  %v2919_v2 = vld [vmem:[#allocation8 + $0xa0] sm:$0xff] }
 0x1db   : > { %v1161_v3 = vpop.f32.mrf.mxu0  ;;  %v6962_v58 = vpop.f32.mrf.mxu1  ;;  %5624 = vmatmul.mubr.f32.gmra.mxu0 %v5820_v30  ;;  %v2900_v30 = vld [vmem:[#allocation8 + $0x8] sm:$0xff]  ;;  %3338 = vmatprep.subr.mxu0 %v2938_v46 }
 0x1dc   : > { %v6966_v37 = vadd.f32 %v6574_v48, %v1161_v3  ;;  %5626 = vmatprep.mubr.f32.mxu0 %v9608_v12  ;;  %v2928_v48 = vld [vmem:[#allocation8 + $0xe8] sm:$0xff]  ;;  %v2899_v3 = vld [vmem:[#allocation8] sm:$0xff]  ;;  %3339 = vmatpush1.msra.mxu0 %v2937_v63 }
 0x1dd   : > { %v6969_v9 = vpop.f32.mrf.mxu0  ;;  %v6971_v25 = vpop.f32.mrf.mxu1  ;;  %3073 = vmatprep.subr.mxu1 %v2900_v30  ;;  %3340 = vmatprep.subr.mxu0 %v2929_v54  ;;  %v2902_v30 = vld [vmem:[#allocation8 + $0x18] sm:$0xff] }
 0x1de   : > { %9607 = vst [vmem:[#allocation20_spill] sm:$0xff] %v6966_v37  ;;  %9609 = vst [vmem:[#allocation21_spill] sm:$0xff] %v6971_v25  ;;  %v2920_v25 = vld [vmem:[#allocation8 + $0xa8] sm:$0xff]  ;;  %3074 = vmatpush1.msra.mxu1 %v2899_v3  ;;  %3341 = vmatpush1.msra.mxu0 %v2928_v48  ;;  %v2911_v37 = vld [vmem:[#allocation8 + $0x60] sm:$0xff] }
 0x1df   : > { %v1167_v0 = vpop.f32.mrf.mxu0  ;;  %v6973_v23 = vpop.f32.mrf.mxu1  ;;  %5627 = vmatmul.mubr.f32.gmra.mxu0 %v9608_v12  ;;  %3108 = vmatmul.mubr.f32.vlgmr.msra.gmra.mxu1 %v9608_v12  ;;  %v2901_v48 = vld [vmem:[#allocation8 + $0x10] sm:$0xff] }
 0x1e0   : > { %v6977_v55 = vadd.f32 %v6570_v38, %v1167_v0  ;;  %3342 = vmatprep.subr.mxu0 %v2920_v25  ;;  %v2910_v38 = vld [vmem:[#allocation8 + $0x58] sm:$0xff]  ;;  %3380 = vmatprep.mubr.f32.mxu0 %v9608_v12 }
 0x1e1   : > { %v6979_v10 = vpop.f32.mrf.mxu0  ;;  %v6981_v24 = vpop.f32.mrf.mxu1  ;;  %3343 = vmatpush1.msra.mxu0 %v2919_v2  ;;  %3113 = vmatprep.mubr.f32.mxu1 %v9608_v12 }
 0x1e2   : > { %9610 = vst [vmem:[#allocation22_spill] sm:$0xff] %v6977_v55  ;;  %9611 = vst [vmem:[#allocation23_spill] sm:$0xff] %v6981_v24  ;;  %3344 = vmatprep.subr.mxu0 %v2911_v37 }
 0x1e3   : > { %v1173_v46 = vpop.f32.mrf.mxu0  ;;  %v6984_v35 = vpop.f32.mrf.mxu1  ;;  %3345 = vmatpush1.msra.mxu0 %v2910_v38  ;;  %3114 = vmatmul.mubr.f32.gmra.mxu1 %v9608_v12 }
 0x1e4   : > { %v6988_v63 = vadd.f32 %v6604_v45, %v1173_v46  ;;  %3346 = vmatprep.subr.mxu0 %v2902_v30  ;;  %3119 = vmatprep.mubr.f32.mxu1 %v9608_v12 }
 0x1e5   : > { %v6990_v0 = vpop.f32.mrf.mxu0  ;;  %v6992_v54 = vpop.f32.mrf.mxu1  ;;  %3347 = vmatpush1.msra.mxu0 %v2901_v48 }
 0x1e6   : > { %9612 = vst [vmem:[#allocation24_spill] sm:$0xff] %v6988_v63  ;;  %9613 = vst [vmem:[#allocation25_spill] sm:$0xff] %v6992_v54  ;;  %3381 = vmatmul.mubr.f32.vlgmr.msra.gmra.mxu0 %v9608_v12  ;;  %v3039_v54 = vld [vmem:[#allocation8 + $0x460] sm:$0xff] }
 0x1e7   : > { %v1179_v25 = vpop.f32.mrf.mxu0  ;;  %v6996_v3 = vpop.f32.mrf.mxu1  ;;  %3385 = vmatprep.mubr.f32.mxu0 %v9608_v12  ;;  %3589 = vmatprep.subr.mxu1 %v3039_v54 }
 0x1e8   : > { %v7000_v45 = vadd.f32 %v6600_v19, %v1179_v25 }
 0x1e9   : > { %v7002_v2 = vpop.f32.mrf.mxu0  ;;  %v7004_v46 = vpop.f32.mrf.mxu1 }
 0x1ea   : > { %9614 = vst [vmem:[#allocation26_spill] sm:$0xff] %v7000_v45  ;;  %9615 = vst [vmem:[#allocation27_spill] sm:$0xff] %v7004_v46  ;;  %3386 = vmatmul.mubr.f32.gmra.mxu0 %v9608_v12  ;;  %v3038_v46 = vld [vmem:[#allocation8 + $0x458] sm:$0xff] }
 0x1eb   : > { %v1185_v37 = vpop.f32.mrf.mxu0  ;;  %v7008_v38 = vpop.f32.mrf.mxu1  ;;  %3390 = vmatprep.mubr.f32.mxu0 %v9608_v12  ;;  %3590 = vmatpush1.msra.mxu1 %v3038_v46 }
 0x1ec   : > { %v7011_v30 = vadd.f32 %v6634_v4, %v1185_v37 }
 0x1ed   : > { %v7013_v63 = vpop.f32.mrf.mxu0  ;;  %v7015_v19 = vpop.f32.mrf.mxu1 }
 0x1ee   : > { %9616 = vst [vmem:[#allocation28_spill] sm:$0xff] %v7011_v30  ;;  %9617 = vst [vmem:[#allocation29_spill] sm:$0xff] %v7013_v63 }
 0x1ef   : > { %9618 = vst [vmem:[#allocation30_spill] sm:$0xff] %v7015_v19  ;;  %v1191_v48 = vpop.f32.mrf.mxu0  ;;  %v7019_v25 = vpop.f32.mrf.mxu1 }
 0x1f0   : > { %v7022_v45 = vadd.f32 %v6630_v29, %v1191_v48  ;;  %v3030_v29 = vld [vmem:[#allocation8 + $0x418] sm:$0xff]  ;;  %v3029_v48 = vld [vmem:[#allocation8 + $0x410] sm:$0xff] }
 0x1f1   : > { %v7024_v24 = vpop.f32.mrf.mxu0  ;;  %v7026_v4 = vpop.f32.mrf.mxu1  ;;  %3591 = vmatprep.subr.mxu1 %v3030_v29  ;;  %v2127_v29 = vrot.slane %v6716_v60, 7 }
 0x1f2   : > { %9619 = vst [vmem:[#allocation31_spill] sm:$0xff] %v7022_v45  ;;  %9620 = vst [vmem:[#allocation32_spill] sm:$0xff] %v7026_v4  ;;  %3592 = vmatpush1.msra.mxu1 %v3029_v48 }
 0x1f3   : > { %v1197_v54 = vpop.f32.mrf.mxu0  ;;  %v7028_v37 = vpop.f32.mrf.mxu1 }
 0x1f4   : > { %9621 = vst [vmem:[#allocation33_spill] sm:$0xff] %v7028_v37  ;;  %v7031_v19 = vadd.f32 %v6664_v52, %v1197_v54 }
 0x1f5   : > { %v7033_v30 = vpop.f32.mrf.mxu0  ;;  %v7035_v12 = vpop.f32.mrf.mxu1 }
 0x1f6   : > { %9622 = vst [vmem:[#allocation34_spill] sm:$0xff] %v7031_v19  ;;  %9623 = vst [vmem:[#allocation35_spill] sm:$0xff] %v7033_v30 }
 0x1f7   : > { %9624 = vst [vmem:[#allocation36_spill] sm:$0xff] %v7035_v12  ;;  %v1203_v63 = vpop.f32.mrf.mxu0  ;;  %v7037_v55 = vpop.f32.mrf.mxu1 }
 0x1f8   : > { %9625 = vst [vmem:[#allocation37_spill] sm:$0xff] %v7037_v55  ;;  %v7040_v46 = vadd.f32 %v6660_v31, %v1203_v63  ;;  %v3021_v31 = vld [vmem:[#allocation8 + $0x3d0] sm:$0xff]  ;;  %v3020_v63 = vld [vmem:[#allocation8 + $0x3c8] sm:$0xff] }
 0x1f9   : > { %v7042_v45 = vpop.f32.mrf.mxu0  ;;  %v7044_v4 = vpop.f32.mrf.mxu1  ;;  %3593 = vmatprep.subr.mxu1 %v3021_v31 }
 0x1fa   : > { %9626 = vst [vmem:[#allocation38_spill] sm:$0xff] %v7040_v46  ;;  %9627 = vst [vmem:[#allocation39_spill] sm:$0xff] %v7044_v4  ;;  %v2143_v4 = vrot.slane %v6734_v15, 7  ;;  %3594 = vmatpush1.msra.mxu1 %v3020_v63  ;;  %v3012_v63 = vld [vmem:[#allocation8 + $0x388] sm:$0xff] }
 0x1fb   : > { %v1209_v52 = vpop.f32.mrf.mxu0  ;;  %v7046_v54 = vpop.f32.mrf.mxu1  ;;  %3595 = vmatprep.subr.mxu1 %v3012_v63 }
 0x1fc   : > { %v7049_v19 = vadd.f32 %v6694_v47, %v1209_v52  ;;  %v2175_v60 = vsel %vm1894_vm1, %v2143_v4, %v2127_v29 }
 0x1fd   : > { %v7051_v12 = vpop.f32.mrf.mxu0  ;;  %v7053_v55 = vpop.f32.mrf.mxu1  ;;  %v2198_v31 = vsel %vm280_vm0, %v2175_v60, 0.0  ;;  %v2159_v60 = vsel %vm1894_vm1, %v2127_v29, %v2143_v4  ;;  %v2129_v4 = vrot.slane %v6782_v6, 7  ;;  %v2145_v29 = vrot.slane %v6790_v26, 7 }
 0x1fe   : > { %9628 = vst [vmem:[#allocation40_spill] sm:$0xff] %v7049_v19  ;;  %9629 = vst [vmem:[#allocation41_spill] sm:$0xff] %v7051_v12  ;;  %v2231_v63 = vadd.f32 %v2159_v60, %v6714_v59 }
 0x1ff   : > { %9630 = vst [vmem:[#allocation42_spill] sm:$0xff] %v7053_v55  ;;  %v1215_v37 = vpop.f32.mrf.mxu0  ;;  %v7055_v30 = vpop.f32.mrf.mxu1  ;;  %v2177_v6 = vsel %vm1894_vm1, %v2145_v29, %v2129_v4 }
 0x200   : > { %v7060_v48 = vadd.f32 %v6690_v34, %v1215_v37 }
 0x201   : > { %v7062_v46 = vpop.f32.mrf.mxu0  ;;  %v7064_v47 = vpop.f32.mrf.mxu1 }
 0x202   : > { %9631 = vst [vmem:[#allocation43_spill] sm:$0xff] %v7060_v48  ;;  %9632 = vst [vmem:[#allocation44_spill] sm:$0xff] %v7064_v47  ;;  %v3011_v47 = vld [vmem:[#allocation8 + $0x380] sm:$0xff]  ;;  %v2128_v48 = vrot.slane %v6754_v18, 7 }
 0x203   : > { %v1221_v52 = vpop.f32.mrf.mxu0  ;;  %v7066_v55 = vpop.f32.mrf.mxu1  ;;  %3596 = vmatpush1.msra.mxu1 %v3011_v47 }
 0x204   : > { %9633 = vst [vmem:[#allocation45_spill] sm:$0xff] %v7066_v55  ;;  %v7069_v19 = vadd.f32 %v6730_v8, %v1221_v52  ;;  %v2144_v8 = vrot.slane %v6762_v51, 7 }
 0x205   : > { %v7073_v12 = vpop.f32.mrf.mxu0  ;;  %v7075_v15 = vpop.f32.mrf.mxu1 }
 0x206   : > { %9634 = vst [vmem:[#allocation46_spill] sm:$0xff] %v7069_v19  ;;  %9635 = vst [vmem:[#allocation47_spill] sm:$0xff] %v7073_v12 }
 0x207   : > { %9636 = vst [vmem:[#allocation48_spill] sm:$0xff] %v7075_v15  ;;  %v1227_v34 = vpop.f32.mrf.mxu0  ;;  %v7077_v37 = vpop.f32.mrf.mxu1  ;;  %v2230_v15 = vadd.f32 %v2198_v31, %v6726_v1  ;;  %v3003_v31 = vld [vmem:[#allocation8 + $0x340] sm:$0xff] }
 0x208   : > { %9637 = vst [vmem:[#allocation49_spill] sm:$0xff] %v7077_v37  ;;  %v7084_v52 = vadd.f32 %v6724_v62, %v1227_v34  ;;  %v2176_v62 = vsel %vm1894_vm1, %v2144_v8, %v2128_v48  ;;  %3597 = vmatprep.subr.mxu1 %v3003_v31  ;;  %v2202_v31 = vsel %vm280_vm0, %v2177_v6, 0.0  ;;  %v2993_v6 = vld [vmem:[#allocation8 + $0x2f0] sm:$0xff] }
 0x209   : > { %v7086_v19 = vpop.f32.mrf.mxu0  ;;  %v7088_v12 = vpop.f32.mrf.mxu1  ;;  %v2200_v1 = vsel %vm280_vm0, %v2176_v62, 0.0  ;;  %v2160_v62 = vsel %vm1894_vm1, %v2128_v48, %v2144_v8  ;;  %v2130_v48 = vrot.slane %v6810_v33, 7  ;;  %v2146_v8 = vrot.slane %v6817_v32, 7 }
 0x20a   : > { %9638 = vst [vmem:[#allocation50_spill] sm:$0xff] %v7084_v52  ;;  %9639 = vst [vmem:[#allocation51_spill] sm:$0xff] %v7088_v12  ;;  %v2232_v59 = vadd.f32 %v2200_v1, %v6756_v27 }
 0x20b   : > { %v1233_v37 = vpop.f32.mrf.mxu0  ;;  %v7091_v55 = vpop.f32.mrf.mxu1  ;;  %v2178_v33 = vsel %vm1894_vm1, %v2146_v8, %v2130_v48 }
 0x20c   : > { %v7095_v18 = vadd.f32 %v2230_v15, %v1233_v37 }
 0x20d   : > { %v7099_v51 = vpop.f32.mrf.mxu0  ;;  %v7101_v34 = vpop.f32.mrf.mxu1 }
 0x20e   : > { %9640 = vst [vmem:[#allocation52_spill] sm:$0xff] %v7095_v18  ;;  %9641 = vst [vmem:[#allocation53_spill] sm:$0xff] %v7099_v51  ;;  %v3002_v51 = vld [vmem:[#allocation8 + $0x338] sm:$0xff] }
 0x20f   : > { %9642 = vst [vmem:[#allocation54_spill] sm:$0xff] %v7101_v34  ;;  %v1239_v47 = vpop.f32.mrf.mxu0  ;;  %v7104_v12 = vpop.f32.mrf.mxu1  ;;  %3598 = vmatpush1.msra.mxu1 %v3002_v51 }
 0x210   : > { %v7110_v15 = vadd.f32 %v2231_v63, %v1239_v47  ;;  %v2233_v47 = vadd.f32 %v2160_v62, %v6752_v13  ;;  %v2161_v62 = vsel %vm1894_vm1, %v2129_v4, %v2145_v29  ;;  %v2204_v4 = vsel %vm280_vm0, %v2178_v33, 0.0  ;;  %v2984_v33 = vld [vmem:[#allocation8 + $0x2a8] sm:$0xff] }
 0x211   : > { %v7112_v37 = vpop.f32.mrf.mxu0  ;;  %v7114_v18 = vpop.f32.mrf.mxu1  ;;  %v2147_v29 = vrot.slane %v6842_v56, 7  ;;  %v2132_v56 = vrot.slane %v6860_v16, 7  ;;  %v2975_v16 = vld [vmem:[#allocation8 + $0x260] sm:$0xff] }
 0x212   : > { %9643 = vst [vmem:[#allocation55_spill] sm:$0xff] %v7110_v15  ;;  %9644 = vst [vmem:[#allocation56_spill] sm:$0xff] %v7114_v18  ;;  %v2994_v15 = vld [vmem:[#allocation8 + $0x2f8] sm:$0xff] }
 0x213   : > { %v1245_v60 = vpop.f32.mrf.mxu0  ;;  %v7117_v34 = vpop.f32.mrf.mxu1  ;;  %3599 = vmatprep.subr.mxu1 %v2994_v15 }
 0x214   : > { %v7121_v52 = vadd.f32 %v2232_v59, %v1245_v60  ;;  %3600 = vmatpush1.msra.mxu1 %v2993_v6  ;;  %v2236_v6 = vadd.f32 %v2204_v4, %v6812_v50 }
 0x215   : > { %v7125_v26 = vpop.f32.mrf.mxu0  ;;  %v7127_v63 = vpop.f32.mrf.mxu1 }
 0x216   : > { %9645 = vst [vmem:[#allocation57_spill] sm:$0xff] %v7121_v52  ;;  %9646 = vst [vmem:[#allocation58_spill] sm:$0xff] %v7127_v63  ;;  %v2234_v63 = vadd.f32 %v2202_v31, %v6784_v14  ;;  %v2235_v14 = vadd.f32 %v2161_v62, %v6780_v17  ;;  %v2162_v62 = vsel %vm1894_vm1, %v2130_v48, %v2146_v8 }
 0x217   : > { %v1251_v27 = vpop.f32.mrf.mxu0  ;;  %v7130_v1 = vpop.f32.mrf.mxu1  ;;  %v2237_v4 = vadd.f32 %v2162_v62, %v6808_v28  ;;  %v2133_v28 = vrot.slane %v6884_v7, 7  ;;  %v2149_v62 = vrot.slane %v6890_v36, 7  ;;  %v2150_v7 = vrot.slane %v6914_v44, 7 }
 0x218   : > { %v7136_v59 = vadd.f32 %v2233_v47, %v1251_v27 }
 0x219   : > { %v7138_v60 = vpop.f32.mrf.mxu0  ;;  %v7140_v51 = vpop.f32.mrf.mxu1 }
 0x21a   : > { %9647 = vst [vmem:[#allocation59_spill] sm:$0xff] %v7136_v59  ;;  %9648 = vst [vmem:[#allocation60_spill] sm:$0xff] %v7140_v51 }
 0x21b   : > { %v1257_v52 = vpop.f32.mrf.mxu0  ;;  %v7143_v13 = vpop.f32.mrf.mxu1 }
 0x21c   : > { %v7147_v18 = vadd.f32 %v2234_v63, %v1257_v52  ;;  %v2131_v52 = vrot.slane %v6836_v22, 7 }
 0x21d   : > { %v7151_v32 = vpop.f32.mrf.mxu0  ;;  %v7153_v47 = vpop.f32.mrf.mxu1 }
 0x21e   : > { %9649 = vst [vmem:[#allocation61_spill] sm:$0xff] %v7147_v18  ;;  %9650 = vst [vmem:[#allocation62_spill] sm:$0xff] %v7153_v47  ;;  %v2985_v18 = vld [vmem:[#allocation8 + $0x2b0] sm:$0xff]  ;;  %v2179_v22 = vsel %vm1894_vm1, %v2147_v29, %v2131_v52 }
 0x21f   : > { %v1263_v27 = vpop.f32.mrf.mxu0  ;;  %v7156_v31 = vpop.f32.mrf.mxu1  ;;  %3601 = vmatprep.subr.mxu1 %v2985_v18 }
 0x220   : > { %v7162_v63 = vadd.f32 %v2235_v14, %v1263_v27  ;;  %v2148_v14 = vrot.slane %v6866_v40, 7  ;;  %3602 = vmatpush1.msra.mxu1 %v2984_v33 }
 0x221   : > { %v7164_v15 = vpop.f32.mrf.mxu0  ;;  %v7166_v51 = vpop.f32.mrf.mxu1 }
 0x222   : > { %9651 = vst [vmem:[#allocation63_spill] sm:$0xff] %v7162_v63  ;;  %9652 = vst [vmem:[#allocation64_spill] sm:$0xff] %v7166_v51  ;;  %v2180_v33 = vsel %vm1894_vm1, %v2148_v14, %v2132_v56  ;;  %v2164_v44 = vsel %vm1894_vm1, %v2132_v56, %v2148_v14  ;;  %v2151_v56 = vrot.slane %v6938_v11, 7 }
 0x223   : > { %v1269_v47 = vpop.f32.mrf.mxu0  ;;  %v7169_v17 = vpop.f32.mrf.mxu1 }
 0x224   : > { %v7173_v59 = vadd.f32 %v2236_v6, %v1269_v47  ;;  %v2206_v47 = vsel %vm280_vm0, %v2179_v22, 0.0  ;;  %v2976_v6 = vld [vmem:[#allocation8 + $0x268] sm:$0xff] }
 0x225   : > { %v7179_v27 = vpop.f32.mrf.mxu0  ;;  %v7181_v50 = vpop.f32.mrf.mxu1  ;;  %3603 = vmatprep.subr.mxu1 %v2976_v6  ;;  %v2208_v6 = vsel %vm280_vm0, %v2180_v33, 0.0 }
 0x226   : > { %9653 = vst [vmem:[#allocation65_spill] sm:$0xff] %v7173_v59  ;;  %9654 = vst [vmem:[#allocation66_spill] sm:$0xff] %v7181_v50  ;;  %3604 = vmatpush1.msra.mxu1 %v2975_v16  ;;  %v2238_v50 = vadd.f32 %v2206_v47, %v6838_v49  ;;  %v2134_v16 = vrot.slane %v6908_v57, 7  ;;  %v3040_v49 = vld [vmem:[#allocation8 + $0x468] sm:$0xff]  ;;  %v2296_v47 = vrot.slane %v6960_v61, 1  ;;  %v2240_v57 = vadd.f32 %v2208_v6, %v6862_v5  ;;  %v2967_v61 = vld [vmem:[#allocation8 + $0x220] sm:$0xff] }
 0x227   : > { %v1275_v48 = vpop.f32.mrf.mxu0  ;;  %v7184_v8 = vpop.f32.mrf.mxu1  ;;  %3605 = vmatprep.subr.mxu1 %v2967_v61  ;;  %v2425_v6 = vrot.slane %v6996_v3, 7  ;;  %v2298_v3 = vrot.slane %v7002_v2, 1  ;;  %v3032_v61 = vld [vmem:[#allocation8 + $0x428] sm:$0xff] }
 0x228   : > { %v7188_v51 = vadd.f32 %v2237_v4, %v1275_v48  ;;  %v2163_v4 = vsel %vm1894_vm1, %v2131_v52, %v2147_v29  ;;  %v2181_v29 = vsel %vm1894_vm1, %v2149_v62, %v2133_v28 }
 0x229   : > { %v7190_v18 = vpop.f32.mrf.mxu0  ;;  %v7192_v40 = vpop.f32.mrf.mxu1  ;;  %v2239_v52 = vadd.f32 %v2163_v4, %v6834_v21  ;;  %v2165_v21 = vsel %vm1894_vm1, %v2133_v28, %v2149_v62  ;;  %v2966_v4 = vld [vmem:[#allocation8 + $0x218] sm:$0xff]  ;;  %v2210_v5 = vsel %vm280_vm0, %v2181_v29, 0.0  ;;  %v2409_v62 = vrot.slane %v6984_v35, 7 }
 0x22a   : > { %9655 = vst [vmem:[#allocation67_spill] sm:$0xff] %v7188_v51  ;;  %9656 = vst [vmem:[#allocation68_spill] sm:$0xff] %v7192_v40  ;;  %v3041_v40 = vld [vmem:[#allocation8 + $0x470] sm:$0xff]  ;;  %3606 = vmatpush1.msra.mxu1 %v2966_v4 }
 0x22b   : > { %v1281_v22 = vpop.f32.mrf.mxu0  ;;  %v7199_v59 = vpop.f32.mrf.mxu1  ;;  %3862 = vmatprep.subr.mxu0 %v3041_v40  ;;  %v2297_v40 = vrot.slane %v6979_v10, 1  ;;  %v2135_v10 = vrot.slane %v6932_v39, 7  ;;  %v2166_v39 = vsel %vm1894_vm1, %v2134_v16, %v2150_v7 }
 0x22c   : > { %v7203_v48 = vadd.f32 %v2238_v50, %v1281_v22  ;;  %3863 = vmatpush1.msra.mxu0 %v3040_v49  ;;  %v2280_v22 = vrot.slane %v6953_v20, 1  ;;  %v2408_v49 = vrot.slane %v6962_v58, 7  ;;  %v2182_v20 = vsel %vm1894_vm1, %v2150_v7, %v2134_v16  ;;  %v9662_v16 = vld [vmem:[#allocation13_spill] sm:$0xff] }
 0x22d   : > { %v7209_v51 = vpop.f32.mrf.mxu0  ;;  %v7211_v36 = vpop.f32.mrf.mxu1  ;;  %v2281_v58 = vrot.slane %v6969_v9, 1  ;;  %v2241_v9 = vadd.f32 %v2164_v44, %v6858_v41  ;;  %v2242_v7 = vadd.f32 %v2210_v5, %v9662_v16  ;;  %v2212_v41 = vsel %vm280_vm0, %v2182_v20, 0.0  ;;  %3864 = vmatprep.subr.mxu0 %v3032_v61 }
 0x22e   : > { %9657 = vst [vmem:[#allocation69_spill] sm:$0xff] %v7203_v48  ;;  %9658 = vst [vmem:[#allocation70_spill] sm:$0xff] %v7211_v36  ;;  %v2424_v48 = vrot.slane %v6973_v23, 7  ;;  %v2328_v14 = vsel %vm2023_vm2, %v2296_v47, %v2280_v22  ;;  %v2312_v23 = vsel %vm2023_vm2, %v2280_v22, %v2296_v47  ;;  %v2282_v5 = vrot.slane %v6990_v0, 1  ;;  %v2957_v0 = vld [vmem:[#allocation8 + $0x1d0] sm:$0xff] }
 0x22f   : > { %v1287_v50 = vpop.f32.mrf.mxu0  ;;  %v7217_v33 = vpop.f32.mrf.mxu1  ;;  %v2329_v11 = vsel %vm2023_vm2, %v2297_v40, %v2281_v58  ;;  %v2345_v35 = vsel %vm283_vm3, %v2328_v14, 0.0  ;;  %v2457_v14 = vsel %vm1894_vm1, %v2425_v6, %v2409_v62 }
 0x230   : > { %v7224_v36 = vadd.f32 %v2239_v52, %v1287_v50  ;;  %v7255_v50 = vadd.f32 %v2165_v21, %v6882_v42  ;;  %v2456_v47 = vsel %vm1894_vm1, %v2424_v48, %v2408_v49  ;;  %v9664_v42 = vld [vmem:[#allocation14_spill] sm:$0xff]  ;;  %v2183_v21 = vsel %vm1894_vm1, %v2151_v56, %v2135_v10 }
 0x231   : > { %v7230_v63 = vpop.f32.mrf.mxu0  ;;  %v7241_v28 = vpop.f32.mrf.mxu1  ;;  %v7271_v44 = vadd.f32 %v2166_v39, %v9664_v42  ;;  %v2440_v2 = vsel %vm1894_vm1, %v2408_v49, %v2424_v48  ;;  %v2472_v20 = vsel %vm280_vm0, %v2456_v47, 0.0  ;;  %v2313_v39 = vsel %vm2023_vm2, %v2281_v58, %v2297_v40  ;;  %v3031_v48 = vld [vmem:[#allocation8 + $0x420] sm:$0xff]  ;;  %v2958_v49 = vld [vmem:[#allocation8 + $0x1d8] sm:$0xff] }
 0x232   : > { %9659 = vst [vmem:[#allocation71_spill] sm:$0xff] %v7224_v36  ;;  %9660 = vst [vmem:[#allocation72_spill] sm:$0xff] %v7241_v28  ;;  %v2410_v28 = vrot.slane %v7008_v38, 7  ;;  %v2426_v47 = vrot.slane %v7019_v25, 7  ;;  %3865 = vmatpush1.msra.mxu0 %v3031_v48  ;;  %3607 = vmatprep.subr.mxu1 %v2958_v49  ;;  %v2474_v58 = vsel %vm280_vm0, %v2457_v14, 0.0  ;;  %v9669_v38 = vld [vmem:[#allocation20_spill] sm:$0xff] }
 0x233   : > { %v1293_v52 = vpop.f32.mrf.mxu0  ;;  %3608 = vmatpush1.msra.mxu1 %v2957_v0  ;;  %v2299_v25 = vrot.slane %v7024_v24, 1  ;;  %v9671_v48 = vld [vmem:[#allocation15_spill] sm:$0xff]  ;;  %v9675_v0 = vld [vmem:[#allocation16_spill] sm:$0xff] }
 0x234   : > { %v7251_v29 = vadd.f32 %v2240_v57, %v1293_v52  ;;  %v9663_v57 = vld [vmem:[#allocation18_spill] sm:$0xff]  ;;  %v7266_v52 = vpop.f32.mrf.mxu1  ;;  %v2244_v49 = vadd.f32 %v2212_v41, %v9671_v48  ;;  %v2458_v24 = vsel %vm1894_vm1, %v2426_v47, %v2410_v28  ;;  %v9674_v41 = vld [vmem:[#allocation17_spill] sm:$0xff]  ;;  %v9679_v48 = vld [vmem:[#allocation27_spill] sm:$0xff] }
 0x235   : > { %v7262_v22 = vpop.f32.mrf.mxu0  ;;  %v2376_v4 = vadd.f32 %v2312_v23, %v9663_v57  ;;  %v2347_v23 = vsel %vm283_vm3, %v2329_v11, 0.0  ;;  %v9665_v57 = vld [vmem:[#allocation19_spill] sm:$0xff]  ;;  %v2441_v11 = vsel %vm1894_vm1, %v2409_v62, %v2425_v6  ;;  %v2378_v6 = vadd.f32 %v2313_v39, %v9669_v38 }
 0x236   : > { %9661 = vst [vmem:[#allocation73_spill] sm:$0xff] %v7251_v29  ;;  %v2377_v61 = vadd.f32 %v2345_v35, %v9665_v57  ;;  %v2330_v29 = vsel %vm2023_vm2, %v2298_v3, %v2282_v5  ;;  %v2167_v57 = vsel %vm1894_vm1, %v2135_v10, %v2151_v56  ;;  %v2314_v10 = vsel %vm2023_vm2, %v2282_v5, %v2298_v3  ;;  %v9672_v56 = vld [vmem:[#allocation29_spill] sm:$0xff] }
 0x237   : > { %v1299_v16 = vpop.f32.mrf.mxu0  ;;  %v2504_v62 = vadd.f32 %v2472_v20, %v2376_v4  ;;  %v2349_v14 = vsel %vm283_vm3, %v2330_v29, 0.0  ;;  %v2283_v4 = vrot.slane %v9672_v56, 1  ;;  %v2442_v29 = vsel %vm1894_vm1, %v2410_v28, %v2426_v47  ;;  %v9676_v5 = vld [vmem:[#allocation21_spill] sm:$0xff]  ;;  %v9678_v28 = vld [vmem:[#allocation24_spill] sm:$0xff] }
 0x238   : > { %v7287_v42 = vadd.f32 %v2241_v9, %v1299_v16  ;;  %v2505_v40 = vadd.f32 %v2440_v2, %v2377_v61  ;;  %v9667_v9 = vld [vmem:[#allocation22_spill] sm:$0xff]  ;;  %v7300_v16 = vpop.f32.mrf.mxu1  ;;  %v2214_v2 = vsel %vm280_vm0, %v2183_v21, 0.0  ;;  %v9673_v21 = vld [vmem:[#allocation23_spill] sm:$0xff]  ;;  %v7331_v3 = vadd.f32 %v2167_v57, %v9675_v0  ;;  %v9682_v0 = vld [vmem:[#allocation25_spill] sm:$0xff] }
 0x239   : > { %v7295_v36 = vpop.f32.mrf.mxu0  ;;  %v2379_v35 = vadd.f32 %v2347_v23, %v9667_v9  ;;  %9668 = vst [vmem:[#allocation18_spill] sm:$0xff] %v7300_v16  ;;  %v2506_v9 = vadd.f32 %v2474_v58, %v2378_v6  ;;  %v2331_v58 = vsel %vm2023_vm2, %v2299_v25, %v2283_v4  ;;  %v2300_v38 = vrot.slane %v7042_v45, 1 }
 0x23a   : > { %9666 = vst [vmem:[#allocation13_spill] sm:$0xff] %v7287_v42  ;;  %v7321_v39 = vadd.f32 %v2505_v40, %v9673_v21  ;;  %v2380_v47 = vadd.f32 %v2314_v10, %v9678_v28  ;;  %v2476_v57 = vsel %vm280_vm0, %v2458_v24, 0.0  ;;  %v3022_v21 = vld [vmem:[#allocation8 + $0x3d8] sm:$0xff]  ;;  %v2315_v45 = vsel %vm2023_vm2, %v2283_v4, %v2299_v25  ;;  %v9683_v10 = vld [vmem:[#allocation35_spill] sm:$0xff]  ;;  %v2948_v24 = vld [vmem:[#allocation8 + $0x188] sm:$0xff] }
 0x23b   : > { %v1305_v42 = vpop.f32.mrf.mxu0  ;;  %v2507_v61 = vadd.f32 %v2441_v11, %v2379_v35  ;;  %v7334_v11 = vadd.f32 %v2504_v62, %v9676_v5  ;;  %v9677_v35 = vld [vmem:[#allocation26_spill] sm:$0xff]  ;;  %v3023_v62 = vld [vmem:[#allocation8 + $0x3e0] sm:$0xff]  ;;  %v7350_v5 = vadd.f32 %v2506_v9, %v9682_v0  ;;  %v2301_v9 = vrot.slane %v7062_v46, 1 }
 0x23c   : > { %v7310_v23 = vadd.f32 %v2242_v7, %v1305_v42  ;;  %v7325_v7 = vpop.f32.mrf.mxu1  ;;  %v7328_v42 = vadd.f32 %v2214_v2, %v9674_v41  ;;  %v2381_v40 = vadd.f32 %v2349_v14, %v9677_v35  ;;  %v2949_v41 = vld [vmem:[#allocation8 + $0x190] sm:$0xff]  ;;  %v2284_v35 = vrot.slane %v9683_v10, 1  ;;  %3866 = vmatprep.subr.mxu0 %v3023_v62  ;;  %v9684_v28 = vld [vmem:[#allocation33_spill] sm:$0xff] }
 0x23d   : > { %v7318_v20 = vpop.f32.mrf.mxu0  ;;  %v7342_v56 = vadd.f32 %v2507_v61, %v9679_v48  ;;  %3609 = vmatprep.subr.mxu1 %v2949_v41  ;;  %3867 = vmatpush1.msra.mxu0 %v3022_v21  ;;  %v2508_v25 = vadd.f32 %v2476_v57, %v2380_v47  ;;  %v9687_v41 = vld [vmem:[#allocation41_spill] sm:$0xff]  ;;  %v9694_v57 = vld [vmem:[#allocation31_spill] sm:$0xff] }
 0x23e   : > { %9670 = vst [vmem:[#allocation14_spill] sm:$0xff] %v7310_v23  ;;  %v2509_v14 = vadd.f32 %v2442_v29, %v2381_v40  ;;  %v7362_v0 = vpop.f32.mrf.mxu1  ;;  %3610 = vmatpush1.msra.mxu1 %v2948_v24  ;;  %v2332_v4 = vsel %vm2023_vm2, %v2300_v38, %v2284_v35  ;;  %v2412_v29 = vrot.slane %v7046_v54, 7  ;;  %v2428_v40 = vrot.slane %v7055_v30, 7  ;;  %v9692_v24 = vld [vmem:[#allocation32_spill] sm:$0xff] }
 0x23f   : > { %v1311_v6 = vpop.f32.mrf.mxu0  ;;  %9680 = vst [vmem:[#allocation19_spill] sm:$0xff] %v7342_v56  ;;  %9686 = vst [vmem:[#allocation20_spill] sm:$0xff] %v7362_v0  ;;  %v2285_v10 = vrot.slane %v9687_v41, 1  ;;  %v9691_v0 = vld [vmem:[#allocation28_spill] sm:$0xff]  ;;  %v2302_v54 = vrot.slane %v7086_v19, 1  ;;  %v2316_v41 = vsel %vm2023_vm2, %v2284_v35, %v2300_v38 }
 0x240   : > { %v7347_v2 = vadd.f32 %v7255_v50, %v1311_v6  ;;  %v2411_v50 = vrot.slane %v9684_v28, 7  ;;  %v9685_v6 = vld [vmem:[#allocation37_spill] sm:$0xff]  ;;  %v2382_v21 = vadd.f32 %v2315_v45, %v9691_v0  ;;  %v7375_v47 = vadd.f32 %v2509_v14, %v9692_v24  ;;  %v7389_v14 = vpop.f32.mrf.mxu1  ;;  %v3014_v24 = vld [vmem:[#allocation8 + $0x398] sm:$0xff] }
 0x241   : > { %v7355_v61 = vpop.f32.mrf.mxu0  ;;  %v2427_v48 = vrot.slane %v9685_v6, 7  ;;  %v9688_v28 = vld [vmem:[#allocation45_spill] sm:$0xff]  ;;  %v2333_v45 = vsel %vm2023_vm2, %v2301_v9, %v2285_v10  ;;  %v2317_v19 = vsel %vm2023_vm2, %v2285_v10, %v2301_v9  ;;  %v2353_v0 = vsel %vm283_vm3, %v2332_v4, 0.0  ;;  %3868 = vmatprep.subr.mxu0 %v3014_v24 }
 0x242   : > { %9681 = vst [vmem:[#allocation22_spill] sm:$0xff] %v7347_v2  ;;  %v2351_v2 = vsel %vm283_vm3, %v2331_v58, 0.0  ;;  %v2413_v6 = vrot.slane %v9688_v28, 7  ;;  %v9689_v58 = vld [vmem:[#allocation49_spill] sm:$0xff]  ;;  %9693 = vst [vmem:[#allocation29_spill] sm:$0xff] %v7375_v47  ;;  %v9701_v47 = vld [vmem:[#allocation40_spill] sm:$0xff] }
 0x243   : > { %v1317_v62 = vpop.f32.mrf.mxu0  ;;  %v2429_v23 = vrot.slane %v9689_v58, 7  ;;  %v2383_v16 = vadd.f32 %v2351_v2, %v9694_v57  ;;  %v2459_v30 = vsel %vm1894_vm1, %v2427_v48, %v2411_v50  ;;  %v2460_v2 = vsel %vm1894_vm1, %v2428_v40, %v2412_v29  ;;  %v3013_v57 = vld [vmem:[#allocation8 + $0x390] sm:$0xff] }
 0x244   : > { %v7371_v46 = vadd.f32 %v2244_v49, %v1317_v62  ;;  %v2443_v49 = vsel %vm1894_vm1, %v2411_v50, %v2427_v48  ;;  %v9696_v62 = vld [vmem:[#allocation47_spill] sm:$0xff]  ;;  %v2414_v50 = vrot.slane %v7091_v55, 7  ;;  %v2430_v48 = vrot.slane %v7104_v12, 7  ;;  %v2940_v12 = vld [vmem:[#allocation8 + $0x148] sm:$0xff]  ;;  %3869 = vmatpush1.msra.mxu0 %v3013_v57 }
 0x245   : > { %v7379_v56 = vpop.f32.mrf.mxu0  ;;  %v2286_v28 = vrot.slane %v9696_v62, 1  ;;  %v2461_v35 = vsel %vm1894_vm1, %v2429_v23, %v2413_v6  ;;  %v2478_v4 = vsel %vm280_vm0, %v2459_v30, 0.0  ;;  %v2355_v62 = vsel %vm283_vm3, %v2333_v45, 0.0  ;;  %v7421_v30 = vpop.f32.mrf.mxu1  ;;  %3611 = vmatprep.subr.mxu1 %v2940_v12  ;;  %v9702_v45 = vld [vmem:[#allocation38_spill] sm:$0xff] }
 0x246   : > { %9690 = vst [vmem:[#allocation15_spill] sm:$0xff] %v7371_v46  ;;  %9695 = vst [vmem:[#allocation23_spill] sm:$0xff] %v7379_v56  ;;  %v9698_v46 = vld [vmem:[#allocation30_spill] sm:$0xff]  ;;  %v2386_v56 = vadd.f32 %v2317_v19, %v9701_v47  ;;  %v2482_v24 = vsel %vm280_vm0, %v2461_v35, 0.0  ;;  %v2939_v47 = vld [vmem:[#allocation8 + $0x140] sm:$0xff]  ;;  %v2510_v19 = vadd.f32 %v2478_v4, %v2382_v21  ;;  %v2415_v4 = vrot.slane %v7117_v34, 7 }
 0x247   : > { %v1323_v38 = vpop.f32.mrf.mxu0  ;;  %v7406_v9 = vadd.f32 %v2508_v25, %v9698_v46  ;;  %v2334_v10 = vsel %vm2023_vm2, %v2302_v54, %v2286_v28  ;;  %v2480_v25 = vsel %vm280_vm0, %v2460_v2, 0.0  ;;  %v2444_v46 = vsel %vm1894_vm1, %v2412_v29, %v2428_v40  ;;  %3612 = vmatpush1.msra.mxu1 %v2939_v47  ;;  %v9704_v21 = vld [vmem:[#allocation50_spill] sm:$0xff]  ;;  %v9709_v34 = vld [vmem:[#allocation44_spill] sm:$0xff] }
 0x248   : > { %v7403_v58 = vadd.f32 %v7271_v44, %v1323_v38  ;;  %v9700_v44 = vld [vmem:[#allocation34_spill] sm:$0xff]  ;;  %v2462_v29 = vsel %vm1894_vm1, %v2430_v48, %v2414_v50  ;;  %v2357_v40 = vsel %vm283_vm3, %v2334_v10, 0.0  ;;  %v2318_v35 = vsel %vm2023_vm2, %v2286_v28, %v2302_v54 }
 0x249   : > { %9699 = vst [vmem:[#allocation16_spill] sm:$0xff] %v7406_v9  ;;  %v7414_v55 = vpop.f32.mrf.mxu0  ;;  %v2384_v38 = vadd.f32 %v2316_v41, %v9700_v44  ;;  %v2385_v9 = vadd.f32 %v2353_v0, %v9702_v45  ;;  %v2303_v44 = vrot.slane %v7112_v37, 1  ;;  %v2446_v10 = vsel %vm1894_vm1, %v2414_v50, %v2430_v48  ;;  %v7444_v45 = vpop.f32.mrf.mxu1  ;;  %v3005_v48 = vld [vmem:[#allocation8 + $0x350] sm:$0xff] }
 0x24a   : > { %9697 = vst [vmem:[#allocation17_spill] sm:$0xff] %v7403_v58  ;;  %v2511_v58 = vadd.f32 %v2443_v49, %v2383_v16  ;;  %v2445_v16 = vsel %vm1894_vm1, %v2413_v6, %v2429_v23  ;;  %v9703_v49 = vld [vmem:[#allocation43_spill] sm:$0xff]  ;;  %v2514_v6 = vadd.f32 %v2482_v24, %v2386_v56  ;;  %v2431_v54 = vrot.slane %v7130_v1, 7  ;;  %v9707_v24 = vld [vmem:[#allocation36_spill] sm:$0xff]  ;;  %3870 = vmatprep.subr.mxu0 %v3005_v48 }
 0x24b   : > { %v1329_v41 = vpop.f32.mrf.mxu0  ;;  %v2387_v2 = vadd.f32 %v2355_v62, %v9703_v49  ;;  %v2512_v0 = vadd.f32 %v2480_v25, %v2384_v38  ;;  %v2513_v12 = vadd.f32 %v2444_v46, %v2385_v9  ;;  %v2389_v9 = vadd.f32 %v2357_v40, %v9704_v21  ;;  %v9705_v38 = vld [vmem:[#allocation46_spill] sm:$0xff]  ;;  %v9706_v25 = vld [vmem:[#allocation53_spill] sm:$0xff] }
 0x24c   : > { %v7435_v57 = vadd.f32 %v7328_v42, %v1329_v41  ;;  %v2484_v42 = vsel %vm280_vm0, %v2462_v29, 0.0  ;;  %v2388_v56 = vadd.f32 %v2318_v35, %v9705_v38  ;;  %v2287_v46 = vrot.slane %v9706_v25, 1  ;;  %v9708_v41 = vld [vmem:[#allocation39_spill] sm:$0xff]  ;;  %v3004_v40 = vld [vmem:[#allocation8 + $0x348] sm:$0xff]  ;;  %v7473_v35 = vpop.f32.mrf.mxu1  ;;  %v2931_v25 = vld [vmem:[#allocation8 + $0x100] sm:$0xff] }
 0x24d   : > { %v7439_v23 = vpop.f32.mrf.mxu0  ;;  %v2515_v62 = vadd.f32 %v2445_v16, %v2387_v2  ;;  %v2304_v37 = vrot.slane %v7138_v60, 1  ;;  %v7458_v16 = vadd.f32 %v2510_v19, %v9707_v24  ;;  %v7461_v49 = vadd.f32 %v2511_v58, %v9708_v41  ;;  %3871 = vmatpush1.msra.mxu0 %v3004_v40  ;;  %v9710_v58 = vld [vmem:[#allocation42_spill] sm:$0xff]  ;;  %3613 = vmatprep.subr.mxu1 %v2931_v25 }
 0x24e   : > { %v7464_v2 = vadd.f32 %v2513_v12, %v9709_v34  ;;  %v2517_v1 = vadd.f32 %v2446_v10, %v2389_v9  ;;  %v2516_v47 = vadd.f32 %v2484_v42, %v2388_v56  ;;  %v2319_v60 = vsel %vm2023_vm2, %v2287_v46, %v2303_v44  ;;  %v9711_v10 = vld [vmem:[#allocation48_spill] sm:$0xff]  ;;  %v9712_v9 = vld [vmem:[#allocation51_spill] sm:$0xff]  ;;  %v9714_v40 = vld [vmem:[#allocation54_spill] sm:$0xff] }
 0x24f   : > { %v1335_v28 = vpop.f32.mrf.mxu0  ;;  %v2288_v19 = vrot.slane %v7125_v26, 1  ;;  %v7476_v12 = vadd.f32 %v2512_v0, %v9710_v58  ;;  %v7479_v21 = vadd.f32 %v2514_v6, %v9711_v10  ;;  %v2463_v42 = vsel %vm1894_vm1, %v2431_v54, %v2415_v4  ;;  %v9713_v6 = vld [vmem:[#allocation52_spill] sm:$0xff]  ;;  %v7505_v10 = vpop.f32.mrf.mxu1  ;;  %v2996_v25 = vld [vmem:[#allocation8 + $0x308] sm:$0xff] }
 0x250   : > { %v7455_v50 = vadd.f32 %v7331_v3, %v1335_v28  ;;  %v2335_v3 = vsel %vm2023_vm2, %v2303_v44, %v2287_v46  ;;  %v7482_v28 = vadd.f32 %v2515_v62, %v9712_v9  ;;  %v2416_v26 = vrot.slane %v7143_v13, 7  ;;  %v2930_v46 = vld [vmem:[#allocation8 + $0xf8] sm:$0xff]  ;;  %v9716_v9 = vld [vmem:[#allocation55_spill] sm:$0xff]  ;;  %3872 = vmatprep.subr.mxu0 %v2996_v25 }
 0x251   : > { %v7466_v29 = vpop.f32.mrf.mxu0  ;;  %v2336_v44 = vsel %vm2023_vm2, %v2304_v37, %v2288_v19  ;;  %v2432_v56 = vrot.slane %v7156_v31, 7  ;;  %v2305_v0 = vrot.slane %v7164_v15, 1  ;;  %v2390_v48 = vadd.f32 %v2319_v60, %v9713_v6  ;;  %v9715_v13 = vld [vmem:[#allocation56_spill] sm:$0xff]  ;;  %3614 = vmatpush1.msra.mxu1 %v2930_v46  ;;  %v9717_v6 = vld [vmem:[#allocation57_spill] sm:$0xff] }
 0x252   : > { %v2359_v62 = vsel %vm283_vm3, %v2335_v3, 0.0  ;;  %v2417_v24 = vrot.slane %v7169_v17, 7  ;;  %v2433_v41 = vrot.slane %v7184_v8, 7  ;;  %v7497_v58 = vadd.f32 %v2516_v47, %v9714_v40  ;;  %v9718_v40 = vld [vmem:[#allocation59_spill] sm:$0xff] }
 0x253   : > { %v1341_v38 = vpop.f32.mrf.mxu0  ;;  %v7500_v31 = vadd.f32 %v2517_v1, %v9715_v13  ;;  %v2447_v15 = vsel %vm1894_vm1, %v2415_v4, %v2431_v54  ;;  %v2289_v60 = vrot.slane %v7151_v32, 1  ;;  %v2486_v17 = vsel %vm280_vm0, %v2463_v42, 0.0 }
 0x254   : > { %v2320_v8 = vsel %vm2023_vm2, %v2288_v19, %v2304_v37  ;;  %v2361_v47 = vsel %vm283_vm3, %v2336_v44, 0.0  ;;  %v2306_v1 = vrot.slane %v7190_v18, 1  ;;  %v2391_v38 = vadd.f32 %v2359_v62, %v9716_v9 }
 0x255   : > { %v1342_v34 = vpop.f32.mrf.mxu0  ;;  %v2464_v32 = vsel %vm1894_vm1, %v2432_v56, %v2416_v26  ;;  %v2337_v4 = vsel %vm2023_vm2, %v2305_v0, %v2289_v60  ;;  %v2448_v54 = vsel %vm1894_vm1, %v2416_v26, %v2432_v56  ;;  %v2290_v42 = vrot.slane %v7179_v27, 1 }
 0x256   : > { %v2465_v37 = vsel %vm1894_vm1, %v2433_v41, %v2417_v24  ;;  %v2418_v19 = vrot.slane %v7199_v59, 7  ;;  %v2434_v18 = vrot.slane %v7217_v33, 7  ;;  %v2518_v46 = vadd.f32 %v2486_v17, %v2390_v48 }
 0x257   : > { %v1345_v3 = vpop.f32.mrf.mxu0  ;;  %v2392_v62 = vadd.f32 %v2320_v8, %v9717_v6  ;;  %v2519_v34 = vadd.f32 %v2447_v15, %v2391_v38  ;;  %v2393_v13 = vadd.f32 %v2361_v47, %v9718_v40  ;;  %v2321_v27 = vsel %vm2023_vm2, %v2289_v60, %v2305_v0  ;;  %v2995_v0 = vld [vmem:[#allocation8 + $0x300] sm:$0xff]  ;;  %v2922_v60 = vld [vmem:[#allocation8 + $0xb8] sm:$0xff]  ;;  %v2921_v47 = vld [vmem:[#allocation8 + $0xb0] sm:$0xff] }
 0x258   : > { %v7528_v3 = vpop.f32.mrf.mxu1  ;;  %v2338_v26 = vsel %vm2023_vm2, %v2306_v1, %v2290_v42  ;;  %v2363_v59 = vsel %vm283_vm3, %v2337_v4, 0.0  ;;  %v2307_v33 = vrot.slane %v7230_v63, 1  ;;  %v2488_v48 = vsel %vm280_vm0, %v2464_v32, 0.0  ;;  %3873 = vmatpush1.msra.mxu0 %v2995_v0  ;;  %3615 = vmatprep.subr.mxu1 %v2922_v60  ;;  %v9721_v6 = vld [vmem:[#allocation60_spill] sm:$0xff]  ;;  %v9723_v60 = vld [vmem:[#allocation67_spill] sm:$0xff] }
 0x259   : > { %v1346_v44 = vpop.f32.mrf.mxu0  ;;  %v2521_v15 = vadd.f32 %v2448_v54, %v2393_v13  ;;  %v2490_v17 = vsel %vm280_vm0, %v2465_v37, 0.0  ;;  %v2449_v8 = vsel %vm1894_vm1, %v2417_v24, %v2433_v41  ;;  %v2291_v9 = vrot.slane %v7209_v51, 1  ;;  %v9719_v54 = vld [vmem:[#allocation61_spill] sm:$0xff]  ;;  %v9720_v41 = vld [vmem:[#allocation63_spill] sm:$0xff]  ;;  %3616 = vmatpush1.msra.mxu1 %v2921_v47 }
 0x25a   : > { %v2466_v38 = vsel %vm1894_vm1, %v2434_v18, %v2418_v19  ;;  %v2419_v63 = vrot.slane %v7266_v52, 7  ;;  %v2435_v4 = vrot.slane %v7325_v7, 7  ;;  %v2394_v37 = vadd.f32 %v2321_v27, %v9719_v54  ;;  %v7554_v25 = vpop.f32.mrf.mxu1  ;;  %v9726_v54 = vld [vmem:[#allocation62_spill] sm:$0xff] }
 0x25b   : > { %v5577_v56 = vpop.f32.mrf.mxu0  ;;  %v2322_v24 = vsel %vm2023_vm2, %v2290_v42, %v2306_v1  ;;  %v2395_v44 = vadd.f32 %v2363_v59, %v9720_v41  ;;  %v2365_v51 = vsel %vm283_vm3, %v2338_v26, 0.0  ;;  %v7557_v52 = vadd.f32 %v2519_v34, %v9721_v6  ;;  %v9722_v59 = vld [vmem:[#allocation65_spill] sm:$0xff] }
 0x25c   : > { %v2520_v7 = vadd.f32 %v2488_v48, %v2392_v62  ;;  %v2339_v40 = vsel %vm2023_vm2, %v2307_v33, %v2291_v9  ;;  %v2308_v13 = vrot.slane %v7295_v36, 1  ;;  %v2522_v56 = vadd.f32 %v2490_v17, %v2394_v37  ;;  %v9724_v36 = vld [vmem:[#allocation58_spill] sm:$0xff]  ;;  %v9725_v17 = vld [vmem:[#allocation64_spill] sm:$0xff] }
 0x25d   : > { %v1687_v32 = vpop.f32.mrf.mxu0  ;;  %v2523_v1 = vadd.f32 %v2449_v8, %v2395_v44  ;;  %v2492_v42 = vsel %vm280_vm0, %v2466_v38, 0.0  ;;  %v2450_v26 = vsel %vm1894_vm1, %v2418_v19, %v2434_v18  ;;  %v2396_v0 = vadd.f32 %v2322_v24, %v9722_v59  ;;  %v7581_v18 = vpop.f32.mrf.mxu1  ;;  %v9727_v44 = vld [vmem:[#allocation66_spill] sm:$0xff] }
 0x25e   : > { %v2397_v34 = vadd.f32 %v2365_v51, %v9723_v60  ;;  %v2292_v62 = vrot.slane %v7262_v22, 1  ;;  %v2467_v48 = vsel %vm1894_vm1, %v2435_v4, %v2419_v63  ;;  %v7572_v32 = vadd.f32 %v2518_v46, %v9724_v36  ;;  %v9728_v51 = vld [vmem:[#allocation68_spill] sm:$0xff] }
 0x25f   : > { %v5580_v27 = vpop.f32.mrf.mxu0  ;;  %v7575_v8 = vadd.f32 %v2521_v15, %v9725_v17  ;;  %v2323_v38 = vsel %vm2023_vm2, %v2291_v9, %v2307_v33  ;;  %v2367_v19 = vsel %vm283_vm3, %v2339_v40, 0.0  ;;  %v7584_v22 = vadd.f32 %v2520_v7, %v9726_v54  ;;  %v2987_v7 = vld [vmem:[#allocation8 + $0x2c0] sm:$0xff]  ;;  %v2986_v40 = vld [vmem:[#allocation8 + $0x2b8] sm:$0xff]  ;;  %v7606_v36 = vpop.f32.mrf.mxu1 }
 0x260   : > { %v2524_v37 = vadd.f32 %v2492_v42, %v2396_v0  ;;  %v2525_v24 = vadd.f32 %v2450_v26, %v2397_v34  ;;  %v2340_v46 = vsel %vm2023_vm2, %v2308_v13, %v2292_v62  ;;  %v7589_v15 = vadd.f32 %v2522_v56, %v9727_v44  ;;  %v2913_v27 = vld [vmem:[#allocation8 + $0x70] sm:$0xff]  ;;  %v9729_v42 = vld [vmem:[#allocation69_spill] sm:$0xff]  ;;  %3874 = vmatprep.subr.mxu0 %v2987_v7  ;;  %v2978_v34 = vld [vmem:[#allocation8 + $0x278] sm:$0xff] }
 0x261   : > { %v1695_v47 = vpop.f32.mrf.mxu0  ;;  %v7592_v6 = vadd.f32 %v2523_v1, %v9728_v51  ;;  %v2494_v33 = vsel %vm280_vm0, %v2467_v48, 0.0  ;;  %v2451_v9 = vsel %vm1894_vm1, %v2419_v63, %v2435_v4  ;;  %v2398_v26 = vadd.f32 %v2323_v38, %v9729_v42  ;;  %v9730_v0 = vld [vmem:[#allocation71_spill] sm:$0xff]  ;;  %3617 = vmatprep.subr.mxu1 %v2913_v27  ;;  %v2912_v48 = vld [vmem:[#allocation8 + $0x68] sm:$0xff]  ;;  %3875 = vmatpush1.msra.mxu0 %v2986_v40  ;;  %v9734_v42 = vld [vmem:[#allocation13_spill] sm:$0xff] }
 0x262   : > { %v2324_v59 = vsel %vm2023_vm2, %v2292_v62, %v2308_v13  ;;  %v2399_v56 = vadd.f32 %v2367_v19, %v9730_v0  ;;  %v2420_v60 = vrot.slane %v7389_v14, 7  ;;  %v2977_v47 = vld [vmem:[#allocation8 + $0x270] sm:$0xff]  ;;  %v2436_v63 = vrot.slane %v7444_v45, 7  ;;  %3618 = vmatpush1.msra.mxu1 %v2912_v48  ;;  %v9731_v13 = vld [vmem:[#allocation70_spill] sm:$0xff]  ;;  %v9732_v14 = vld [vmem:[#allocation72_spill] sm:$0xff]  ;;  %3876 = vmatprep.subr.mxu0 %v2978_v34 }
 0x263   : > { %v5583_v41 = vpop.f32.mrf.mxu0  ;;  %v2369_v4 = vsel %vm283_vm3, %v2340_v46, 0.0  ;;  %v7609_v62 = vadd.f32 %v2524_v37, %v9731_v13  ;;  %v7612_v19 = vadd.f32 %v2525_v24, %v9732_v14  ;;  %v7614_v54 = vadd.f32 %v2494_v33, %v2398_v26  ;;  %v7621_v45 = vld [vmem:[%s9570_s2] ss:$0 sm:$0xff]  ;;  %3877 = vmatpush1.msra.mxu0 %v2977_v47  ;;  %v2968_v7 = vld [vmem:[#allocation8 + $0x228] sm:$0xff]  ;;  %v7638_v47 = vpop.f32.mrf.mxu1 }
 0x264   : > { %v2584_v17 = vrot.slane %v5583_v41, 1  ;;  %v7616_v44 = vadd.f32 %v2451_v9, %v2399_v56  ;;  %v9733_v41 = vld [vmem:[#allocation73_spill] sm:$0xff]  ;;  %v2969_v9 = vld [vmem:[#allocation8 + $0x230] sm:$0xff]  ;;  %v2960_v40 = vld [vmem:[#allocation8 + $0x1e8] sm:$0xff]  ;;  %v2293_v27 = vrot.slane %v7318_v20, 1  ;;  %v2401_v26 = vadd.f32 %v2369_v4, %v9734_v42 }
 0x265   : > { %v1703_v1 = vpop.f32.mrf.mxu0  ;;  %v7624_v51 = vadd.f32 %v2324_v59, %v9733_v41  ;;  %3878 = vmatprep.subr.mxu0 %v2969_v9  ;;  %v2468_v34 = vsel %vm1894_vm1, %v2436_v63, %v2420_v60  ;;  %v2309_v48 = vrot.slane %v7355_v61, 1  ;;  %v2452_v4 = vsel %vm1894_vm1, %v2420_v60, %v2436_v63  ;;  %v2950_v60 = vld [vmem:[#allocation8 + $0x198] sm:$0xff]  ;;  %v2904_v42 = vld [vmem:[#allocation8 + $0x28] sm:$0xff] }
 0x266   : > { %v2568_v38 = vrot.slane %v1703_v1, 1  ;;  %v2959_v1 = vld [vmem:[#allocation8 + $0x1e0] sm:$0xff]  ;;  %3879 = vmatpush1.msra.mxu0 %v2968_v7  ;;  %v2942_v63 = vld [vmem:[#allocation8 + $0x158] sm:$0xff]  ;;  %3619 = vmatprep.subr.mxu1 %v2904_v42 }
 0x267   : > { %v5586_v46 = vpop.f32.mrf.mxu0  ;;  %3880 = vmatprep.subr.mxu0 %v2960_v40 }
 0x268   : > { %v2600_v37 = vsel %vm2023_vm2, %v2568_v38, %v2584_v17  ;;  %v2616_v24 = vsel %vm2023_vm2, %v2584_v17, %v2568_v38  ;;  %v2585_v33 = vrot.slane %v5586_v46, 1  ;;  %v9581_v38 = vrot.slane %v7505_v10, 7  ;;  %3881 = vmatpush1.msra.mxu0 %v2959_v1 }
 0x269   : > { %v2633_v0 = vsel %vm283_vm3, %v2616_v24, 0.0  ;;  %v2664_v59 = vadd.f32 %v2600_v37, %v7334_v11  ;;  %v1713_v56 = vpop.f32.mrf.mxu0  ;;  %v9582_v11 = vrot.slane %v7554_v25, 7  ;;  %v2951_v37 = vld [vmem:[#allocation8 + $0x1a0] sm:$0xff] }
 0x26a   : > { %v2665_v17 = vadd.f32 %v2633_v0, %v7321_v39  ;;  %v2569_v20 = vrot.slane %v1713_v56, 1  ;;  %3882 = vmatprep.subr.mxu0 %v2951_v37  ;;  %v2341_v0 = vsel %vm2023_vm2, %v2309_v48, %v2293_v27 }
 0x26b   : > { %v2703_v13 = vadd.f32 %v7621_v45, %v2664_v59  ;;  %v5589_v14 = vpop.f32.mrf.mxu0  ;;  %v7658_v59 = vpop.f32.mrf.mxu1  ;;  %3883 = vmatpush1.msra.mxu0 %v2950_v60  ;;  %v2903_v60 = vld [vmem:[#allocation8 + $0x20] sm:$0xff] }
 0x26c   : > { %v2601_v61 = vsel %vm2023_vm2, %v2569_v20, %v2585_v33  ;;  %v2617_v46 = vsel %vm2023_vm2, %v2585_v33, %v2569_v20  ;;  %v2586_v39 = vrot.slane %v5589_v14, 1  ;;  %v2704_v41 = vadd.f32 %v7621_v45, %v2665_v17  ;;  %v9735_v17 = vld [vmem:[#allocation19_spill] sm:$0xff]  ;;  %3884 = vmatprep.subr.mxu0 %v2942_v63  ;;  %3620 = vmatpush1.msra.mxu1 %v2903_v60  ;;  %v9743_v60 = vld [vmem:[#allocation14_spill] sm:$0xff] }
 0x26d   : > { %v2635_v24 = vsel %vm283_vm3, %v2617_v46, 0.0  ;;  %v2666_v9 = vadd.f32 %v2601_v61, %v7350_v5  ;;  %v1723_v7 = vpop.f32.mrf.mxu0  ;;  %vm2735_vm4 = vcmp.gt.f32.partialorder %v2703_v13, 0.0  ;;  %v2767_v40 = vmul.f32 0.2, %v2703_v13 }
 0x26e   : > { %v2496_v33 = vsel %vm280_vm0, %v2468_v34, 0.0  ;;  %v2570_v56 = vrot.slane %v1723_v7, 1  ;;  %v2768_v1 = vmul.f32 0.2, %v2704_v41  ;;  %v2667_v20 = vadd.f32 %v2635_v24, %v9735_v17  ;;  %v2941_v34 = vld [vmem:[#allocation8 + $0x150] sm:$0xff] }
 0x26f   : > { %v2705_v5 = vadd.f32 %v7621_v45, %v2666_v9  ;;  %v7662_v14 = vpop.f32.mrf.mxu0  ;;  %v7664_v61 = vsel %vm2735_vm4, %v2703_v13, %v2767_v40  ;;  %vm2736_vm5 = vcmp.gt.f32.partialorder %v2704_v41, 0.0  ;;  %v2529_v46 = vadd.f32 %v2452_v4, %v2401_v26  ;;  %v2933_v24 = vld [vmem:[#allocation8 + $0x110] sm:$0xff]  ;;  %v7686_v40 = vpop.f32.mrf.mxu1  ;;  %3885 = vmatpush1.msra.mxu0 %v2941_v34 }
 0x270   : > { %9736 = vst [vmem:[#allocation21_spill] sm:$0xff] %v7664_v61  ;;  %v2602_v37 = vsel %vm2023_vm2, %v2570_v56, %v2586_v39  ;;  %v2618_v7 = vsel %vm2023_vm2, %v2586_v39, %v2570_v56  ;;  %3120 = vmatmul.mubr.f32.gmra.mxu1 %v7664_v61  ;;  %3391 = vmatmul.mubr.f32.gmra.mxu0 %v7664_v61  ;;  %v2371_v4 = vsel %vm283_vm3, %v2341_v0, 0.0  ;;  %v9737_v63 = vmov 0.0   ;;  %v9740_v61 = vld [vmem:[#allocation18_spill] sm:$0xff] }
 0x271   : > { %v2528_v9 = vadd.f32 %v2496_v33, %v7624_v51  ;;  %v2325_v13 = vsel %vm2023_vm2, %v2293_v27, %v2309_v48  ;;  %v2469_v26 = vsel %vm1894_vm1, %v9582_v11, %v9581_v38  ;;  %v1733_v39 = vpop.f32.mrf.mxu0  ;;  %3125 = vmatprep.mubr.f32.mxu1 %v9737_v63  ;;  %3396 = vmatprep.mubr.f32.mxu0 %v9737_v63  ;;  %v2310_v51 = vrot.slane %v7414_v55, 1  ;;  %v9739_v33 = vld [vmem:[#allocation16_spill] sm:$0xff]  ;;  %v2932_v11 = vld [vmem:[#allocation8 + $0x108] sm:$0xff] }
 0x272   : > { %v2637_v27 = vsel %vm283_vm3, %v2618_v7, 0.0  ;;  %v2587_v48 = vrot.slane %v7662_v14, 1  ;;  %v7692_v42 = vsel %vm2736_vm5, %v2704_v41, %v2768_v1  ;;  %v2668_v0 = vadd.f32 %v2602_v37, %v9739_v33  ;;  %3886 = vmatprep.subr.mxu0 %v2933_v24  ;;  %v9741_v14 = vld [vmem:[#allocation20_spill] sm:$0xff]  ;;  %v9742_v1 = vld [vmem:[#allocation23_spill] sm:$0xff]  ;;  %v2924_v37 = vld [vmem:[#allocation8 + $0xc8] sm:$0xff] }
 0x273   : > { %9738 = vst [vmem:[#allocation26_spill] sm:$0xff] %v7692_v42  ;;  %v2571_v56 = vrot.slane %v1733_v39, 1  ;;  %v7695_v17 = vpop.f32.mrf.mxu0  ;;  %v2769_v38 = vmul.f32 0.2, %v2705_v5  ;;  %v2706_v55 = vadd.f32 %v7621_v45, %v2667_v20  ;;  %v7700_v7 = vadd.f32 %v7614_v54, %v9740_v61  ;;  %3887 = vmatpush1.msra.mxu0 %v2932_v11  ;;  %v2915_v11 = vld [vmem:[#allocation8 + $0x80] sm:$0xff] }
 0x274   : > { %v7704_v41 = vadd.f32 %v7616_v44, %v9741_v14  ;;  %v2294_v34 = vrot.slane %v9742_v1, 1  ;;  %3126 = vmatmul.mubr.f32.gmra.mxu1 %v7692_v42  ;;  %3397 = vmatmul.mubr.f32.gmra.mxu0 %v7692_v42  ;;  %vm2737_vm6 = vcmp.gt.f32.partialorder %v2705_v5, 0.0  ;;  %v2402_v20 = vadd.f32 %v2325_v13, %v9743_v60 }
 0x275   : > { %v7711_v24 = vadd.f32 %v2529_v46, %v7473_v35  ;;  %v2498_v54 = vsel %vm280_vm0, %v2469_v26, 0.0  ;;  %v9744_v61 = vrot.slane %v7554_v25, 7  ;;  %v9745_v44 = vrot.slane %v7505_v10, 7  ;;  %v7721_v33 = vpop.f32.mrf.mxu0  ;;  %3131 = vmatprep.mubr.f32.mxu1 %v9737_v63  ;;  %3402 = vmatprep.mubr.f32.mxu0 %v9737_v63  ;;  %v9746_v46 = vld [vmem:[#allocation22_spill] sm:$0xff]  ;;  %v7731_v25 = vpop.f32.mrf.mxu1  ;;  %v9747_v10 = vld [vmem:[#allocation29_spill] sm:$0xff] }
 0x276   : > { %v7726_v13 = vadd.f32 %v2528_v9, %v7421_v30  ;;  %v2342_v35 = vsel %vm2023_vm2, %v2310_v51, %v2294_v34  ;;  %v2403_v26 = vadd.f32 %v2371_v4, %v9746_v46  ;;  %v2669_v14 = vadd.f32 %v2637_v27, %v9747_v10  ;;  %3888 = vmatprep.subr.mxu0 %v2924_v37  ;;  %v7746_v27 = vld [vmem:[#allocation8 + $0x478] sm:$0xff]  ;;  %v9748_v10 = vld [vmem:[#allocation15_spill] sm:$0xff] }
 0x277   : > { %v2453_v39 = vsel %vm1894_vm1, %v9745_v44, %v9744_v61  ;;  %v2707_v1 = vadd.f32 %v7621_v45, %v2668_v0  ;;  %v2619_v60 = vsel %vm2023_vm2, %v2587_v48, %v2571_v56  ;;  %v7737_v61 = vpop.f32.mrf.mxu0  ;;  %v7740_v30 = vsel %vm2737_vm6, %v2705_v5, %v2769_v38  ;;  %v2923_v44 = vld [vmem:[#allocation8 + $0xc0] sm:$0xff]  ;;  %5629 = vmatprep.subr.mxu1 %v7746_v27 }
 0x278   : > { %v2770_v9 = vmul.f32 0.2, %v2706_v55  ;;  %v2530_v42 = vadd.f32 %v2498_v54, %v2402_v20  ;;  %v2531_v4 = vadd.f32 %v2453_v39, %v2403_v26  ;;  %v2603_v46 = vsel %vm2023_vm2, %v2571_v56, %v2587_v48  ;;  %3132 = vmatmul.mubr.f32.gmra.mxu1 %v7740_v30  ;;  %3403 = vmatmul.mubr.f32.gmra.mxu0 %v7740_v30  ;;  %v7759_v56 = vpop.f32.mrf.mxu1  ;;  %v2914_v26 = vld [vmem:[#allocation8 + $0x78] sm:$0xff] }
 0x279   : > { %vm2738_vm7 = vcmp.gt.f32.partialorder %v2706_v55, 0.0  ;;  %v2326_v38 = vsel %vm2023_vm2, %v2294_v34, %v2310_v51  ;;  %v2422_v5 = vrot.slane %v7606_v36, 7  ;;  %v2438_v0 = vrot.slane %v7658_v59, 7  ;;  %v7754_v20 = vpop.f32.mrf.mxu0  ;;  %3137 = vmatprep.mubr.f32.mxu1 %v9737_v63  ;;  %3408 = vmatprep.mubr.f32.mxu0 %v9737_v63 }
 0x27a   : > { %v2373_v37 = vsel %vm283_vm3, %v2342_v35, 0.0  ;;  %v2311_v48 = vrot.slane %v7466_v29, 1  ;;  %v2639_v51 = vsel %vm283_vm3, %v2619_v60, 0.0  ;;  %v2588_v36 = vrot.slane %v7695_v17, 1  ;;  %3889 = vmatpush1.msra.mxu0 %v2923_v44 }
 0x27b   : > { %v2572_v59 = vrot.slane %v7721_v33, 1  ;;  %v2670_v34 = vadd.f32 %v2603_v46, %v7458_v16  ;;  %v7767_v54 = vpop.f32.mrf.mxu0  ;;  %v7770_v39 = vsel %vm2738_vm7, %v2706_v55, %v2770_v9  ;;  %v2771_v29 = vmul.f32 0.2, %v2707_v1  ;;  %3890 = vmatprep.subr.mxu0 %v2915_v11  ;;  %v2906_v16 = vld [vmem:[#allocation8 + $0x38] sm:$0xff]  ;;  %v1616_v46 = vpop.f32.mrf.mxu1 }
 0x27c   : > { %v2708_v35 = vadd.f32 %v7621_v45, %v2669_v14  ;;  %v2404_v60 = vadd.f32 %v2326_v38, %v9748_v10  ;;  %v7775_v17 = vadd.f32 %v2531_v4, %v7581_v18  ;;  %v2295_v33 = vrot.slane %v7439_v23, 1  ;;  %3138 = vmatmul.mubr.f32.gmra.mxu1 %v7770_v39  ;;  %3409 = vmatmul.mubr.f32.gmra.mxu0 %v7770_v39  ;;  %v9749_v18 = vld [vmem:[#allocation17_spill] sm:$0xff] }
 0x27d   : > { %vm2739_vm8 = vcmp.gt.f32.partialorder %v2707_v1, 0.0  ;;  %v7781_v55 = vadd.f32 %v2530_v42, %v7528_v3  ;;  %v2470_v14 = vsel %vm1894_vm1, %v2438_v0, %v2422_v5  ;;  %v2454_v9 = vsel %vm1894_vm1, %v2422_v5, %v2438_v0  ;;  %v7787_v44 = vpop.f32.mrf.mxu0  ;;  %3143 = vmatprep.mubr.f32.mxu1 %v9737_v63  ;;  %3414 = vmatprep.mubr.f32.mxu0 %v9737_v63 }
 0x27e   : > { %v2343_v23 = vsel %vm2023_vm2, %v2311_v48, %v2295_v33  ;;  %v2405_v4 = vadd.f32 %v2373_v37, %v9749_v18  ;;  %v2671_v3 = vadd.f32 %v2639_v51, %v7461_v49  ;;  %v2604_v42 = vsel %vm2023_vm2, %v2572_v59, %v2588_v36  ;;  %3891 = vmatpush1.msra.mxu0 %v2914_v26  ;;  %v2905_v37 = vld [vmem:[#allocation8 + $0x30] sm:$0xff] }
 0x27f   : > { %v2709_v11 = vadd.f32 %v7621_v45, %v2670_v34  ;;  %v2620_v38 = vsel %vm2023_vm2, %v2588_v36, %v2572_v59  ;;  %v7800_v5 = vpop.f32.mrf.mxu0  ;;  %v7803_v0 = vsel %vm2739_vm8, %v2707_v1, %v2771_v29  ;;  %v2772_v10 = vmul.f32 0.2, %v2708_v35  ;;  %3892 = vmatprep.subr.mxu0 %v2906_v16 }
 0x280   : > { %v2500_v49 = vsel %vm280_vm0, %v2470_v14, 0.0  ;;  %v2327_v51 = vsel %vm2023_vm2, %v2295_v33, %v2311_v48  ;;  %v2533_v26 = vadd.f32 %v2454_v9, %v2405_v4  ;;  %3144 = vmatmul.mubr.f32.gmra.mxu1 %v7803_v0  ;;  %3415 = vmatmul.mubr.f32.gmra.mxu0 %v7803_v0  ;;  %vm2740_vm9 = vcmp.gt.f32.partialorder %v2708_v35, 0.0 }
 0x281   : > { %v2423_v36 = vrot.slane %v7731_v25, 7  ;;  %v2439_v59 = vrot.slane %v1616_v46, 7  ;;  %v2375_v1 = vsel %vm283_vm3, %v2343_v23, 0.0  ;;  %v2672_v34 = vadd.f32 %v2604_v42, %v7476_v12  ;;  %v7815_v29 = vpop.f32.mrf.mxu0  ;;  %3149 = vmatprep.mubr.f32.mxu1 %v9737_v63  ;;  %3420 = vmatprep.mubr.f32.mxu0 %v9737_v63 }
 0x282   : > { %v2641_v48 = vsel %vm283_vm3, %v2620_v38, 0.0  ;;  %v2589_v33 = vrot.slane %v7737_v61, 1  ;;  %v2573_v16 = vrot.slane %v7754_v20, 1  ;;  %v2710_v25 = vadd.f32 %v7621_v45, %v2671_v3  ;;  %3893 = vmatpush1.msra.mxu0 %v2905_v37 }
 0x283   : > { %v7824_v14 = vadd.f32 %v2500_v49, %v2404_v60  ;;  %v7827_v12 = vadd.f32 %v2327_v51, %v7435_v57  ;;  %v5607_v9 = vpop.f32.mrf.mxu0  ;;  %v7830_v23 = vsel %vm2740_vm9, %v2708_v35, %v2772_v10  ;;  %v2773_v18 = vmul.f32 0.2, %v2709_v11 }
 0x284   : > { %v7833_v4 = vadd.f32 %v2533_v26, %v7686_v40  ;;  %v7836_v61 = vadd.f32 %v2375_v1, %v7455_v50  ;;  %v2592_v20 = vrot.slane %v5607_v9, 1  ;;  %3150 = vmatmul.mubr.f32.gmra.mxu1 %v7830_v23  ;;  %3421 = vmatmul.mubr.f32.gmra.mxu0 %v7830_v23  ;;  %vm2741_vm10 = vcmp.gt.f32.partialorder %v2709_v11, 0.0 }
 0x285   : > { %v7842_v57 = vsel %vm1894_vm1, %v2439_v59, %v2423_v36  ;;  %v2673_v35 = vadd.f32 %v2641_v48, %v7464_v2  ;;  %v2711_v60 = vadd.f32 %v7621_v45, %v2672_v34  ;;  %v1783_v46 = vpop.f32.mrf.mxu0  ;;  %3155 = vmatprep.mubr.f32.mxu1 %v9737_v63  ;;  %3426 = vmatprep.mubr.f32.mxu0 %v9737_v63  ;;  %v2774_v42 = vmul.f32 0.2, %v2710_v25 }
 0x286   : > { %v2605_v50 = vsel %vm2023_vm2, %v2573_v16, %v2589_v33  ;;  %v2621_v40 = vsel %vm2023_vm2, %v2589_v33, %v2573_v16  ;;  %v2576_v3 = vrot.slane %v1783_v46, 1  ;;  %v2590_v38 = vrot.slane %v7767_v54, 1 }
 0x287   : > { %v2574_v10 = vrot.slane %v7787_v44, 1  ;;  %v5610_v2 = vpop.f32.mrf.mxu0  ;;  %v7854_v37 = vsel %vm2741_vm10, %v2709_v11, %v2773_v18  ;;  %vm2742_vm11 = vcmp.gt.f32.partialorder %v2710_v25, 0.0  ;;  %v7858_v49 = vsel %vm1894_vm1, %v2423_v36, %v2439_v59 }
 0x288   : > { %v2608_v51 = vsel %vm2023_vm2, %v2576_v3, %v2592_v20  ;;  %v2624_v26 = vsel %vm2023_vm2, %v2592_v20, %v2576_v3  ;;  %v2593_v1 = vrot.slane %v5610_v2, 1  ;;  %3156 = vmatmul.mubr.f32.gmra.mxu1 %v7854_v37  ;;  %3427 = vmatmul.mubr.f32.gmra.mxu0 %v7854_v37  ;;  %v2643_v54 = vsel %vm283_vm3, %v2621_v40, 0.0 }
 0x289   : > { %v2674_v44 = vadd.f32 %v2605_v50, %v7479_v21  ;;  %v2649_v11 = vsel %vm283_vm3, %v2624_v26, 0.0  ;;  %v2680_v36 = vadd.f32 %v2608_v51, %v7584_v22  ;;  %v1793_v59 = vpop.f32.mrf.mxu0  ;;  %3161 = vmatprep.mubr.f32.mxu1 %v9737_v63  ;;  %3432 = vmatprep.mubr.f32.mxu0 %v9737_v63  ;;  %v7874_v48 = vsel %vm2742_vm11, %v2710_v25, %v2774_v42 }
 0x28a   : > { %v2577_v34 = vrot.slane %v1793_v59, 1  ;;  %vm2743_vm12 = vcmp.gt.f32.partialorder %v2711_v60, 0.0  ;;  %v2775_v33 = vmul.f32 0.2, %v2711_v60  ;;  %v2622_v16 = vsel %vm2023_vm2, %v2590_v38, %v2574_v10 }
 0x28b   : > { %v2681_v21 = vadd.f32 %v2649_v11, %v7575_v8  ;;  %v7880_v9 = vadd.f32 %v7621_v45, %v2680_v36  ;;  %v5613_v18 = vpop.f32.mrf.mxu0  ;;  %v2712_v22 = vadd.f32 %v7621_v45, %v2673_v35  ;;  %v2675_v20 = vadd.f32 %v2643_v54, %v7482_v28 }
 0x28c   : > { %v2609_v46 = vsel %vm2023_vm2, %v2577_v34, %v2593_v1  ;;  %v2625_v25 = vsel %vm2023_vm2, %v2593_v1, %v2577_v34  ;;  %v2594_v50 = vrot.slane %v5613_v18, 1  ;;  %3162 = vmatmul.mubr.f32.gmra.mxu1 %v7874_v48  ;;  %3433 = vmatmul.mubr.f32.gmra.mxu0 %v7874_v48  ;;  %v2713_v8 = vadd.f32 %v7621_v45, %v2674_v44 }
 0x28d   : > { %v2606_v40 = vsel %vm2023_vm2, %v2574_v10, %v2590_v38  ;;  %v2651_v35 = vsel %vm283_vm3, %v2625_v25, 0.0  ;;  %v2682_v28 = vadd.f32 %v2609_v46, %v7589_v15  ;;  %v1803_v3 = vpop.f32.mrf.mxu0  ;;  %3167 = vmatprep.mubr.f32.mxu1 %v9737_v63  ;;  %3438 = vmatprep.mubr.f32.mxu0 %v9737_v63  ;;  %v2645_v42 = vsel %vm283_vm3, %v2622_v16, 0.0 }
 0x28e   : > { %v2591_v2 = vrot.slane %v7800_v5, 1  ;;  %v2578_v51 = vrot.slane %v1803_v3, 1  ;;  %v7902_v26 = vsel %vm2743_vm12, %v2711_v60, %v2775_v33  ;;  %v2683_v38 = vadd.f32 %v2651_v35, %v7592_v6 }
 0x28f   : > { %v7906_v10 = vadd.f32 %v7621_v45, %v2682_v28  ;;  %v5616_v15 = vpop.f32.mrf.mxu0  ;;  %v2776_v1 = vmul.f32 0.2, %v2712_v22  ;;  %v7909_v54 = vadd.f32 %v7621_v45, %v2681_v21  ;;  %vm2744_vm13 = vcmp.gt.f32.partialorder %v2712_v22, 0.0 }
 0x290   : > { %v2610_v44 = vsel %vm2023_vm2, %v2578_v51, %v2594_v50  ;;  %v2626_v5 = vsel %vm2023_vm2, %v2594_v50, %v2578_v51  ;;  %v2595_v11 = vrot.slane %v5616_v15, 1  ;;  %3168 = vmatmul.mubr.f32.gmra.mxu1 %v7902_v26  ;;  %3439 = vmatmul.mubr.f32.gmra.mxu0 %v7902_v26  ;;  %v2676_v6 = vadd.f32 %v2606_v40, %v7497_v58 }
 0x291   : > { %v2575_v60 = vrot.slane %v7815_v29, 1  ;;  %v2653_v36 = vsel %vm283_vm3, %v2626_v5, 0.0  ;;  %v2684_v59 = vadd.f32 %v2610_v44, %v7609_v62  ;;  %v1813_v34 = vpop.f32.mrf.mxu0  ;;  %3173 = vmatprep.mubr.f32.mxu1 %v9737_v63  ;;  %3444 = vmatprep.mubr.f32.mxu0 %v9737_v63  ;;  %vm2745_vm14 = vcmp.gt.f32.partialorder %v2713_v8, 0.0 }
 0x292   : > { %v2579_v33 = vrot.slane %v1813_v34, 1  ;;  %v2777_v16 = vmul.f32 0.2, %v2713_v8  ;;  %v2714_v21 = vadd.f32 %v7621_v45, %v2675_v20  ;;  %v2685_v18 = vadd.f32 %v2653_v36, %v7612_v19 }
 0x293   : > { %v7927_v58 = vadd.f32 %v7621_v45, %v2684_v59  ;;  %v5619_v29 = vpop.f32.mrf.mxu0  ;;  %v7929_v46 = vsel %vm2744_vm13, %v2712_v22, %v2776_v1  ;;  %v7932_v62 = vadd.f32 %v7621_v45, %v2683_v38  ;;  %v2677_v25 = vadd.f32 %v2645_v42, %v7500_v31 }
 0x294   : > { %v2611_v50 = vsel %vm2023_vm2, %v2579_v33, %v2595_v11  ;;  %v2627_v40 = vsel %vm2023_vm2, %v2595_v11, %v2579_v33  ;;  %v2596_v20 = vrot.slane %v5619_v29, 1  ;;  %3174 = vmatmul.mubr.f32.gmra.mxu1 %v7929_v46  ;;  %3445 = vmatmul.mubr.f32.gmra.mxu0 %v7929_v46  ;;  %v2715_v19 = vadd.f32 %v7621_v45, %v2676_v6 }
 0x295   : > { %v2607_v22 = vsel %vm2023_vm2, %v2575_v60, %v2591_v2  ;;  %v2655_v35 = vsel %vm283_vm3, %v2627_v40, 0.0  ;;  %v2686_v31 = vadd.f32 %v2611_v50, %v7700_v7  ;;  %v1823_v28 = vpop.f32.mrf.mxu0  ;;  %3179 = vmatprep.mubr.f32.mxu1 %v9737_v63  ;;  %3450 = vmatprep.mubr.f32.mxu0 %v9737_v63  ;;  %v2623_v3 = vsel %vm2023_vm2, %v2591_v2, %v2575_v60 }
 0x296   : > { %v2580_v42 = vrot.slane %v1823_v28, 1  ;;  %v7952_v51 = vsel %vm2745_vm14, %v2713_v8, %v2777_v16  ;;  %v2778_v38 = vmul.f32 0.2, %v2714_v21  ;;  %v2687_v15 = vadd.f32 %v2655_v35, %v7704_v41 }
 0x297   : > { %v7956_v1 = vadd.f32 %v7621_v45, %v2686_v31  ;;  %v5622_v44 = vpop.f32.mrf.mxu0  ;;  %vm2746_vm15 = vcmp.gt.f32.partialorder %v2714_v21, 0.0  ;;  %v7959_v7 = vadd.f32 %v7621_v45, %v2685_v18  ;;  %v2502_v5 = vsel %vm280_vm0, %v7842_v57, 0.0 }
 0x298   : > { %v2612_v2 = vsel %vm2023_vm2, %v2580_v42, %v2596_v20  ;;  %v2628_v8 = vsel %vm2023_vm2, %v2596_v20, %v2580_v42  ;;  %v2597_v11 = vrot.slane %v5622_v44, 1  ;;  %3180 = vmatmul.mubr.f32.gmra.mxu1 %v7952_v51  ;;  %3451 = vmatmul.mubr.f32.gmra.mxu0 %v7952_v51  ;;  %v2647_v41 = vsel %vm283_vm3, %v2623_v3, 0.0 }
 0x299   : > { %v2678_v6 = vadd.f32 %v2607_v22, %v7572_v32  ;;  %v2657_v60 = vsel %vm283_vm3, %v2628_v8, 0.0  ;;  %v2688_v57 = vadd.f32 %v2612_v2, %v7726_v13  ;;  %v1833_v36 = vpop.f32.mrf.mxu0  ;;  %3185 = vmatprep.mubr.f32.mxu1 %v9737_v63  ;;  %3456 = vmatprep.mubr.f32.mxu0 %v9737_v63  ;;  %v7979_v34 = vsel %vm2746_vm15, %v2714_v21, %v2778_v38  ;;  %v1618_v38 = vpop.f32.mrf.mxu1 }
 0x29a   : > { %v2581_v59 = vrot.slane %v1833_v36, 1  ;;  %vm2747_vm4 = vcmp.gt.f32.partialorder %v2715_v19, 0.0  ;;  %v2779_v33 = vmul.f32 0.2, %v2715_v19  ;;  %v2689_v16 = vadd.f32 %v2657_v60, %v7711_v24 }
 0x29b   : > { %v7983_v32 = vadd.f32 %v7621_v45, %v2688_v57  ;;  %v5625_v18 = vpop.f32.mrf.mxu0  ;;  %v2716_v29 = vadd.f32 %v7621_v45, %v2677_v25  ;;  %v7987_v13 = vadd.f32 %v7621_v45, %v2687_v15  ;;  %v2564_v50 = vadd.f32 %v7824_v14, %v7638_v47 }
 0x29c   : > { %v2613_v21 = vsel %vm2023_vm2, %v2581_v59, %v2597_v11  ;;  %v2629_v40 = vsel %vm2023_vm2, %v2597_v11, %v2581_v59  ;;  %v2598_v20 = vrot.slane %v5625_v18, 1  ;;  %3186 = vmatmul.mubr.f32.gmra.mxu1 %v7979_v34  ;;  %3457 = vmatmul.mubr.f32.gmra.mxu0 %v7979_v34  ;;  %v2534_v24 = vadd.f32 %v2502_v5, %v7827_v12 }
 0x29d   : > { %v2535_v25 = vadd.f32 %v7858_v49, %v7836_v61  ;;  %v2659_v22 = vsel %vm283_vm3, %v2629_v40, 0.0  ;;  %v2690_v47 = vadd.f32 %v2613_v21, %v7781_v55  ;;  %v1843_v14 = vpop.f32.mrf.mxu0  ;;  %3191 = vmatprep.mubr.f32.mxu1 %v9737_v63  ;;  %3462 = vmatprep.mubr.f32.mxu0 %v9737_v63  ;;  %v2679_v35 = vadd.f32 %v2647_v41, %v7557_v52 }
 0x29e   : > { %v2717_v31 = vadd.f32 %v7621_v45, %v2678_v6  ;;  %v2582_v28 = vrot.slane %v1843_v14, 1  ;;  %v8008_v12 = vsel %vm2747_vm4, %v2715_v19, %v2779_v33  ;;  %v2691_v61 = vadd.f32 %v2659_v22, %v7775_v17 }
 0x29f   : > { %v8012_v49 = vadd.f32 %v7621_v45, %v2690_v47  ;;  %v5628_v3 = vpop.f32.mrf.mxu0  ;;  %v2780_v55 = vmul.f32 0.2, %v2716_v29  ;;  %v8015_v42 = vadd.f32 %v7621_v45, %v2689_v16  ;;  %vm2748_vm5 = vcmp.gt.f32.partialorder %v2716_v29, 0.0  ;;  %v3109_v6 = vpop.f32.mrf.mxu1 }
 0x2a0   : > { %v2614_v52 = vsel %vm2023_vm2, %v2582_v28, %v2598_v20  ;;  %v2630_v15 = vsel %vm2023_vm2, %v2598_v20, %v2582_v28  ;;  %v2599_v44 = vrot.slane %v5628_v3, 1  ;;  %3192 = vmatmul.mubr.f32.gmra.mxu1 %v8008_v12  ;;  %3463 = vmatmul.mubr.f32.gmra.mxu0 %v8008_v12  ;;  %v2566_v2 = vadd.f32 %v2534_v24, %v7759_v56 }
 0x2a1   : > { %v2661_v17 = vsel %vm283_vm3, %v2630_v15, 0.0  ;;  %v2692_v19 = vadd.f32 %v2614_v52, %v2564_v50  ;;  %v1853_v5 = vpop.f32.mrf.mxu0  ;;  %3197 = vmatprep.mubr.f32.mxu1 %v9737_v63  ;;  %3468 = vmatprep.mubr.f32.mxu0 %v9737_v63  ;;  %v2781_v41 = vmul.f32 0.2, %v2717_v31  ;;  %v8032_v57 = vsel %vm2748_vm5, %v2716_v29, %v2780_v55 }
 0x2a2   : > { %v2693_v8 = vadd.f32 %v2661_v17, %v7833_v4  ;;  %v2583_v11 = vrot.slane %v1853_v5, 1  ;;  %v2718_v36 = vadd.f32 %v7621_v45, %v2679_v35  ;;  %v8036_v59 = vadd.f32 %v7621_v45, %v2691_v61  ;;  %v3111_v4 = vpop.f32.mrf.mxu1 }
 0x2a3   : > { %v8030_v60 = vadd.f32 %v7621_v45, %v2692_v19  ;;  %v2567_v33 = vadd.f32 %v2535_v25, %v1618_v38  ;;  %vm2749_vm6 = vcmp.gt.f32.partialorder %v2717_v31, 0.0  ;;  %v4376_v50 = vrot.slane %v3109_v6, 7 }
 0x2a4   : > { %v2615_v16 = vsel %vm2023_vm2, %v2583_v11, %v2599_v44  ;;  %v2631_v56 = vsel %vm2023_vm2, %v2599_v44, %v2583_v11  ;;  %3198 = vmatmul.mubr.f32.gmra.mxu1 %v8032_v57  ;;  %3469 = vmatmul.mubr.f32.gmra.mxu0 %v8032_v57  ;;  %v8049_v40 = vadd.f32 %v7621_v45, %v2693_v8  ;;  %v3115_v20 = vpop.f32.mrf.mxu1  ;;  %v2782_v22 = vmul.f32 0.2, %v2718_v36 }
 0x2a5   : > { %v2663_v18 = vsel %vm283_vm3, %v2631_v56, 0.0  ;;  %v2694_v29 = vadd.f32 %v2615_v16, %v2566_v2  ;;  %3203 = vmatprep.mubr.f32.mxu1 %v9737_v63  ;;  %3474 = vmatprep.mubr.f32.mxu0 %v9737_v63  ;;  %v8054_v25 = vsel %vm2749_vm6, %v2717_v31, %v2781_v41  ;;  %v4392_v47 = vrot.slane %v3115_v20, 7 }
 0x2a6   : > { %v2695_v21 = vadd.f32 %v2663_v18, %v2567_v33  ;;  %vm2750_vm7 = vcmp.gt.f32.partialorder %v2718_v36, 0.0  ;;  %v3382_v35 = vpop.f32.mrf.mxu0  ;;  %v2783_v3 = vmul.f32 0.2, %v7880_v9  ;;  %v3117_v38 = vpop.f32.mrf.mxu1  ;;  %vm2751_vm8 = vcmp.gt.f32.partialorder %v7880_v9, 0.0 }
 0x2a7   : > { %v8052_v24 = vadd.f32 %v7621_v45, %v2694_v29  ;;  %v4424_v28 = vsel %vm1894_vm1, %v4392_v47, %v4376_v50  ;;  %v4408_v31 = vsel %vm1894_vm1, %v4376_v50, %v4392_v47  ;;  %v8067_v61 = vsel %vm2750_vm7, %v2718_v36, %v2782_v22 }
 0x2a8   : > { %3204 = vmatmul.mubr.f32.gmra.mxu1 %v8054_v25  ;;  %3475 = vmatmul.mubr.f32.gmra.mxu0 %v8054_v25  ;;  %v8059_v14 = vadd.f32 %v7621_v45, %v2695_v21  ;;  %v4440_v55 = vsel %vm280_vm0, %v4424_v28, 0.0  ;;  %v3384_v45 = vpop.f32.mrf.mxu0  ;;  %v4504_v52 = vrot.slane %v3382_v35, 1  ;;  %v4473_v19 = vadd.f32 %v4408_v31, %v3117_v38  ;;  %v9750_v38 = vld [vmem:[#allocation21_spill] sm:$0xff] }
 0x2a9   : > { %3209 = vmatprep.mubr.f32.mxu1 %v9737_v63  ;;  %3480 = vmatprep.mubr.f32.mxu0 %v9737_v63  ;;  %v4472_v44 = vadd.f32 %v4440_v55, %v3111_v4  ;;  %v8078_v5 = vsel %vm2751_vm8, %v7880_v9, %v2783_v3  ;;  %v2784_v2 = vmul.f32 0.2, %v7909_v54  ;;  %vm2752_vm9 = vcmp.gt.f32.partialorder %v7909_v54, 0.0  ;;  %v3015_v45 = vld [vmem:[#allocation8 + $0x3a0] sm:$0xff] }
 0x2aa   : > { %v3387_v15 = vpop.f32.mrf.mxu0  ;;  %v2785_v16 = vmul.f32 0.2, %v7906_v10  ;;  %vm2753_vm10 = vcmp.gt.f32.partialorder %v7906_v10, 0.0  ;;  %v2786_v4 = vmul.f32 0.2, %v7932_v62  ;;  %vm2754_vm11 = vcmp.gt.f32.partialorder %v7932_v62, 0.0 }
 0x2ab   : > { %v4520_v17 = vrot.slane %v3387_v15, 1  ;;  %v8097_v33 = vsel %vm2752_vm9, %v7909_v54, %v2784_v2  ;;  %v2787_v18 = vmul.f32 0.2, %v7927_v58  ;;  %vm2755_vm12 = vcmp.gt.f32.partialorder %v7927_v58, 0.0  ;;  %v2997_v15 = vld [vmem:[#allocation8 + $0x310] sm:$0xff] }
 0x2ac   : > { %3210 = vmatmul.mubr.f32.gmra.mxu1 %v8067_v61  ;;  %3481 = vmatmul.mubr.f32.gmra.mxu0 %v8067_v61  ;;  %v3389_v8 = vpop.f32.mrf.mxu0  ;;  %v8106_v56 = vsel %vm2753_vm10, %v7906_v10, %v2785_v16  ;;  %v8115_v54 = vsel %vm2754_vm11, %v7932_v62, %v2786_v4  ;;  %v2788_v29 = vmul.f32 0.2, %v7959_v7  ;;  %vm2756_vm13 = vcmp.gt.f32.partialorder %v7959_v7, 0.0  ;;  %v2961_v2 = vld [vmem:[#allocation8 + $0x1f0] sm:$0xff]  ;;  %v2916_v16 = vld [vmem:[#allocation8 + $0x88] sm:$0xff]  ;;  %v2907_v4 = vld [vmem:[#allocation8 + $0x40] sm:$0xff] }
 0x2ad   : > { %3215 = vmatprep.mubr.f32.mxu1 %v9737_v63  ;;  %3486 = vmatprep.mubr.f32.mxu0 %v9737_v63  ;;  %v4536_v11 = vsel %vm2023_vm2, %v4504_v52, %v4520_v17  ;;  %v4552_v41 = vsel %vm2023_vm2, %v4520_v17, %v4504_v52  ;;  %v8124_v10 = vsel %vm2755_vm12, %v7927_v58, %v2787_v18  ;;  %v2789_v50 = vmul.f32 0.2, %v7956_v1  ;;  %v9751_v52 = vld [vmem:[#allocation26_spill] sm:$0xff]  ;;  %v2979_v17 = vld [vmem:[#allocation8 + $0x280] sm:$0xff] }
 0x2ae   : > { %v4569_v9 = vsel %vm283_vm3, %v4552_v41, 0.0  ;;  %v8092_v6 = vadd.f32 %v4536_v11, %v4472_v44  ;;  %v8133_v62 = vsel %vm2756_vm13, %v7959_v7, %v2788_v29  ;;  %vm2757_vm14 = vcmp.gt.f32.partialorder %v7956_v1, 0.0  ;;  %v2988_v44 = vld [vmem:[#allocation8 + $0x2c8] sm:$0xff]  ;;  %v2943_v11 = vld [vmem:[#allocation8 + $0x160] sm:$0xff]  ;;  %v2934_v41 = vld [vmem:[#allocation8 + $0x118] sm:$0xff] }
 0x2af   : > { %v8094_v36 = vadd.f32 %v4569_v9, %v4473_v19  ;;  %v8142_v58 = vsel %vm2757_vm14, %v7956_v1, %v2789_v50  ;;  %v2790_v21 = vmul.f32 0.2, %v7987_v13  ;;  %vm2758_vm15 = vcmp.gt.f32.partialorder %v7987_v13, 0.0  ;;  %v2970_v19 = vld [vmem:[#allocation8 + $0x238] sm:$0xff]  ;;  %v2952_v8 = vld [vmem:[#allocation8 + $0x1a8] sm:$0xff]  ;;  %v2925_v9 = vld [vmem:[#allocation8 + $0xd0] sm:$0xff] }
 0x2b0   : > { %3216 = vmatmul.mubr.f32.gmra.mxu1 %v8078_v5  ;;  %3487 = vmatmul.mubr.f32.gmra.mxu0 %v8078_v5  ;;  %v2791_v20 = vmul.f32 0.2, %v7983_v32  ;;  %vm2759_vm4 = vcmp.gt.f32.partialorder %v7983_v32, 0.0  ;;  %v2792_v22 = vmul.f32 0.2, %v8015_v42  ;;  %vm2760_vm5 = vcmp.gt.f32.partialorder %v8015_v42, 0.0 }
 0x2b1   : > { %3221 = vmatprep.mubr.f32.mxu1 %v9737_v63  ;;  %3492 = vmatprep.mubr.f32.mxu0 %v9737_v63  ;;  %v8151_v7 = vsel %vm2758_vm15, %v7987_v13, %v2790_v21  ;;  %v2793_v47 = vmul.f32 0.2, %v8012_v49  ;;  %vm2761_vm6 = vcmp.gt.f32.partialorder %v8012_v49, 0.0  ;;  %v2794_v35 = vmul.f32 0.2, %v8036_v59 }
 0x2b2   : > { %v8160_v1 = vsel %vm2759_vm4, %v7983_v32, %v2791_v20  ;;  %v8169_v13 = vsel %vm2760_vm5, %v8015_v42, %v2792_v22  ;;  %vm2762_vm7 = vcmp.gt.f32.partialorder %v8036_v59, 0.0  ;;  %v2795_v28 = vmul.f32 0.2, %v8030_v60 }
 0x2b3   : > { %v8178_v32 = vsel %vm2761_vm6, %v8012_v49, %v2793_v47  ;;  %v8187_v42 = vsel %vm2762_vm7, %v8036_v59, %v2794_v35  ;;  %vm2763_vm8 = vcmp.gt.f32.partialorder %v8030_v60, 0.0  ;;  %v2796_v31 = vmul.f32 0.2, %v8049_v40 }
 0x2b4   : > { %3222 = vmatmul.mubr.f32.gmra.mxu1 %v8097_v33  ;;  %3493 = vmatmul.mubr.f32.gmra.mxu0 %v8097_v33  ;;  %v8196_v49 = vsel %vm2763_vm8, %v8030_v60, %v2795_v28  ;;  %vm2764_vm9 = vcmp.gt.f32.partialorder %v8049_v40, 0.0  ;;  %v2797_v3 = vmul.f32 0.2, %v8052_v24  ;;  %vm2765_vm10 = vcmp.gt.f32.partialorder %v8052_v24, 0.0 }
 0x2b5   : > { %3227 = vmatprep.mubr.f32.mxu1 %v9737_v63  ;;  %3498 = vmatprep.mubr.f32.mxu0 %v9737_v63  ;;  %v8205_v59 = vsel %vm2764_vm9, %v8049_v40, %v2796_v31  ;;  %v2798_v55 = vmul.f32 0.2, %v8059_v14  ;;  %vm2766_vm11 = vcmp.gt.f32.partialorder %v8059_v14, 0.0 }
 0x2b6   : > { %v8214_v60 = vsel %vm2765_vm10, %v8052_v24, %v2797_v3  ;;  %v3033_v24 = vld [vmem:[#allocation8 + $0x430] sm:$0xff] }
 0x2b7   : > { %v8223_v40 = vsel %vm2766_vm11, %v8059_v14, %v2798_v55  ;;  %v3024_v14 = vld [vmem:[#allocation8 + $0x3e8] sm:$0xff] }
 0x2b8   : > { %3228 = vmatmul.mubr.f32.gmra.mxu1 %v8106_v56  ;;  %3499 = vmatmul.mubr.f32.gmra.mxu0 %v8106_v56 }
 0x2b9   : > { %3233 = vmatprep.mubr.f32.mxu1 %v9737_v63  ;;  %3504 = vmatprep.mubr.f32.mxu0 %v9737_v63 }
 0x2bc   : > { %3234 = vmatmul.mubr.f32.gmra.mxu1 %v8115_v54  ;;  %3505 = vmatmul.mubr.f32.gmra.mxu0 %v8115_v54 }
 0x2bd   : > { %3239 = vmatprep.mubr.f32.mxu1 %v9737_v63  ;;  %3510 = vmatprep.mubr.f32.mxu0 %v9737_v63 }
 0x2c0   : > { %3240 = vmatmul.mubr.f32.gmra.mxu1 %v8124_v10  ;;  %3511 = vmatmul.mubr.f32.gmra.mxu0 %v8124_v10 }
 0x2c1   : > { %3245 = vmatprep.mubr.f32.mxu1 %v9737_v63  ;;  %3516 = vmatprep.mubr.f32.mxu0 %v9737_v63 }
 0x2c4   : > { %3246 = vmatmul.mubr.f32.gmra.mxu1 %v8133_v62  ;;  %3517 = vmatmul.mubr.f32.gmra.mxu0 %v8133_v62 }
 0x2c5   : > { %3251 = vmatprep.mubr.f32.mxu1 %v9737_v63  ;;  %3522 = vmatprep.mubr.f32.mxu0 %v9737_v63 }
 0x2c8   : > { %3252 = vmatmul.mubr.f32.gmra.mxu1 %v8142_v58  ;;  %3523 = vmatmul.mubr.f32.gmra.mxu0 %v8142_v58 }
 0x2c9   : > { %3257 = vmatprep.mubr.f32.mxu1 %v9737_v63  ;;  %3528 = vmatprep.mubr.f32.mxu0 %v9737_v63 }
 0x2cc   : > { %3258 = vmatmul.mubr.f32.gmra.mxu1 %v8151_v7  ;;  %3529 = vmatmul.mubr.f32.gmra.mxu0 %v8151_v7 }
 0x2cd   : > { %3263 = vmatprep.mubr.f32.mxu1 %v9737_v63  ;;  %3534 = vmatprep.mubr.f32.mxu0 %v9737_v63 }
 0x2d0   : > { %3264 = vmatmul.mubr.f32.gmra.mxu1 %v8160_v1  ;;  %3535 = vmatmul.mubr.f32.gmra.mxu0 %v8160_v1 }
 0x2d1   : > { %3269 = vmatprep.mubr.f32.mxu1 %v9737_v63  ;;  %3540 = vmatprep.mubr.f32.mxu0 %v9737_v63 }
 0x2d4   : > { %3270 = vmatmul.mubr.f32.gmra.mxu1 %v8169_v13  ;;  %3541 = vmatmul.mubr.f32.gmra.mxu0 %v8169_v13 }
 0x2d5   : > { %3275 = vmatprep.mubr.f32.mxu1 %v9737_v63  ;;  %3546 = vmatprep.mubr.f32.mxu0 %v9737_v63 }
 0x2d8   : > { %3276 = vmatmul.mubr.f32.gmra.mxu1 %v8178_v32  ;;  %3547 = vmatmul.mubr.f32.gmra.mxu0 %v8178_v32 }
 0x2d9   : > { %3281 = vmatprep.mubr.f32.mxu1 %v9737_v63  ;;  %3552 = vmatprep.mubr.f32.mxu0 %v9737_v63 }
 0x2dc   : > { %3282 = vmatmul.mubr.f32.gmra.mxu1 %v8187_v42  ;;  %3553 = vmatmul.mubr.f32.gmra.mxu0 %v8187_v42 }
 0x2dd   : > { %3287 = vmatprep.mubr.f32.mxu1 %v9737_v63  ;;  %3558 = vmatprep.mubr.f32.mxu0 %v9737_v63 }
 0x2e0   : > { %3288 = vmatmul.mubr.f32.gmra.mxu1 %v8196_v49  ;;  %3559 = vmatmul.mubr.f32.gmra.mxu0 %v8196_v49 }
 0x2e1   : > { %3293 = vmatprep.mubr.f32.mxu1 %v9737_v63  ;;  %3564 = vmatprep.mubr.f32.mxu0 %v9737_v63 }
 0x2e4   : > { %3294 = vmatmul.mubr.f32.gmra.mxu1 %v8205_v59  ;;  %3565 = vmatmul.mubr.f32.gmra.mxu0 %v8205_v59 }
 0x2e5   : > { %3299 = vmatprep.mubr.f32.mxu1 %v9737_v63  ;;  %3570 = vmatprep.mubr.f32.mxu0 %v9737_v63 }
 0x2e8   : > { %3300 = vmatmul.mubr.f32.gmra.mxu1 %v8214_v60  ;;  %3571 = vmatmul.mubr.f32.gmra.mxu0 %v8214_v60 }
 0x2e9   : > { %3303 = vmatprep.mubr.f32.mxu1 %v9737_v63  ;;  %3575 = vmatprep.mubr.f32.mxu0 %v9737_v63 }
 0x2ec   : > { %3304 = vmatmul.mubr.f32.gmra.mxu1 %v8223_v40  ;;  %3576 = vmatmul.mubr.f32.gmra.mxu0 %v8223_v40 }
 0x2ed   : > { %3307 = vmatprep.mubr.f32.mxu1 %v9737_v63  ;;  %3580 = vmatprep.mubr.f32.mxu0 %v9737_v63 }
 0x2f0   : > { %3308 = vmatmul.mubr.f32.gmra.mxu1 %v9737_v63  ;;  %3581 = vmatmul.mubr.f32.gmra.mxu0 %v9737_v63 }
 0x2f1   : > { %3311 = vmatprep.mubr.f32.mxu1 %v9737_v63  ;;  %3584 = vmatprep.mubr.f32.mxu0 %v9737_v63 }
 0x2f4   : > { %3312 = vmatmul.mubr.f32.gmra.mxu1 %v9737_v63  ;;  %3585 = vmatmul.mubr.f32.gmra.mxu0 %v9737_v63 }
 0x2f5   : > { %3653 = vmatprep.mubr.f32.mxu1 %v9737_v63  ;;  %3926 = vmatprep.mubr.f32.mxu0 %v9737_v63 }
 0x2f8   : > { %3654 = vmatmul.mubr.f32.vlgmr.msra.gmra.mxu1 %v9737_v63  ;;  %3927 = vmatmul.mubr.f32.vlgmr.msra.gmra.mxu0 %v9737_v63 }
 0x2f9   : > { %5630 = vmatpush3.msra.mxu1 %v7746_v27  ;;  %3657 = vmatprep.mubr.f32.mxu1 %v9737_v63  ;;  %v3006_v27 = vld [vmem:[#allocation8 + $0x358] sm:$0xff] }
 0x2fa   : > { %3930 = vmatprep.mubr.f32.mxu0 %v9737_v63  ;;  %5631 = vmatprep.subr.mxu1 %v3033_v24 }
 0x2fb   : > { %5632 = vmatpush3.msra.mxu1 %v3033_v24 }
 0x2fc   : > { %3658 = vmatmul.mubr.f32.gmra.mxu1 %v9737_v63  ;;  %3931 = vmatmul.mubr.f32.gmra.mxu0 %v9737_v63 }
 0x2fd   : > { %3661 = vmatprep.mubr.f32.mxu1 %v9737_v63  ;;  %3934 = vmatprep.mubr.f32.mxu0 %v9737_v63 }
 0x2fe   : > { %5633 = vmatprep.subr.mxu1 %v3024_v14 }
 0x2ff   : > { %5634 = vmatpush3.msra.mxu1 %v3024_v14 }
 0x300   : > { %3662 = vmatmul.mubr.f32.gmra.mxu1 %v9750_v38  ;;  %3935 = vmatmul.mubr.f32.gmra.mxu0 %v9750_v38 }
 0x301   : > { %3667 = vmatprep.mubr.f32.mxu1 %v9737_v63  ;;  %3938 = vmatprep.mubr.f32.mxu0 %v9737_v63 }
 0x302   : > { %5635 = vmatprep.subr.mxu1 %v3015_v45 }
 0x303   : > { %5636 = vmatpush3.msra.mxu1 %v3015_v45 }
 0x304   : > { %3668 = vmatmul.mubr.f32.gmra.mxu1 %v9751_v52  ;;  %3939 = vmatmul.mubr.f32.gmra.mxu0 %v9751_v52 }
 0x305   : > { %3673 = vmatprep.mubr.f32.mxu1 %v9737_v63  ;;  %3942 = vmatprep.mubr.f32.mxu0 %v9737_v63 }
 0x306   : > { %5637 = vmatprep.subr.mxu1 %v3006_v27 }
 0x307   : > { %5638 = vmatpush3.msra.mxu1 %v3006_v27 }
 0x308   : > { %3674 = vmatmul.mubr.f32.gmra.mxu1 %v7740_v30  ;;  %3943 = vmatmul.mubr.f32.gmra.mxu0 %v7740_v30 }
 0x309   : > { %3679 = vmatprep.mubr.f32.mxu1 %v9737_v63  ;;  %3948 = vmatprep.mubr.f32.mxu0 %v9737_v63 }
 0x30a   : > { %5639 = vmatprep.subr.mxu1 %v2997_v15 }
 0x30b   : > { %5640 = vmatpush3.msra.mxu1 %v2997_v15 }
 0x30c   : > { %3680 = vmatmul.mubr.f32.gmra.mxu1 %v7770_v39  ;;  %3949 = vmatmul.mubr.f32.gmra.mxu0 %v7770_v39 }
 0x30d   : > { %3685 = vmatprep.mubr.f32.mxu1 %v9737_v63  ;;  %3954 = vmatprep.mubr.f32.mxu0 %v9737_v63 }
 0x30e   : > { %5641 = vmatprep.subr.mxu1 %v2988_v44 }
 0x30f   : > { %5642 = vmatpush3.msra.mxu1 %v2988_v44 }
 0x310   : > { %3686 = vmatmul.mubr.f32.gmra.mxu1 %v7803_v0  ;;  %3955 = vmatmul.mubr.f32.gmra.mxu0 %v7803_v0 }
 0x311   : > { %3691 = vmatprep.mubr.f32.mxu1 %v9737_v63  ;;  %3960 = vmatprep.mubr.f32.mxu0 %v9737_v63 }
 0x312   : > { %5643 = vmatprep.subr.mxu1 %v2979_v17 }
 0x313   : > { %5644 = vmatpush3.msra.mxu1 %v2979_v17 }
 0x314   : > { %3692 = vmatmul.mubr.f32.gmra.mxu1 %v7830_v23  ;;  %3961 = vmatmul.mubr.f32.gmra.mxu0 %v7830_v23 }
 0x315   : > { %3697 = vmatprep.mubr.f32.mxu1 %v9737_v63  ;;  %3966 = vmatprep.mubr.f32.mxu0 %v9737_v63 }
 0x316   : > { %5645 = vmatprep.subr.mxu1 %v2970_v19 }
 0x317   : > { %5646 = vmatpush3.msra.mxu1 %v2970_v19 }
 0x318   : > { %3698 = vmatmul.mubr.f32.gmra.mxu1 %v7854_v37  ;;  %3967 = vmatmul.mubr.f32.gmra.mxu0 %v7854_v37 }
 0x319   : > { %3703 = vmatprep.mubr.f32.mxu1 %v9737_v63  ;;  %3972 = vmatprep.mubr.f32.mxu0 %v9737_v63 }
 0x31a   : > { %5647 = vmatprep.subr.mxu1 %v2961_v2 }
 0x31b   : > { %5648 = vmatpush3.msra.mxu1 %v2961_v2 }
 0x31c   : > { %3704 = vmatmul.mubr.f32.gmra.mxu1 %v7874_v48  ;;  %3973 = vmatmul.mubr.f32.gmra.mxu0 %v7874_v48 }
 0x31d   : > { %3709 = vmatprep.mubr.f32.mxu1 %v9737_v63  ;;  %3978 = vmatprep.mubr.f32.mxu0 %v9737_v63 }
 0x31e   : > { %5649 = vmatprep.subr.mxu1 %v2952_v8 }
 0x31f   : > { %5650 = vmatpush3.msra.mxu1 %v2952_v8 }
 0x320   : > { %3710 = vmatmul.mubr.f32.gmra.mxu1 %v7902_v26  ;;  %3979 = vmatmul.mubr.f32.gmra.mxu0 %v7902_v26 }
 0x321   : > { %3715 = vmatprep.mubr.f32.mxu1 %v9737_v63  ;;  %3984 = vmatprep.mubr.f32.mxu0 %v9737_v63 }
 0x322   : > { %5651 = vmatprep.subr.mxu1 %v2943_v11 }
 0x323   : > { %5652 = vmatpush3.msra.mxu1 %v2943_v11 }
 0x324   : > { %3716 = vmatmul.mubr.f32.gmra.mxu1 %v7929_v46  ;;  %3985 = vmatmul.mubr.f32.gmra.mxu0 %v7929_v46 }
 0x325   : > { %3721 = vmatprep.mubr.f32.mxu1 %v9737_v63  ;;  %3990 = vmatprep.mubr.f32.mxu0 %v9737_v63 }
 0x326   : > { %5653 = vmatprep.subr.mxu1 %v2934_v41 }
 0x327   : > { %5654 = vmatpush3.msra.mxu1 %v2934_v41 }
 0x328   : > { %3722 = vmatmul.mubr.f32.gmra.mxu1 %v7952_v51  ;;  %3991 = vmatmul.mubr.f32.gmra.mxu0 %v7952_v51 }
 0x329   : > { %3727 = vmatprep.mubr.f32.mxu1 %v9737_v63  ;;  %3996 = vmatprep.mubr.f32.mxu0 %v9737_v63 }
 0x32a   : > { %5655 = vmatprep.subr.mxu1 %v2925_v9 }
 0x32b   : > { %5656 = vmatpush3.msra.mxu1 %v2925_v9 }
 0x32c   : > { %3728 = vmatmul.mubr.f32.gmra.mxu1 %v7979_v34  ;;  %3997 = vmatmul.mubr.f32.gmra.mxu0 %v7979_v34 }
 0x32d   : > { %3733 = vmatprep.mubr.f32.mxu1 %v9737_v63  ;;  %4002 = vmatprep.mubr.f32.mxu0 %v9737_v63 }
 0x32e   : > { %5657 = vmatprep.subr.mxu1 %v2916_v16 }
 0x32f   : > { %5658 = vmatpush3.msra.mxu1 %v2916_v16 }
 0x330   : > { %v3121_v18 = vpop.f32.mrf.mxu1  ;;  %v3392_v29 = vpop.f32.mrf.mxu0  ;;  %3734 = vmatmul.mubr.f32.gmra.mxu1 %v8008_v12  ;;  %4003 = vmatmul.mubr.f32.gmra.mxu0 %v8008_v12 }
 0x331   : > { %3739 = vmatprep.mubr.f32.mxu1 %v9737_v63  ;;  %4008 = vmatprep.mubr.f32.mxu0 %v9737_v63  ;;  %v4377_v47 = vrot.slane %v3121_v18, 7  ;;  %v4505_v35 = vrot.slane %v3392_v29, 1 }
 0x332   : > { %v3123_v50 = vpop.f32.mrf.mxu1  ;;  %v3394_v21 = vpop.f32.mrf.mxu0  ;;  %5659 = vmatprep.subr.mxu1 %v2907_v4 }
 0x333   : > { %5660 = vmatpush3.msra.mxu1 %v2907_v4  ;;  %v4632_v3 = vrot.slane %v3394_v21, 7 }
 0x334   : > { %v3127_v20 = vpop.f32.mrf.mxu1  ;;  %v3398_v22 = vpop.f32.mrf.mxu0  ;;  %3740 = vmatmul.mubr.f32.gmra.mxu1 %v8032_v57  ;;  %4009 = vmatmul.mubr.f32.gmra.mxu0 %v8032_v57 }
 0x335   : > { %v4393_v28 = vrot.slane %v3127_v20, 7  ;;  %v4521_v31 = vrot.slane %v3398_v22, 1  ;;  %3745 = vmatprep.mubr.f32.mxu1 %v9737_v63  ;;  %4014 = vmatprep.mubr.f32.mxu0 %v9737_v63 }
 0x336   : > { %v3129_v55 = vpop.f32.mrf.mxu1  ;;  %v3400_v24 = vpop.f32.mrf.mxu0 }
 0x337   : > { %v4425_v14 = vsel %vm1894_vm1, %v4393_v28, %v4377_v47  ;;  %v4537_v45 = vsel %vm2023_vm2, %v4505_v35, %v4521_v31  ;;  %v4553_v27 = vsel %vm2023_vm2, %v4521_v31, %v4505_v35  ;;  %v4409_v15 = vsel %vm1894_vm1, %v4377_v47, %v4393_v28 }
 0x338   : > { %v4442_v44 = vsel %vm280_vm0, %v4425_v14, 0.0  ;;  %v4475_v17 = vadd.f32 %v4409_v15, %v3129_v55  ;;  %v4571_v19 = vsel %vm283_vm3, %v4553_v27, 0.0  ;;  %v4648_v2 = vrot.slane %v3400_v24, 7  ;;  %v3133_v8 = vpop.f32.mrf.mxu1  ;;  %v3404_v11 = vpop.f32.mrf.mxu0  ;;  %3746 = vmatmul.mubr.f32.gmra.mxu1 %v8054_v25  ;;  %4015 = vmatmul.mubr.f32.gmra.mxu0 %v8054_v25 }
 0x339   : > { %3751 = vmatprep.mubr.f32.mxu1 %v9737_v63  ;;  %4020 = vmatprep.mubr.f32.mxu0 %v9737_v63  ;;  %v4474_v41 = vadd.f32 %v4442_v44, %v3123_v50  ;;  %v4378_v28 = vrot.slane %v3133_v8, 7  ;;  %v4506_v31 = vrot.slane %v3404_v11, 1 }
 0x33a   : > { %v4603_v9 = vadd.f32 %v4571_v19, %v4475_v17  ;;  %v3135_v16 = vpop.f32.mrf.mxu1  ;;  %v3406_v4 = vpop.f32.mrf.mxu0  ;;  %v4680_v18 = vsel %vm1894_vm1, %v4648_v2, %v4632_v3  ;;  %v4664_v29 = vsel %vm1894_vm1, %v4632_v3, %v4648_v2 }
 0x33b   : > { %v4696_v21 = vsel %vm280_vm0, %v4680_v18, 0.0  ;;  %v8325_v20 = vadd.f32 %v4664_v29, %v8094_v36  ;;  %v4602_v22 = vadd.f32 %v4537_v45, %v4474_v41  ;;  %v4633_v36 = vrot.slane %v3406_v4, 7 }
 0x33c   : > { %v3139_v47 = vpop.f32.mrf.mxu1  ;;  %v3410_v35 = vpop.f32.mrf.mxu0  ;;  %3752 = vmatmul.mubr.f32.gmra.mxu1 %v8067_v61  ;;  %4021 = vmatmul.mubr.f32.gmra.mxu0 %v8067_v61  ;;  %v8330_v50 = vadd.f32 %v4696_v21, %v8092_v6 }
 0x33d   : > { %v4394_v55 = vrot.slane %v3139_v47, 7  ;;  %v4522_v3 = vrot.slane %v3410_v35, 1  ;;  %3757 = vmatprep.mubr.f32.mxu1 %v9737_v63  ;;  %4026 = vmatprep.mubr.f32.mxu0 %v9737_v63 }
 0x33e   : > { %v3141_v24 = vpop.f32.mrf.mxu1  ;;  %v3412_v14 = vpop.f32.mrf.mxu0 }
 0x33f   : > { %v4426_v45 = vsel %vm1894_vm1, %v4394_v55, %v4378_v28  ;;  %v4538_v27 = vsel %vm2023_vm2, %v4506_v31, %v4522_v3  ;;  %v4554_v6 = vsel %vm2023_vm2, %v4522_v3, %v4506_v31  ;;  %v4410_v15 = vsel %vm1894_vm1, %v4378_v28, %v4394_v55 }
 0x340   : > { %v4444_v44 = vsel %vm280_vm0, %v4426_v45, 0.0  ;;  %v4477_v17 = vadd.f32 %v4410_v15, %v3141_v24  ;;  %v4573_v19 = vsel %vm283_vm3, %v4554_v6, 0.0  ;;  %v4649_v2 = vrot.slane %v3412_v14, 7  ;;  %v3145_v8 = vpop.f32.mrf.mxu1  ;;  %v3416_v11 = vpop.f32.mrf.mxu0  ;;  %3758 = vmatmul.mubr.f32.gmra.mxu1 %v8078_v5  ;;  %4027 = vmatmul.mubr.f32.gmra.mxu0 %v8078_v5 }
 0x341   : > { %3763 = vmatprep.mubr.f32.mxu1 %v9737_v63  ;;  %4032 = vmatprep.mubr.f32.mxu0 %v9737_v63  ;;  %v4476_v41 = vadd.f32 %v4444_v44, %v3135_v16  ;;  %v4379_v24 = vrot.slane %v3145_v8, 7  ;;  %v4507_v14 = vrot.slane %v3416_v11, 1 }
 0x342   : > { %v4605_v4 = vadd.f32 %v4573_v19, %v4477_v17  ;;  %v3147_v18 = vpop.f32.mrf.mxu1  ;;  %v3418_v29 = vpop.f32.mrf.mxu0  ;;  %v4681_v21 = vsel %vm1894_vm1, %v4649_v2, %v4633_v36  ;;  %v4665_v47 = vsel %vm1894_vm1, %v4633_v36, %v4649_v2 }
 0x343   : > { %v4698_v35 = vsel %vm280_vm0, %v4681_v21, 0.0  ;;  %v8356_v28 = vadd.f32 %v4665_v47, %v4603_v9  ;;  %v4604_v31 = vadd.f32 %v4538_v27, %v4476_v41  ;;  %v4634_v36 = vrot.slane %v3418_v29, 7 }
 0x344   : > { %v3151_v55 = vpop.f32.mrf.mxu1  ;;  %v3422_v3 = vpop.f32.mrf.mxu0  ;;  %3764 = vmatmul.mubr.f32.gmra.mxu1 %v8097_v33  ;;  %4033 = vmatmul.mubr.f32.gmra.mxu0 %v8097_v33  ;;  %v8360_v16 = vadd.f32 %v4698_v35, %v4602_v22 }
 0x345   : > { %v4395_v45 = vrot.slane %v3151_v55, 7  ;;  %v4523_v6 = vrot.slane %v3422_v3, 1  ;;  %3769 = vmatprep.mubr.f32.mxu1 %v9737_v63  ;;  %4038 = vmatprep.mubr.f32.mxu0 %v9737_v63 }
 0x346   : > { %v3153_v9 = vpop.f32.mrf.mxu1  ;;  %v3424_v15 = vpop.f32.mrf.mxu0 }
 0x347   : > { %v4427_v27 = vsel %vm1894_vm1, %v4395_v45, %v4379_v24  ;;  %v4539_v44 = vsel %vm2023_vm2, %v4507_v14, %v4523_v6  ;;  %v4555_v22 = vsel %vm2023_vm2, %v4523_v6, %v4507_v14  ;;  %v4411_v17 = vsel %vm1894_vm1, %v4379_v24, %v4395_v45 }
 0x348   : > { %v4446_v19 = vsel %vm280_vm0, %v4427_v27, 0.0  ;;  %v4479_v2 = vadd.f32 %v4411_v17, %v3153_v9  ;;  %v4575_v8 = vsel %vm283_vm3, %v4555_v22, 0.0  ;;  %v4650_v11 = vrot.slane %v3424_v15, 7  ;;  %v3157_v41 = vpop.f32.mrf.mxu1  ;;  %v3428_v29 = vpop.f32.mrf.mxu0  ;;  %3770 = vmatmul.mubr.f32.gmra.mxu1 %v8106_v56  ;;  %4039 = vmatmul.mubr.f32.gmra.mxu0 %v8106_v56 }
 0x349   : > { %3775 = vmatprep.mubr.f32.mxu1 %v9737_v63  ;;  %4044 = vmatprep.mubr.f32.mxu0 %v9737_v63  ;;  %v4478_v21 = vadd.f32 %v4446_v19, %v3147_v18  ;;  %v4380_v27 = vrot.slane %v3157_v41, 7  ;;  %v4508_v22 = vrot.slane %v3428_v29, 1 }
 0x34a   : > { %v4607_v47 = vadd.f32 %v4575_v8, %v4479_v2  ;;  %v3159_v35 = vpop.f32.mrf.mxu1  ;;  %v3430_v55 = vpop.f32.mrf.mxu0  ;;  %v4682_v3 = vsel %vm1894_vm1, %v4650_v11, %v4634_v36  ;;  %v4666_v24 = vsel %vm1894_vm1, %v4634_v36, %v4650_v11 }
 0x34b   : > { %v4700_v14 = vsel %vm280_vm0, %v4682_v3, 0.0  ;;  %v8386_v45 = vadd.f32 %v4666_v24, %v4605_v4  ;;  %v4606_v6 = vadd.f32 %v4539_v44, %v4478_v21  ;;  %v4635_v36 = vrot.slane %v3430_v55, 7 }
 0x34c   : > { %v3163_v9 = vpop.f32.mrf.mxu1  ;;  %v3434_v15 = vpop.f32.mrf.mxu0  ;;  %3776 = vmatmul.mubr.f32.gmra.mxu1 %v8115_v54  ;;  %4045 = vmatmul.mubr.f32.gmra.mxu0 %v8115_v54  ;;  %v8390_v18 = vadd.f32 %v4700_v14, %v4604_v31 }
 0x34d   : > { %v4396_v17 = vrot.slane %v3163_v9, 7  ;;  %v4524_v19 = vrot.slane %v3434_v15, 1  ;;  %3781 = vmatprep.mubr.f32.mxu1 %v9737_v63  ;;  %4050 = vmatprep.mubr.f32.mxu0 %v9737_v63 }
 0x34e   : > { %v3165_v4 = vpop.f32.mrf.mxu1  ;;  %v3436_v2 = vpop.f32.mrf.mxu0 }
 0x34f   : > { %v4428_v44 = vsel %vm1894_vm1, %v4396_v17, %v4380_v27  ;;  %v4540_v8 = vsel %vm2023_vm2, %v4508_v22, %v4524_v19  ;;  %v4556_v31 = vsel %vm2023_vm2, %v4524_v19, %v4508_v22  ;;  %v4412_v11 = vsel %vm1894_vm1, %v4380_v27, %v4396_v17 }
 0x350   : > { %v4448_v41 = vsel %vm280_vm0, %v4428_v44, 0.0  ;;  %v4481_v29 = vadd.f32 %v4412_v11, %v3165_v4  ;;  %v4577_v21 = vsel %vm283_vm3, %v4556_v31, 0.0  ;;  %v4651_v55 = vrot.slane %v3436_v2, 7  ;;  %v3169_v3 = vpop.f32.mrf.mxu1  ;;  %v3440_v24 = vpop.f32.mrf.mxu0  ;;  %3782 = vmatmul.mubr.f32.gmra.mxu1 %v8124_v10  ;;  %4051 = vmatmul.mubr.f32.gmra.mxu0 %v8124_v10 }
 0x351   : > { %3787 = vmatprep.mubr.f32.mxu1 %v9737_v63  ;;  %4056 = vmatprep.mubr.f32.mxu0 %v9737_v63  ;;  %v4480_v14 = vadd.f32 %v4448_v41, %v3159_v35  ;;  %v4381_v11 = vrot.slane %v3169_v3, 7  ;;  %v4509_v41 = vrot.slane %v3440_v24, 1 }
 0x352   : > { %v4609_v9 = vadd.f32 %v4577_v21, %v4481_v29  ;;  %v3171_v15 = vpop.f32.mrf.mxu1  ;;  %v3442_v27 = vpop.f32.mrf.mxu0  ;;  %v4683_v22 = vsel %vm1894_vm1, %v4651_v55, %v4635_v36  ;;  %v4667_v17 = vsel %vm1894_vm1, %v4635_v36, %v4651_v55 }
 0x353   : > { %v4702_v19 = vsel %vm280_vm0, %v4683_v22, 0.0  ;;  %v8416_v4 = vadd.f32 %v4667_v17, %v4607_v47  ;;  %v4608_v2 = vadd.f32 %v4540_v8, %v4480_v14  ;;  %v4636_v36 = vrot.slane %v3442_v27, 7 }
 0x354   : > { %v3175_v44 = vpop.f32.mrf.mxu1  ;;  %v3446_v31 = vpop.f32.mrf.mxu0  ;;  %3788 = vmatmul.mubr.f32.gmra.mxu1 %v8133_v62  ;;  %4057 = vmatmul.mubr.f32.gmra.mxu0 %v8133_v62  ;;  %v8420_v35 = vadd.f32 %v4702_v19, %v4606_v6 }
 0x355   : > { %9752 = vst [vmem:[#allocation24_spill] sm:$0xff] %v8416_v4  ;;  %v4397_v29 = vrot.slane %v3175_v44, 7  ;;  %v4525_v21 = vrot.slane %v3446_v31, 1  ;;  %3793 = vmatprep.mubr.f32.mxu1 %v9737_v63  ;;  %4062 = vmatprep.mubr.f32.mxu0 %v9737_v63 }
 0x356   : > { %9753 = vst [vmem:[#allocation27_spill] sm:$0xff] %v8420_v35  ;;  %v3177_v47 = vpop.f32.mrf.mxu1  ;;  %v3448_v55 = vpop.f32.mrf.mxu0 }
 0x357   : > { %v4429_v8 = vsel %vm1894_vm1, %v4397_v29, %v4381_v11  ;;  %v4541_v14 = vsel %vm2023_vm2, %v4509_v41, %v4525_v21  ;;  %v4557_v6 = vsel %vm2023_vm2, %v4525_v21, %v4509_v41  ;;  %v4413_v3 = vsel %vm1894_vm1, %v4381_v11, %v4397_v29 }
 0x358   : > { %v4450_v24 = vsel %vm280_vm0, %v4429_v8, 0.0  ;;  %v4483_v22 = vadd.f32 %v4413_v3, %v3177_v47  ;;  %v4579_v27 = vsel %vm283_vm3, %v4557_v6, 0.0  ;;  %v4652_v17 = vrot.slane %v3448_v55, 7  ;;  %v3181_v19 = vpop.f32.mrf.mxu1  ;;  %v3452_v44 = vpop.f32.mrf.mxu0  ;;  %3794 = vmatmul.mubr.f32.gmra.mxu1 %v8142_v58  ;;  %4063 = vmatmul.mubr.f32.gmra.mxu0 %v8142_v58 }
 0x359   : > { %3799 = vmatprep.mubr.f32.mxu1 %v9737_v63  ;;  %4068 = vmatprep.mubr.f32.mxu0 %v9737_v63  ;;  %v4482_v31 = vadd.f32 %v4450_v24, %v3171_v15  ;;  %v4382_v24 = vrot.slane %v3181_v19, 7 }
 0x35a   : > { %v4611_v11 = vadd.f32 %v4579_v27, %v4483_v22  ;;  %v3183_v41 = vpop.f32.mrf.mxu1  ;;  %v3454_v29 = vpop.f32.mrf.mxu0  ;;  %v4684_v21 = vsel %vm1894_vm1, %v4652_v17, %v4636_v36  ;;  %v4668_v47 = vsel %vm1894_vm1, %v4636_v36, %v4652_v17  ;;  %v4510_v22 = vrot.slane %v3452_v44, 1 }
 0x35b   : > { %v4704_v55 = vsel %vm280_vm0, %v4684_v21, 0.0  ;;  %v8446_v8 = vadd.f32 %v4668_v47, %v4609_v9  ;;  %v4610_v6 = vadd.f32 %v4541_v14, %v4482_v31  ;;  %v4637_v36 = vrot.slane %v3454_v29, 7 }
 0x35c   : > { %v3187_v3 = vpop.f32.mrf.mxu1  ;;  %v3458_v4 = vpop.f32.mrf.mxu0  ;;  %3800 = vmatmul.mubr.f32.gmra.mxu1 %v8151_v7  ;;  %4069 = vmatmul.mubr.f32.gmra.mxu0 %v8151_v7  ;;  %v8450_v15 = vadd.f32 %v4704_v55, %v4608_v2 }
 0x35d   : > { %9754 = vst [vmem:[#allocation25_spill] sm:$0xff] %v8446_v8  ;;  %v4398_v27 = vrot.slane %v3187_v3, 7  ;;  %v4526_v35 = vrot.slane %v3458_v4, 1  ;;  %3805 = vmatprep.mubr.f32.mxu1 %v9737_v63  ;;  %4074 = vmatprep.mubr.f32.mxu0 %v9737_v63 }
 0x35e   : > { %9755 = vst [vmem:[#allocation35_spill] sm:$0xff] %v8450_v15  ;;  %v3189_v9 = vpop.f32.mrf.mxu1  ;;  %v3460_v17 = vpop.f32.mrf.mxu0 }
 0x35f   : > { %v4430_v14 = vsel %vm1894_vm1, %v4398_v27, %v4382_v24  ;;  %v4542_v31 = vsel %vm2023_vm2, %v4510_v22, %v4526_v35  ;;  %v4558_v2 = vsel %vm2023_vm2, %v4526_v35, %v4510_v22  ;;  %v4414_v19 = vsel %vm1894_vm1, %v4382_v24, %v4398_v27 }
 0x360   : > { %v4452_v4 = vsel %vm280_vm0, %v4430_v14, 0.0  ;;  %v4485_v44 = vadd.f32 %v4414_v19, %v3189_v9  ;;  %v4581_v29 = vsel %vm283_vm3, %v4558_v2, 0.0  ;;  %v4653_v21 = vrot.slane %v3460_v17, 7  ;;  %v3193_v47 = vpop.f32.mrf.mxu1  ;;  %v3464_v55 = vpop.f32.mrf.mxu0  ;;  %3806 = vmatmul.mubr.f32.gmra.mxu1 %v8160_v1  ;;  %4075 = vmatmul.mubr.f32.gmra.mxu0 %v8160_v1 }
 0x361   : > { %3811 = vmatprep.mubr.f32.mxu1 %v9737_v63  ;;  %4080 = vmatprep.mubr.f32.mxu0 %v9737_v63  ;;  %v4484_v35 = vadd.f32 %v4452_v4, %v3183_v41  ;;  %v4383_v4 = vrot.slane %v3193_v47, 7 }
 0x362   : > { %v4613_v3 = vadd.f32 %v4581_v29, %v4485_v44  ;;  %v3195_v24 = vpop.f32.mrf.mxu1  ;;  %v3466_v22 = vpop.f32.mrf.mxu0  ;;  %v4685_v27 = vsel %vm1894_vm1, %v4653_v21, %v4637_v36  ;;  %v4669_v9 = vsel %vm1894_vm1, %v4637_v36, %v4653_v21  ;;  %v4511_v44 = vrot.slane %v3464_v55, 1 }
 0x363   : > { %v4706_v17 = vsel %vm280_vm0, %v4685_v27, 0.0  ;;  %v8476_v14 = vadd.f32 %v4669_v9, %v4611_v11  ;;  %v4612_v2 = vadd.f32 %v4542_v31, %v4484_v35  ;;  %v4638_v36 = vrot.slane %v3466_v22, 7 }
 0x364   : > { %v3199_v19 = vpop.f32.mrf.mxu1  ;;  %v3470_v8 = vpop.f32.mrf.mxu0  ;;  %3812 = vmatmul.mubr.f32.gmra.mxu1 %v8169_v13  ;;  %4081 = vmatmul.mubr.f32.gmra.mxu0 %v8169_v13  ;;  %v8480_v41 = vadd.f32 %v4706_v17, %v4610_v6 }
 0x365   : > { %9756 = vst [vmem:[#allocation33_spill] sm:$0xff] %v8476_v14  ;;  %v4399_v29 = vrot.slane %v3199_v19, 7  ;;  %v4527_v15 = vrot.slane %v3470_v8, 1  ;;  %3817 = vmatprep.mubr.f32.mxu1 %v9737_v63  ;;  %4086 = vmatprep.mubr.f32.mxu0 %v9737_v63 }
 0x366   : > { %9757 = vst [vmem:[#allocation37_spill] sm:$0xff] %v8480_v41  ;;  %v3201_v11 = vpop.f32.mrf.mxu1  ;;  %v3472_v21 = vpop.f32.mrf.mxu0 }
 0x367   : > { %v4431_v31 = vsel %vm1894_vm1, %v4399_v29, %v4383_v4  ;;  %v4543_v35 = vsel %vm2023_vm2, %v4511_v44, %v4527_v15  ;;  %v4559_v6 = vsel %vm2023_vm2, %v4527_v15, %v4511_v44  ;;  %v4415_v47 = vsel %vm1894_vm1, %v4383_v4, %v4399_v29 }
 0x368   : > { %v4454_v8 = vsel %vm280_vm0, %v4431_v31, 0.0  ;;  %v4487_v55 = vadd.f32 %v4415_v47, %v3201_v11  ;;  %v4583_v22 = vsel %vm283_vm3, %v4559_v6, 0.0  ;;  %v4654_v27 = vrot.slane %v3472_v21, 7  ;;  %v3205_v9 = vpop.f32.mrf.mxu1  ;;  %v3476_v17 = vpop.f32.mrf.mxu0  ;;  %3818 = vmatmul.mubr.f32.gmra.mxu1 %v8178_v32  ;;  %4087 = vmatmul.mubr.f32.gmra.mxu0 %v8178_v32 }
 0x369   : > { %3823 = vmatprep.mubr.f32.mxu1 %v9737_v63  ;;  %4092 = vmatprep.mubr.f32.mxu0 %v9737_v63  ;;  %v4486_v15 = vadd.f32 %v4454_v8, %v3195_v24  ;;  %v4384_v8 = vrot.slane %v3205_v9, 7 }
 0x36a   : > { %v4615_v19 = vadd.f32 %v4583_v22, %v4487_v55  ;;  %v3207_v4 = vpop.f32.mrf.mxu1  ;;  %v3478_v44 = vpop.f32.mrf.mxu0  ;;  %v4686_v29 = vsel %vm1894_vm1, %v4654_v27, %v4638_v36  ;;  %v4670_v11 = vsel %vm1894_vm1, %v4638_v36, %v4654_v27  ;;  %v4512_v55 = vrot.slane %v3476_v17, 1 }
 0x36b   : > { %v4708_v21 = vsel %vm280_vm0, %v4686_v29, 0.0  ;;  %v8506_v31 = vadd.f32 %v4670_v11, %v4613_v3  ;;  %v4614_v6 = vadd.f32 %v4543_v35, %v4486_v15  ;;  %v4639_v36 = vrot.slane %v3478_v44, 7 }
 0x36c   : > { %v3211_v47 = vpop.f32.mrf.mxu1  ;;  %v3482_v14 = vpop.f32.mrf.mxu0  ;;  %3824 = vmatmul.mubr.f32.gmra.mxu1 %v8187_v42  ;;  %4093 = vmatmul.mubr.f32.gmra.mxu0 %v8187_v42  ;;  %v8510_v24 = vadd.f32 %v4708_v21, %v4612_v2 }
 0x36d   : > { %9758 = vst [vmem:[#allocation41_spill] sm:$0xff] %v8506_v31  ;;  %v4400_v22 = vrot.slane %v3211_v47, 7  ;;  %v4528_v41 = vrot.slane %v3482_v14, 1  ;;  %3829 = vmatprep.mubr.f32.mxu1 %v9737_v63  ;;  %4098 = vmatprep.mubr.f32.mxu0 %v9737_v63 }
 0x36e   : > { %9759 = vst [vmem:[#allocation45_spill] sm:$0xff] %v8510_v24  ;;  %v3213_v3 = vpop.f32.mrf.mxu1  ;;  %v3484_v27 = vpop.f32.mrf.mxu0 }
 0x36f   : > { %v4432_v35 = vsel %vm1894_vm1, %v4400_v22, %v4384_v8  ;;  %v4544_v15 = vsel %vm2023_vm2, %v4512_v55, %v4528_v41  ;;  %v4560_v2 = vsel %vm2023_vm2, %v4528_v41, %v4512_v55  ;;  %v4416_v9 = vsel %vm1894_vm1, %v4384_v8, %v4400_v22 }
 0x370   : > { %v4456_v14 = vsel %vm280_vm0, %v4432_v35, 0.0  ;;  %v4489_v17 = vadd.f32 %v4416_v9, %v3213_v3  ;;  %v4585_v44 = vsel %vm283_vm3, %v4560_v2, 0.0  ;;  %v4655_v29 = vrot.slane %v3484_v27, 7  ;;  %v3217_v11 = vpop.f32.mrf.mxu1  ;;  %v3488_v21 = vpop.f32.mrf.mxu0  ;;  %3830 = vmatmul.mubr.f32.gmra.mxu1 %v8196_v49  ;;  %4099 = vmatmul.mubr.f32.gmra.mxu0 %v8196_v49 }
 0x371   : > { %3835 = vmatprep.mubr.f32.mxu1 %v9737_v63  ;;  %4104 = vmatprep.mubr.f32.mxu0 %v9737_v63  ;;  %v4488_v41 = vadd.f32 %v4456_v14, %v3207_v4  ;;  %v4385_v14 = vrot.slane %v3217_v11, 7 }
 0x372   : > { %v4617_v47 = vadd.f32 %v4585_v44, %v4489_v17  ;;  %v3219_v8 = vpop.f32.mrf.mxu1  ;;  %v3490_v55 = vpop.f32.mrf.mxu0  ;;  %v4687_v22 = vsel %vm1894_vm1, %v4655_v29, %v4639_v36  ;;  %v4671_v3 = vsel %vm1894_vm1, %v4639_v36, %v4655_v29  ;;  %v4513_v17 = vrot.slane %v3488_v21, 1 }
 0x373   : > { %v4710_v27 = vsel %vm280_vm0, %v4687_v22, 0.0  ;;  %v8536_v35 = vadd.f32 %v4671_v3, %v4615_v19  ;;  %v4616_v2 = vadd.f32 %v4544_v15, %v4488_v41  ;;  %v4640_v36 = vrot.slane %v3490_v55, 7 }
 0x374   : > { %v3223_v9 = vpop.f32.mrf.mxu1  ;;  %v3494_v31 = vpop.f32.mrf.mxu0  ;;  %3836 = vmatmul.mubr.f32.gmra.mxu1 %v8205_v59  ;;  %4105 = vmatmul.mubr.f32.gmra.mxu0 %v8205_v59  ;;  %v8540_v4 = vadd.f32 %v4710_v27, %v4614_v6 }
 0x375   : > { %9760 = vst [vmem:[#allocation49_spill] sm:$0xff] %v8536_v35  ;;  %v4401_v44 = vrot.slane %v3223_v9, 7  ;;  %v4529_v24 = vrot.slane %v3494_v31, 1  ;;  %3841 = vmatprep.mubr.f32.mxu1 %v9737_v63  ;;  %4110 = vmatprep.mubr.f32.mxu0 %v9737_v63 }
 0x376   : > { %9761 = vst [vmem:[#allocation28_spill] sm:$0xff] %v8540_v4  ;;  %v3225_v19 = vpop.f32.mrf.mxu1  ;;  %v3496_v29 = vpop.f32.mrf.mxu0 }
 0x377   : > { %v4433_v15 = vsel %vm1894_vm1, %v4401_v44, %v4385_v14  ;;  %v4545_v41 = vsel %vm2023_vm2, %v4513_v17, %v4529_v24  ;;  %v4561_v6 = vsel %vm2023_vm2, %v4529_v24, %v4513_v17  ;;  %v4417_v11 = vsel %vm1894_vm1, %v4385_v14, %v4401_v44 }
 0x378   : > { %v4458_v31 = vsel %vm280_vm0, %v4433_v15, 0.0  ;;  %v4491_v21 = vadd.f32 %v4417_v11, %v3225_v19  ;;  %v4587_v55 = vsel %vm283_vm3, %v4561_v6, 0.0  ;;  %v4656_v22 = vrot.slane %v3496_v29, 7  ;;  %v3229_v3 = vpop.f32.mrf.mxu1  ;;  %v3500_v27 = vpop.f32.mrf.mxu0  ;;  %3842 = vmatmul.mubr.f32.gmra.mxu1 %v8214_v60  ;;  %4111 = vmatmul.mubr.f32.gmra.mxu0 %v8214_v60 }
 0x379   : > { %3847 = vmatprep.mubr.f32.mxu1 %v9737_v63  ;;  %4116 = vmatprep.mubr.f32.mxu0 %v9737_v63  ;;  %v4490_v24 = vadd.f32 %v4458_v31, %v3219_v8  ;;  %v4386_v31 = vrot.slane %v3229_v3, 7 }
 0x37a   : > { %v4619_v9 = vadd.f32 %v4587_v55, %v4491_v21  ;;  %v3231_v14 = vpop.f32.mrf.mxu1  ;;  %v3502_v17 = vpop.f32.mrf.mxu0  ;;  %v4688_v44 = vsel %vm1894_vm1, %v4656_v22, %v4640_v36  ;;  %v4672_v19 = vsel %vm1894_vm1, %v4640_v36, %v4656_v22  ;;  %v4514_v21 = vrot.slane %v3500_v27, 1 }
 0x37b   : > { %v4712_v29 = vsel %vm280_vm0, %v4688_v44, 0.0  ;;  %v8566_v15 = vadd.f32 %v4672_v19, %v4617_v47  ;;  %v4618_v6 = vadd.f32 %v4545_v41, %v4490_v24  ;;  %v4641_v36 = vrot.slane %v3502_v17, 7 }
 0x37c   : > { %v3235_v11 = vpop.f32.mrf.mxu1  ;;  %v3506_v35 = vpop.f32.mrf.mxu0  ;;  %3848 = vmatmul.mubr.f32.gmra.mxu1 %v8223_v40  ;;  %4117 = vmatmul.mubr.f32.gmra.mxu0 %v8223_v40  ;;  %v8570_v8 = vadd.f32 %v4712_v29, %v4616_v2 }
 0x37d   : > { %9762 = vst [vmem:[#allocation32_spill] sm:$0xff] %v8566_v15  ;;  %v4402_v55 = vrot.slane %v3235_v11, 7  ;;  %v4530_v4 = vrot.slane %v3506_v35, 1  ;;  %3853 = vmatprep.mubr.f32.mxu1 %v9737_v63  ;;  %4122 = vmatprep.mubr.f32.mxu0 %v9737_v63 }
 0x37e   : > { %9763 = vst [vmem:[#allocation31_spill] sm:$0xff] %v8570_v8  ;;  %v3237_v47 = vpop.f32.mrf.mxu1  ;;  %v3508_v22 = vpop.f32.mrf.mxu0 }
 0x37f   : > { %v4434_v41 = vsel %vm1894_vm1, %v4402_v55, %v4386_v31  ;;  %v4546_v24 = vsel %vm2023_vm2, %v4514_v21, %v4530_v4  ;;  %v4562_v2 = vsel %vm2023_vm2, %v4530_v4, %v4514_v21  ;;  %v4418_v3 = vsel %vm1894_vm1, %v4386_v31, %v4402_v55 }
 0x380   : > { %v4460_v35 = vsel %vm280_vm0, %v4434_v41, 0.0  ;;  %v4493_v27 = vadd.f32 %v4418_v3, %v3237_v47  ;;  %v4589_v17 = vsel %vm283_vm3, %v4562_v2, 0.0  ;;  %v4657_v44 = vrot.slane %v3508_v22, 7  ;;  %v3241_v19 = vpop.f32.mrf.mxu1  ;;  %v3512_v29 = vpop.f32.mrf.mxu0  ;;  %3854 = vmatmul.mubr.f32.gmra.mxu1 %v9737_v63  ;;  %4123 = vmatmul.mubr.f32.gmra.mxu0 %v9737_v63 }
 0x381   : > { %3857 = vmatprep.mubr.f32.mxu1 %v9737_v63  ;;  %4128 = vmatprep.mubr.f32.mxu0 %v9737_v63  ;;  %v4492_v4 = vadd.f32 %v4460_v35, %v3231_v14  ;;  %v4387_v35 = vrot.slane %v3241_v19, 7 }
 0x382   : > { %v4621_v11 = vadd.f32 %v4589_v17, %v4493_v27  ;;  %v3243_v31 = vpop.f32.mrf.mxu1  ;;  %v3514_v21 = vpop.f32.mrf.mxu0  ;;  %v4689_v55 = vsel %vm1894_vm1, %v4657_v44, %v4641_v36  ;;  %v4673_v47 = vsel %vm1894_vm1, %v4641_v36, %v4657_v44  ;;  %v4515_v27 = vrot.slane %v3512_v29, 1 }
 0x383   : > { %v4714_v22 = vsel %vm280_vm0, %v4689_v55, 0.0  ;;  %v8596_v41 = vadd.f32 %v4673_v47, %v4619_v9  ;;  %v4620_v2 = vadd.f32 %v4546_v24, %v4492_v4  ;;  %v4642_v36 = vrot.slane %v3514_v21, 7 }
 0x384   : > { %v3247_v3 = vpop.f32.mrf.mxu1  ;;  %v3518_v15 = vpop.f32.mrf.mxu0  ;;  %3858 = vmatmul.mubr.f32.gmra.mxu1 %v9737_v63  ;;  %4129 = vmatmul.mubr.f32.gmra.mxu0 %v9737_v63  ;;  %v8600_v14 = vadd.f32 %v4714_v22, %v4618_v6 }
 0x385   : > { %9764 = vst [vmem:[#allocation47_spill] sm:$0xff] %v8596_v41  ;;  %v4403_v17 = vrot.slane %v3247_v3, 7  ;;  %v4531_v8 = vrot.slane %v3518_v15, 1  ;;  %5661 = vmatprep.mubr.f32.mxu1 %v9737_v63 }
 0x386   : > { %9765 = vst [vmem:[#allocation30_spill] sm:$0xff] %v8600_v14  ;;  %v3249_v44 = vpop.f32.mrf.mxu1  ;;  %v3520_v55 = vpop.f32.mrf.mxu0 }
 0x387   : > { %v4435_v9 = vsel %vm1894_vm1, %v4403_v17, %v4387_v35  ;;  %v4547_v24 = vsel %vm2023_vm2, %v4515_v27, %v4531_v8  ;;  %v4563_v4 = vsel %vm2023_vm2, %v4531_v8, %v4515_v27  ;;  %v4419_v6 = vsel %vm1894_vm1, %v4387_v35, %v4403_v17 }
 0x388   : > { %v4462_v15 = vsel %vm280_vm0, %v4435_v9, 0.0  ;;  %v4495_v19 = vadd.f32 %v4419_v6, %v3249_v44  ;;  %v4591_v29 = vsel %vm283_vm3, %v4563_v4, 0.0  ;;  %v4658_v21 = vrot.slane %v3520_v55, 7  ;;  %v3253_v47 = vpop.f32.mrf.mxu1  ;;  %v3524_v22 = vpop.f32.mrf.mxu0  ;;  %5662 = vmatmul.mubr.f32.vlgmr.msra.gmra.mxu1 %v9737_v63 }
 0x389   : > { %5664 = vmatprep.mubr.f32.mxu1 %v9750_v38  ;;  %v4494_v3 = vadd.f32 %v4462_v15, %v3243_v31  ;;  %v4388_v31 = vrot.slane %v3253_v47, 7  ;;  %v4516_v15 = vrot.slane %v3524_v22, 1 }
 0x38a   : > { %v4623_v41 = vadd.f32 %v4591_v29, %v4495_v19  ;;  %v3255_v8 = vpop.f32.mrf.mxu1  ;;  %v3526_v27 = vpop.f32.mrf.mxu0  ;;  %v4690_v35 = vsel %vm1894_vm1, %v4658_v21, %v4642_v36  ;;  %v4674_v17 = vsel %vm1894_vm1, %v4642_v36, %v4658_v21 }
 0x38b   : > { %v4716_v44 = vsel %vm280_vm0, %v4690_v35, 0.0  ;;  %v8623_v55 = vadd.f32 %v4674_v17, %v4621_v11  ;;  %v4622_v9 = vadd.f32 %v4547_v24, %v4494_v3  ;;  %v4643_v14 = vrot.slane %v3526_v27, 7 }
 0x38c   : > { %v3259_v4 = vpop.f32.mrf.mxu1  ;;  %v3530_v6 = vpop.f32.mrf.mxu0  ;;  %5665 = vmatmul.mubr.f32.gmra.mxu1 %v9751_v52  ;;  %v8626_v38 = vadd.f32 %v4716_v44, %v4620_v2 }
 0x38d   : > { %v4404_v19 = vrot.slane %v3259_v4, 7  ;;  %v4532_v29 = vrot.slane %v3530_v6, 1  ;;  %5667 = vmatprep.mubr.f32.mxu1 %v7740_v30 }
 0x38e   : > { %v3261_v36 = vpop.f32.mrf.mxu1  ;;  %v3532_v21 = vpop.f32.mrf.mxu0 }
 0x38f   : > { %v4436_v11 = vsel %vm1894_vm1, %v4404_v19, %v4388_v31  ;;  %v4548_v24 = vsel %vm2023_vm2, %v4516_v15, %v4532_v29  ;;  %v4564_v52 = vsel %vm2023_vm2, %v4532_v29, %v4516_v15  ;;  %v4420_v2 = vsel %vm1894_vm1, %v4388_v31, %v4404_v19 }
 0x390   : > { %v4464_v47 = vsel %vm280_vm0, %v4436_v11, 0.0  ;;  %v4497_v22 = vadd.f32 %v4420_v2, %v3261_v36  ;;  %v4593_v30 = vsel %vm283_vm3, %v4564_v52, 0.0  ;;  %v4659_v3 = vrot.slane %v3532_v21, 7  ;;  %v3265_v27 = vpop.f32.mrf.mxu1  ;;  %v3536_v35 = vpop.f32.mrf.mxu0  ;;  %5668 = vmatmul.mubr.f32.gmra.mxu1 %v7770_v39 }
 0x391   : > { %5670 = vmatprep.mubr.f32.mxu1 %v7803_v0  ;;  %v4496_v17 = vadd.f32 %v4464_v47, %v3255_v8  ;;  %v4389_v8 = vrot.slane %v3265_v27, 7  ;;  %v4517_v11 = vrot.slane %v3536_v35, 1 }
 0x392   : > { %v4625_v44 = vadd.f32 %v4593_v30, %v4497_v22  ;;  %v3267_v4 = vpop.f32.mrf.mxu1  ;;  %v3538_v6 = vpop.f32.mrf.mxu0  ;;  %v4691_v31 = vsel %vm1894_vm1, %v4659_v3, %v4643_v14  ;;  %v4675_v15 = vsel %vm1894_vm1, %v4643_v14, %v4659_v3 }
 0x393   : > { %v4718_v19 = vsel %vm280_vm0, %v4691_v31, 0.0  ;;  %v8649_v29 = vadd.f32 %v4675_v15, %v4623_v41  ;;  %v4624_v36 = vadd.f32 %v4548_v24, %v4496_v17  ;;  %v4644_v47 = vrot.slane %v3538_v6, 7 }
 0x394   : > { %v3271_v21 = vpop.f32.mrf.mxu1  ;;  %v3542_v39 = vpop.f32.mrf.mxu0  ;;  %5671 = vmatmul.mubr.f32.gmra.mxu1 %v7830_v23  ;;  %v8652_v0 = vadd.f32 %v4718_v19, %v4622_v9 }
 0x395   : > { %v4405_v52 = vrot.slane %v3271_v21, 7  ;;  %v4533_v2 = vrot.slane %v3542_v39, 1  ;;  %5673 = vmatprep.mubr.f32.mxu1 %v7854_v37 }
 0x396   : > { %v3273_v14 = vpop.f32.mrf.mxu1  ;;  %v3544_v22 = vpop.f32.mrf.mxu0 }
 0x397   : > { %v4437_v41 = vsel %vm1894_vm1, %v4405_v52, %v4389_v8  ;;  %v4549_v24 = vsel %vm2023_vm2, %v4517_v11, %v4533_v2  ;;  %v4565_v23 = vsel %vm2023_vm2, %v4533_v2, %v4517_v11  ;;  %v4421_v9 = vsel %vm1894_vm1, %v4389_v8, %v4405_v52 }
 0x398   : > { %v4466_v30 = vsel %vm280_vm0, %v4437_v41, 0.0  ;;  %v4499_v3 = vadd.f32 %v4421_v9, %v3273_v14  ;;  %v4595_v37 = vsel %vm283_vm3, %v4565_v23, 0.0  ;;  %v4660_v27 = vrot.slane %v3544_v22, 7  ;;  %v3277_v35 = vpop.f32.mrf.mxu1  ;;  %v3548_v17 = vpop.f32.mrf.mxu0  ;;  %5674 = vmatmul.mubr.f32.gmra.mxu1 %v7874_v48 }
 0x399   : > { %5676 = vmatprep.mubr.f32.mxu1 %v7902_v26  ;;  %v4498_v6 = vadd.f32 %v4466_v30, %v3267_v4  ;;  %v4390_v4 = vrot.slane %v3277_v35, 7  ;;  %v4518_v14 = vrot.slane %v3548_v17, 1 }
 0x39a   : > { %v4627_v31 = vadd.f32 %v4595_v37, %v4499_v3  ;;  %v3279_v15 = vpop.f32.mrf.mxu1  ;;  %v3550_v19 = vpop.f32.mrf.mxu0  ;;  %v4692_v21 = vsel %vm1894_vm1, %v4660_v27, %v4644_v47  ;;  %v4676_v39 = vsel %vm1894_vm1, %v4644_v47, %v4660_v27 }
 0x39b   : > { %v4720_v8 = vsel %vm280_vm0, %v4692_v21, 0.0  ;;  %v8675_v11 = vadd.f32 %v4676_v39, %v4625_v44  ;;  %v4626_v52 = vadd.f32 %v4549_v24, %v4498_v6  ;;  %v4645_v23 = vrot.slane %v3550_v19, 7 }
 0x39c   : > { %v3283_v2 = vpop.f32.mrf.mxu1  ;;  %v3554_v48 = vpop.f32.mrf.mxu0  ;;  %5677 = vmatmul.mubr.f32.gmra.mxu1 %v7929_v46  ;;  %v8678_v26 = vadd.f32 %v4720_v8, %v4624_v36 }
 0x39d   : > { %v4406_v22 = vrot.slane %v3283_v2, 7  ;;  %v4534_v41 = vrot.slane %v3554_v48, 1  ;;  %5679 = vmatprep.mubr.f32.mxu1 %v7952_v51 }
 0x39e   : > { %v3285_v47 = vpop.f32.mrf.mxu1  ;;  %v3556_v9 = vpop.f32.mrf.mxu0 }
 0x39f   : > { %v4438_v44 = vsel %vm1894_vm1, %v4406_v22, %v4390_v4  ;;  %v4550_v24 = vsel %vm2023_vm2, %v4518_v14, %v4534_v41  ;;  %v4566_v46 = vsel %vm2023_vm2, %v4534_v41, %v4518_v14  ;;  %v4422_v36 = vsel %vm1894_vm1, %v4390_v4, %v4406_v22 }
 0x3a0   : > { %v4468_v30 = vsel %vm280_vm0, %v4438_v44, 0.0  ;;  %v4501_v3 = vadd.f32 %v4422_v36, %v3285_v47  ;;  %v4597_v51 = vsel %vm283_vm3, %v4566_v46, 0.0  ;;  %v4661_v37 = vrot.slane %v3556_v9, 7  ;;  %v3289_v27 = vpop.f32.mrf.mxu1  ;;  %v3560_v35 = vpop.f32.mrf.mxu0  ;;  %5680 = vmatmul.mubr.f32.gmra.mxu1 %v7979_v34 }
 0x3a1   : > { %5682 = vmatprep.mubr.f32.mxu1 %v8008_v12  ;;  %v4500_v17 = vadd.f32 %v4468_v30, %v3279_v15  ;;  %v4391_v15 = vrot.slane %v3289_v27, 7  ;;  %v4519_v22 = vrot.slane %v3560_v35, 1 }
 0x3a2   : > { %v4629_v6 = vadd.f32 %v4597_v51, %v4501_v3  ;;  %v3291_v19 = vpop.f32.mrf.mxu1  ;;  %v3562_v21 = vpop.f32.mrf.mxu0  ;;  %v4693_v39 = vsel %vm1894_vm1, %v4661_v37, %v4645_v23  ;;  %v4677_v8 = vsel %vm1894_vm1, %v4645_v23, %v4661_v37 }
 0x3a3   : > { %v4722_v2 = vsel %vm280_vm0, %v4693_v39, 0.0  ;;  %v8701_v48 = vadd.f32 %v4677_v8, %v4627_v31  ;;  %v4628_v4 = vadd.f32 %v4550_v24, %v4500_v17  ;;  %v4646_v9 = vrot.slane %v3562_v21, 7 }
 0x3a4   : > { %v3295_v14 = vpop.f32.mrf.mxu1  ;;  %v3566_v34 = vpop.f32.mrf.mxu0  ;;  %5683 = vmatmul.mubr.f32.gmra.mxu1 %v8032_v57  ;;  %v8704_v12 = vadd.f32 %v4722_v2, %v4626_v52 }
 0x3a5   : > { %v4407_v41 = vrot.slane %v3295_v14, 7  ;;  %v4535_v47 = vrot.slane %v3566_v34, 1  ;;  %5685 = vmatprep.mubr.f32.mxu1 %v8054_v25 }
 0x3a6   : > { %v3297_v23 = vpop.f32.mrf.mxu1  ;;  %v3568_v44 = vpop.f32.mrf.mxu0 }
 0x3a7   : > { %v4439_v31 = vsel %vm1894_vm1, %v4407_v41, %v4391_v15  ;;  %v4551_v24 = vsel %vm2023_vm2, %v4519_v22, %v4535_v47  ;;  %v4567_v57 = vsel %vm2023_vm2, %v4535_v47, %v4519_v22  ;;  %v4423_v52 = vsel %vm1894_vm1, %v4391_v15, %v4407_v41 }
 0x3a8   : > { %v4470_v46 = vsel %vm280_vm0, %v4439_v31, 0.0  ;;  %v4503_v36 = vadd.f32 %v4423_v52, %v3297_v23  ;;  %v4599_v25 = vsel %vm283_vm3, %v4567_v57, 0.0  ;;  %v4662_v30 = vrot.slane %v3568_v44, 7  ;;  %v3301_v3 = vpop.f32.mrf.mxu1  ;;  %v3572_v51 = vpop.f32.mrf.mxu0  ;;  %5686 = vmatmul.mubr.f32.gmra.mxu1 %v8067_v61 }
 0x3a9   : > { %5688 = vmatprep.mubr.f32.mxu1 %v8078_v5  ;;  %v4502_v37 = vadd.f32 %v4470_v46, %v3291_v19 }
 0x3aa   : > { %v4631_v27 = vadd.f32 %v4599_v25, %v4503_v36  ;;  %v3302_v35 = vpop.f32.mrf.mxu1  ;;  %v3573_v17 = vpop.f32.mrf.mxu0  ;;  %v4694_v21 = vsel %vm1894_vm1, %v4662_v30, %v4646_v9  ;;  %v4678_v39 = vsel %vm1894_vm1, %v4646_v9, %v4662_v30 }
 0x3ab   : > { %v4724_v8 = vsel %vm280_vm0, %v4694_v21, 0.0  ;;  %v8727_v2 = vadd.f32 %v4678_v39, %v4629_v6  ;;  %v4630_v14 = vadd.f32 %v4551_v24, %v4502_v37  ;;  %v4647_v22 = vrot.slane %v3573_v17, 7 }
 0x3ac   : > { %v3305_v34 = vpop.f32.mrf.mxu1  ;;  %v3577_v61 = vpop.f32.mrf.mxu0  ;;  %5689 = vmatmul.mubr.f32.gmra.mxu1 %v8097_v33  ;;  %v8730_v5 = vadd.f32 %v4724_v8, %v4628_v4 }
 0x3ad   : > { %5691 = vmatprep.mubr.f32.mxu1 %v8106_v56 }
 0x3ae   : > { %v3306_v19 = vpop.f32.mrf.mxu1  ;;  %v3578_v15 = vpop.f32.mrf.mxu0 }
 0x3af   : > { %v4663_v41 = vrot.slane %v3578_v15, 7 }
 0x3b0   : > { %v3309_v47 = vpop.f32.mrf.mxu1  ;;  %v3582_v9 = vpop.f32.mrf.mxu0  ;;  %5692 = vmatmul.mubr.f32.gmra.mxu1 %v8115_v54 }
 0x3b1   : > { %5694 = vmatprep.mubr.f32.mxu1 %v8124_v10  ;;  %v4695_v6 = vsel %vm1894_vm1, %v4663_v41, %v4647_v22  ;;  %v4679_v33 = vsel %vm1894_vm1, %v4647_v22, %v4663_v41 }
 0x3b2   : > { %v3310_v4 = vpop.f32.mrf.mxu1  ;;  %v3583_v23 = vpop.f32.mrf.mxu0  ;;  %v4726_v56 = vsel %vm280_vm0, %v4695_v6, 0.0  ;;  %v8741_v44 = vadd.f32 %v4679_v33, %v4631_v27 }
 0x3b3   : > { %v8743_v31 = vadd.f32 %v4726_v56, %v4630_v14 }
 0x3b4   : > { %v3313_v24 = vpop.f32.mrf.mxu1  ;;  %v3586_v57 = vpop.f32.mrf.mxu0  ;;  %5695 = vmatmul.mubr.f32.gmra.mxu1 %v8133_v62 }
 0x3b5   : > { %5697 = vmatprep.mubr.f32.mxu1 %v8142_v58 }
 0x3b6   : > { %v3314_v54 = vpop.f32.mrf.mxu1  ;;  %v3587_v10 = vpop.f32.mrf.mxu0 }
 0x3b8   : > { %v3655_v52 = vpop.f32.mrf.mxu1  ;;  %v3928_v46 = vpop.f32.mrf.mxu0  ;;  %5698 = vmatmul.mubr.f32.gmra.mxu1 %v8151_v7 }
 0x3b9   : > { %5700 = vmatprep.mubr.f32.mxu1 %v8160_v1 }
 0x3ba   : > { %v3656_v36 = vpop.f32.mrf.mxu1  ;;  %v3929_v25 = vpop.f32.mrf.mxu0 }
 0x3bc   : > { %v3659_v30 = vpop.f32.mrf.mxu1  ;;  %v3932_v3 = vpop.f32.mrf.mxu0  ;;  %5701 = vmatmul.mubr.f32.gmra.mxu1 %v8169_v13 }
 0x3bd   : > { %5703 = vmatprep.mubr.f32.mxu1 %v8178_v32 }
 0x3be   : > { %v3660_v51 = vpop.f32.mrf.mxu1  ;;  %v3933_v62 = vpop.f32.mrf.mxu0 }
 0x3c0   : > { %v3663_v37 = vpop.f32.mrf.mxu1  ;;  %v3936_v58 = vpop.f32.mrf.mxu0  ;;  %5704 = vmatmul.mubr.f32.gmra.mxu1 %v8187_v42 }
 0x3c1   : > { %v4760_v27 = vadd.f32 %v8330_v50, %v3663_v37  ;;  %5706 = vmatprep.mubr.f32.mxu1 %v8196_v49 }
 0x3c2   : > { %v3665_v7 = vpop.f32.mrf.mxu1  ;;  %v3937_v1 = vpop.f32.mrf.mxu0 }
 0x3c3   : > { %v4792_v39 = vrot.slane %v3665_v7, 1 }
 0x3c4   : > { %v3669_v35 = vpop.f32.mrf.mxu1  ;;  %v3940_v17 = vpop.f32.mrf.mxu0  ;;  %5707 = vmatmul.mubr.f32.gmra.mxu1 %v8205_v59 }
 0x3c5   : > { %v4761_v13 = vadd.f32 %v8325_v20, %v3669_v35  ;;  %5709 = vmatprep.mubr.f32.mxu1 %v8214_v60 }
 0x3c6   : > { %v3671_v32 = vpop.f32.mrf.mxu1  ;;  %v3941_v21 = vpop.f32.mrf.mxu0 }
 0x3c7   : > { %v4808_v8 = vrot.slane %v3671_v32, 1 }
 0x3c8   : > { %v3675_v14 = vpop.f32.mrf.mxu1  ;;  %v3944_v42 = vpop.f32.mrf.mxu0  ;;  %5710 = vmatmul.mubr.f32.gmra.mxu1 %v8223_v40 }
 0x3c9   : > { %v4824_v49 = vsel %vm2023_vm2, %v4792_v39, %v4808_v8  ;;  %v4840_v50 = vsel %vm2023_vm2, %v4808_v8, %v4792_v39  ;;  %v4762_v59 = vadd.f32 %v8360_v16, %v3675_v14  ;;  %5712 = vmatprep.mubr.f32.mxu1 %v9737_v63  ;;  %v4920_v40 = vrot.slane %v3944_v42, 7 }
 0x3ca   : > { %v4888_v20 = vadd.f32 %v4824_v49, %v4760_v27  ;;  %v3677_v60 = vpop.f32.mrf.mxu1  ;;  %v3946_v34 = vpop.f32.mrf.mxu0  ;;  %v4857_v61 = vsel %vm283_vm3, %v4840_v50, 0.0  ;;  %v9768_v49 = vld [vmem:[#allocation27_spill] sm:$0xff] }
 0x3cb   : > { %v4889_v19 = vadd.f32 %v4857_v61, %v4761_v13  ;;  %v4793_v16 = vrot.slane %v3677_v60, 1 }
 0x3cc   : > { %v3681_v15 = vpop.f32.mrf.mxu1  ;;  %v3950_v22 = vpop.f32.mrf.mxu0  ;;  %5713 = vmatmul.mubr.f32.gmra.mxu1 %v9737_v63 }
 0x3cd   : > { %v4763_v41 = vadd.f32 %v8356_v28, %v3681_v15  ;;  %v4936_v47 = vrot.slane %v3950_v22, 7 }
 0x3ce   : > { %v3683_v9 = vpop.f32.mrf.mxu1  ;;  %v3952_v6 = vpop.f32.mrf.mxu0 }
 0x3cf   : > { %v4968_v33 = vsel %vm1894_vm1, %v4936_v47, %v4920_v40  ;;  %v4809_v4 = vrot.slane %v3683_v9, 1  ;;  %v4952_v23 = vsel %vm1894_vm1, %v4920_v40, %v4936_v47  ;;  %v9770_v40 = vld [vmem:[#allocation24_spill] sm:$0xff] }
 0x3d0   : > { %v4984_v56 = vsel %vm280_vm0, %v4968_v33, 0.0  ;;  %v5017_v24 = vadd.f32 %v4952_v23, %v4889_v19  ;;  %v3687_v57 = vpop.f32.mrf.mxu1  ;;  %v8774_v63 = vpop.f32.mrf.mxu0 }
 0x3d1   : > { %v5016_v54 = vadd.f32 %v4984_v56, %v4888_v20  ;;  %v4825_v28 = vsel %vm2023_vm2, %v4793_v16, %v4809_v4  ;;  %v4841_v10 = vsel %vm2023_vm2, %v4809_v4, %v4793_v16  ;;  %v4764_v52 = vadd.f32 %v8390_v18, %v3687_v57 }
 0x3d2   : > { %v4890_v46 = vadd.f32 %v4825_v28, %v4762_v59  ;;  %v8781_v36 = vadd.f32 %v5017_v24, %v3952_v6  ;;  %v3689_v25 = vpop.f32.mrf.mxu1  ;;  %v3958_v30 = vpop.f32.mrf.mxu0  ;;  %v4859_v3 = vsel %vm283_vm3, %v4841_v10, 0.0  ;;  %v9587_v27 = vrot.slane %v8774_v63, 7  ;;  %v9771_v24 = vld [vmem:[#allocation35_spill] sm:$0xff] }
 0x3d3   : > { %v8785_v51 = vadd.f32 %v4859_v3, %v4763_v41  ;;  %v8787_v62 = vadd.f32 %v5016_v54, %v3946_v34  ;;  %v4794_v17 = vrot.slane %v3689_v25, 1  ;;  %v9772_v3 = vld [vmem:[#allocation25_spill] sm:$0xff] }
 0x3d4   : > { %9766 = vst [vmem:[#allocation34_spill] sm:$0xff] %v8781_v36  ;;  %v3693_v37 = vpop.f32.mrf.mxu1  ;;  %v8789_v58 = vpop.f32.mrf.mxu0 }
 0x3d5   : > { %9767 = vst [vmem:[#allocation40_spill] sm:$0xff] %v8787_v62  ;;  %v4765_v7 = vadd.f32 %v8386_v45, %v3693_v37  ;;  %v9588_v18 = vrot.slane %v8789_v58, 7 }
 0x3d6   : > { %v3695_v1 = vpop.f32.mrf.mxu1  ;;  %v8794_v35 = vpop.f32.mrf.mxu0 }
 0x3d7   : > { %v4969_v13 = vsel %vm1894_vm1, %v9588_v18, %v9587_v27  ;;  %v4810_v32 = vrot.slane %v3695_v1, 1  ;;  %v9783_v27 = vld [vmem:[#allocation49_spill] sm:$0xff] }
 0x3d8   : > { %v4986_v21 = vsel %vm280_vm0, %v4969_v13, 0.0  ;;  %v3699_v39 = vpop.f32.mrf.mxu1  ;;  %v8804_v8 = vpop.f32.mrf.mxu0 }
 0x3d9   : > { %v5018_v45 = vadd.f32 %v4986_v21, %v4890_v46  ;;  %v4826_v14 = vsel %vm2023_vm2, %v4794_v17, %v4810_v32  ;;  %v4842_v42 = vsel %vm2023_vm2, %v4810_v32, %v4794_v17  ;;  %v4766_v50 = vadd.f32 %v9768_v49, %v3699_v39 }
 0x3da   : > { %v8811_v59 = vadd.f32 %v4826_v14, %v4764_v52  ;;  %v3701_v20 = vpop.f32.mrf.mxu1  ;;  %v8813_v60 = vpop.f32.mrf.mxu0  ;;  %v4861_v34 = vsel %vm283_vm3, %v4842_v42, 0.0  ;;  %v9773_v14 = vld [vmem:[#allocation37_spill] sm:$0xff] }
 0x3db   : > { %v8817_v61 = vadd.f32 %v4861_v34, %v4765_v7  ;;  %v8819_v19 = vadd.f32 %v5018_v45, %v3958_v30  ;;  %v4795_v6 = vrot.slane %v3701_v20, 1 }
 0x3dc   : > { %v3705_v15 = vpop.f32.mrf.mxu1  ;;  %v8821_v22 = vpop.f32.mrf.mxu0 }
 0x3dd   : > { %9769 = vst [vmem:[#allocation38_spill] sm:$0xff] %v8819_v19  ;;  %v4767_v41 = vadd.f32 %v9770_v40, %v3705_v15 }
 0x3de   : > { %v3707_v47 = vpop.f32.mrf.mxu1  ;;  %v8824_v9 = vpop.f32.mrf.mxu0 }
 0x3df   : > { %v4811_v16 = vrot.slane %v3707_v47, 1  ;;  %v9775_v47 = vld [vmem:[#allocation33_spill] sm:$0xff] }
 0x3e0   : > { %v3711_v33 = vpop.f32.mrf.mxu1  ;;  %v8826_v4 = vpop.f32.mrf.mxu0 }
 0x3e1   : > { %v4827_v23 = vsel %vm2023_vm2, %v4795_v6, %v4811_v16  ;;  %v4843_v56 = vsel %vm2023_vm2, %v4811_v16, %v4795_v6  ;;  %v4768_v57 = vadd.f32 %v9771_v24, %v3711_v33 }
 0x3e2   : > { %v8833_v54 = vadd.f32 %v4827_v23, %v4766_v50  ;;  %v3713_v28 = vpop.f32.mrf.mxu1  ;;  %v8835_v10 = vpop.f32.mrf.mxu0  ;;  %v4863_v52 = vsel %vm283_vm3, %v4843_v56, 0.0 }
 0x3e3   : > { %v8839_v46 = vadd.f32 %v4863_v52, %v4767_v41  ;;  %v4796_v17 = vrot.slane %v3713_v28, 1 }
 0x3e4   : > { %v3717_v25 = vpop.f32.mrf.mxu1  ;;  %v8841_v30 = vpop.f32.mrf.mxu0 }
 0x3e5   : > { %v4769_v37 = vadd.f32 %v9772_v3, %v3717_v25  ;;  %v9777_v25 = vld [vmem:[#allocation45_spill] sm:$0xff] }
 0x3e6   : > { %v3719_v7 = vpop.f32.mrf.mxu1  ;;  %v8844_v1 = vpop.f32.mrf.mxu0 }
 0x3e7   : > { %v4812_v13 = vrot.slane %v3719_v7, 1 }
 0x3e8   : > { %v3723_v32 = vpop.f32.mrf.mxu1  ;;  %v8846_v21 = vpop.f32.mrf.mxu0 }
 0x3e9   : > { %v4828_v39 = vsel %vm2023_vm2, %v4796_v17, %v4812_v13  ;;  %v4844_v45 = vsel %vm2023_vm2, %v4812_v13, %v4796_v17  ;;  %v4770_v42 = vadd.f32 %v9773_v14, %v3723_v32  ;;  %v9779_v14 = vld [vmem:[#allocation41_spill] sm:$0xff] }
 0x3ea   : > { %v8853_v49 = vadd.f32 %v4828_v39, %v4768_v57  ;;  %v3725_v50 = vpop.f32.mrf.mxu1  ;;  %v8855_v20 = vpop.f32.mrf.mxu0  ;;  %v4865_v34 = vsel %vm283_vm3, %v4844_v45, 0.0 }
 0x3eb   : > { %9774 = vst [vmem:[#allocation43_spill] sm:$0xff] %v8855_v20  ;;  %v8859_v15 = vadd.f32 %v4865_v34, %v4769_v37  ;;  %v4797_v23 = vrot.slane %v3725_v50, 1 }
 0x3ec   : > { %v3729_v40 = vpop.f32.mrf.mxu1  ;;  %v8861_v41 = vpop.f32.mrf.mxu0 }
 0x3ed   : > { %v4771_v6 = vadd.f32 %v9775_v47, %v3729_v40 }
 0x3ee   : > { %v3731_v16 = vpop.f32.mrf.mxu1  ;;  %v8864_v33 = vpop.f32.mrf.mxu0 }
 0x3ef   : > { %9776 = vst [vmem:[#allocation50_spill] sm:$0xff] %v8864_v33  ;;  %v4813_v56 = vrot.slane %v3731_v16, 1 }
 0x3f0   : > { %v3735_v24 = vpop.f32.mrf.mxu1  ;;  %v8866_v57 = vpop.f32.mrf.mxu0 }
 0x3f1   : > { %v4829_v28 = vsel %vm2023_vm2, %v4797_v23, %v4813_v56  ;;  %v4845_v52 = vsel %vm2023_vm2, %v4813_v56, %v4797_v23  ;;  %v4772_v3 = vadd.f32 %v9777_v25, %v3735_v24  ;;  %v9781_v24 = vld [vmem:[#allocation28_spill] sm:$0xff] }
 0x3f2   : > { %v8873_v37 = vadd.f32 %v4829_v28, %v4770_v42  ;;  %v3737_v7 = vpop.f32.mrf.mxu1  ;;  %v8875_v17 = vpop.f32.mrf.mxu0  ;;  %v4867_v13 = vsel %vm283_vm3, %v4845_v52, 0.0 }
 0x3f3   : > { %9778 = vst [vmem:[#allocation46_spill] sm:$0xff] %v8875_v17  ;;  %v8879_v32 = vadd.f32 %v4867_v13, %v4771_v6  ;;  %v4798_v47 = vrot.slane %v3737_v7, 1  ;;  %v9789_v17 = vld [vmem:[#allocation32_spill] sm:$0xff] }
 0x3f4   : > { %v3741_v39 = vpop.f32.mrf.mxu1  ;;  %v8881_v45 = vpop.f32.mrf.mxu0 }
 0x3f5   : > { %v4773_v50 = vadd.f32 %v9779_v14, %v3741_v39 }
 0x3f6   : > { %v3743_v34 = vpop.f32.mrf.mxu1  ;;  %v8884_v40 = vpop.f32.mrf.mxu0 }
 0x3f7   : > { %9780 = vst [vmem:[#allocation53_spill] sm:$0xff] %v8884_v40  ;;  %v4814_v16 = vrot.slane %v3743_v34, 1 }
 0x3f8   : > { %v3747_v42 = vpop.f32.mrf.mxu1  ;;  %v8886_v23 = vpop.f32.mrf.mxu0 }
 0x3f9   : > { %v4830_v56 = vsel %vm2023_vm2, %v4798_v47, %v4814_v16  ;;  %v4846_v6 = vsel %vm2023_vm2, %v4814_v16, %v4798_v47  ;;  %v4774_v28 = vadd.f32 %v9781_v24, %v3747_v42 }
 0x3fa   : > { %v8893_v52 = vadd.f32 %v4830_v56, %v4772_v3  ;;  %v3749_v25 = vpop.f32.mrf.mxu1  ;;  %v8895_v13 = vpop.f32.mrf.mxu0  ;;  %v4869_v7 = vsel %vm283_vm3, %v4846_v6, 0.0  ;;  %v9785_v6 = vld [vmem:[#allocation31_spill] sm:$0xff] }
 0x3fb   : > { %9782 = vst [vmem:[#allocation36_spill] sm:$0xff] %v8895_v13  ;;  %v8899_v39 = vadd.f32 %v4869_v7, %v4773_v50  ;;  %v4799_v47 = vrot.slane %v3749_v25, 1 }
 0x3fc   : > { %v3753_v14 = vpop.f32.mrf.mxu1  ;;  %v8901_v34 = vpop.f32.mrf.mxu0 }
 0x3fd   : > { %v4775_v18 = vadd.f32 %v9783_v27, %v3753_v14 }
 0x3fe   : > { %v3755_v19 = vpop.f32.mrf.mxu1  ;;  %v8904_v36 = vpop.f32.mrf.mxu0 }
 0x3ff   : > { %9784 = vst [vmem:[#allocation39_spill] sm:$0xff] %v8904_v36  ;;  %v4815_v16 = vrot.slane %v3755_v19, 1 }
 0x400   : > { %v3759_v3 = vpop.f32.mrf.mxu1  ;;  %v8906_v42 = vpop.f32.mrf.mxu0 }
 0x401   : > { %v4831_v56 = vsel %vm2023_vm2, %v4799_v47, %v4815_v16  ;;  %v4847_v50 = vsel %vm2023_vm2, %v4815_v16, %v4799_v47  ;;  %v4776_v24 = vadd.f32 %v9785_v6, %v3759_v3 }
 0x402   : > { %v8913_v7 = vadd.f32 %v4831_v56, %v4774_v28  ;;  %v3761_v13 = vpop.f32.mrf.mxu1  ;;  %v8915_v27 = vpop.f32.mrf.mxu0  ;;  %v4871_v25 = vsel %vm283_vm3, %v4847_v50, 0.0  ;;  %v9792_v50 = vld [vmem:[#allocation30_spill] sm:$0xff] }
 0x403   : > { %9787 = vst [vmem:[#allocation42_spill] sm:$0xff] %v8915_v27  ;;  %v8919_v19 = vadd.f32 %v4871_v25, %v4775_v18  ;;  %v4800_v47 = vrot.slane %v3761_v13, 1 }
 0x404   : > { %9786 = vst [vmem:[#allocation44_spill] sm:$0xff] %v8913_v7  ;;  %v3765_v14 = vpop.f32.mrf.mxu1  ;;  %v8921_v62 = vpop.f32.mrf.mxu0 }
 0x405   : > { %9788 = vst [vmem:[#allocation48_spill] sm:$0xff] %v8919_v19  ;;  %v4777_v36 = vadd.f32 %v9789_v17, %v3765_v14 }
 0x406   : > { %v3767_v40 = vpop.f32.mrf.mxu1  ;;  %v8924_v20 = vpop.f32.mrf.mxu0 }
 0x407   : > { %9790 = vst [vmem:[#allocation51_spill] sm:$0xff] %v8924_v20  ;;  %v4816_v16 = vrot.slane %v3767_v40, 1  ;;  %v9795_v20 = vld [vmem:[#allocation47_spill] sm:$0xff] }
 0x408   : > { %v3771_v28 = vpop.f32.mrf.mxu1  ;;  %v8926_v3 = vpop.f32.mrf.mxu0 }
 0x409   : > { %9791 = vst [vmem:[#allocation52_spill] sm:$0xff] %v8926_v3  ;;  %v4832_v56 = vsel %vm2023_vm2, %v4800_v47, %v4816_v16  ;;  %v4848_v18 = vsel %vm2023_vm2, %v4816_v16, %v4800_v47  ;;  %v4778_v6 = vadd.f32 %v9792_v50, %v3771_v28 }
 0x40a   : > { %v8933_v25 = vadd.f32 %v4832_v56, %v4776_v24  ;;  %v3773_v27 = vpop.f32.mrf.mxu1  ;;  %v4873_v17 = vsel %vm283_vm3, %v4848_v18, 0.0  ;;  %v8937_v14 = vpop.f32.mrf.mxu0 }
 0x40b   : > { %9794 = vst [vmem:[#allocation56_spill] sm:$0xff] %v8937_v14  ;;  %v8939_v40 = vadd.f32 %v4873_v17, %v4777_v36  ;;  %v4801_v19 = vrot.slane %v3773_v27, 1 }
 0x40c   : > { %9793 = vst [vmem:[#allocation54_spill] sm:$0xff] %v8933_v25  ;;  %v3777_v13 = vpop.f32.mrf.mxu1  ;;  %v8942_v33 = vpop.f32.mrf.mxu0 }
 0x40d   : > { %v4779_v7 = vadd.f32 %v9795_v20, %v3777_v13 }
 0x40e   : > { %v3779_v3 = vpop.f32.mrf.mxu1  ;;  %v8953_v50 = vpop.f32.mrf.mxu0 }
 0x40f   : > { %v4817_v47 = vrot.slane %v3779_v3, 1 }
 0x410   : > { %v3783_v16 = vpop.f32.mrf.mxu1  ;;  %v8958_v14 = vpop.f32.mrf.mxu0 }
 0x411   : > { %v4833_v24 = vsel %vm2023_vm2, %v4801_v19, %v4817_v47  ;;  %v4849_v28 = vsel %vm2023_vm2, %v4817_v47, %v4801_v19  ;;  %v4780_v56 = vadd.f32 %v8626_v38, %v3783_v16 }
 0x412   : > { %v8949_v18 = vadd.f32 %v4833_v24, %v4778_v6  ;;  %v3785_v36 = vpop.f32.mrf.mxu1  ;;  %v4875_v20 = vsel %vm283_vm3, %v4849_v28, 0.0  ;;  %v8969_v28 = vpop.f32.mrf.mxu0 }
 0x413   : > { %v8955_v27 = vadd.f32 %v4875_v20, %v4779_v7  ;;  %v4802_v25 = vrot.slane %v3785_v36, 1 }
 0x414   : > { %9796 = vst [vmem:[#allocation55_spill] sm:$0xff] %v8949_v18  ;;  %v3789_v3 = vpop.f32.mrf.mxu1  ;;  %v8974_v18 = vpop.f32.mrf.mxu0 }
 0x415   : > { %9797 = vst [vmem:[#allocation57_spill] sm:$0xff] %v8955_v27  ;;  %v4781_v17 = vadd.f32 %v8623_v55, %v3789_v3 }
 0x416   : > { %v3791_v13 = vpop.f32.mrf.mxu1 }
 0x417   : > { %v4818_v19 = vrot.slane %v3791_v13, 1 }
 0x418   : > { %v3795_v47 = vpop.f32.mrf.mxu1 }
 0x419   : > { %v4834_v38 = vsel %vm2023_vm2, %v4802_v25, %v4818_v19  ;;  %v4850_v6 = vsel %vm2023_vm2, %v4818_v19, %v4802_v25  ;;  %v4782_v16 = vadd.f32 %v8652_v0, %v3795_v47 }
 0x41a   : > { %v8965_v24 = vadd.f32 %v4834_v38, %v4780_v56  ;;  %v3797_v7 = vpop.f32.mrf.mxu1  ;;  %v4877_v55 = vsel %vm283_vm3, %v4850_v6, 0.0  ;;  %v8985_v6 = vpop.f32.mrf.mxu0 }
 0x41b   : > { %v8971_v20 = vadd.f32 %v4877_v55, %v4781_v17  ;;  %v4803_v27 = vrot.slane %v3797_v7, 1 }
 0x41c   : > { %9798 = vst [vmem:[#allocation59_spill] sm:$0xff] %v8965_v24  ;;  %v3801_v36 = vpop.f32.mrf.mxu1  ;;  %v8990_v24 = vpop.f32.mrf.mxu0 }
 0x41d   : > { %9799 = vst [vmem:[#allocation61_spill] sm:$0xff] %v8971_v20  ;;  %v4783_v3 = vadd.f32 %v8649_v29, %v3801_v36 }
 0x41e   : > { %v3803_v13 = vpop.f32.mrf.mxu1 }
 0x41f   : > { %v4819_v25 = vrot.slane %v3803_v13, 1 }
 0x420   : > { %v3807_v19 = vpop.f32.mrf.mxu1 }
 0x421   : > { %v4835_v0 = vsel %vm2023_vm2, %v4803_v27, %v4819_v25  ;;  %v4851_v56 = vsel %vm2023_vm2, %v4819_v25, %v4803_v27  ;;  %v4784_v47 = vadd.f32 %v8678_v26, %v3807_v19 }
 0x422   : > { %v8981_v38 = vadd.f32 %v4835_v0, %v4782_v16  ;;  %v3809_v17 = vpop.f32.mrf.mxu1  ;;  %v4879_v29 = vsel %vm283_vm3, %v4851_v56, 0.0  ;;  %v9001_v56 = vpop.f32.mrf.mxu0 }
 0x423   : > { %v8987_v55 = vadd.f32 %v4879_v29, %v4783_v3  ;;  %v4804_v20 = vrot.slane %v3809_v17, 1 }
 0x424   : > { %9800 = vst [vmem:[#allocation63_spill] sm:$0xff] %v8981_v38  ;;  %v3813_v7 = vpop.f32.mrf.mxu1  ;;  %v9006_v38 = vpop.f32.mrf.mxu0 }
 0x425   : > { %9801 = vst [vmem:[#allocation60_spill] sm:$0xff] %v8987_v55  ;;  %v4785_v36 = vadd.f32 %v8675_v11, %v3813_v7 }
 0x426   : > { %v3815_v13 = vpop.f32.mrf.mxu1 }
 0x427   : > { %v4820_v27 = vrot.slane %v3815_v13, 1 }
 0x428   : > { %v3819_v25 = vpop.f32.mrf.mxu1 }
 0x429   : > { %v4836_v26 = vsel %vm2023_vm2, %v4804_v20, %v4820_v27  ;;  %v4852_v16 = vsel %vm2023_vm2, %v4820_v27, %v4804_v20  ;;  %v4786_v19 = vadd.f32 %v8704_v12, %v3819_v25 }
 0x42a   : > { %v8997_v0 = vadd.f32 %v4836_v26, %v4784_v47  ;;  %v3821_v3 = vpop.f32.mrf.mxu1  ;;  %v4881_v11 = vsel %vm283_vm3, %v4852_v16, 0.0  ;;  %v9017_v16 = vpop.f32.mrf.mxu0 }
 0x42b   : > { %v9003_v29 = vadd.f32 %v4881_v11, %v4785_v36  ;;  %v4805_v55 = vrot.slane %v3821_v3, 1 }
 0x42c   : > { %9802 = vst [vmem:[#allocation65_spill] sm:$0xff] %v8997_v0  ;;  %v3825_v17 = vpop.f32.mrf.mxu1  ;;  %v9022_v0 = vpop.f32.mrf.mxu0 }
 0x42d   : > { %9803 = vst [vmem:[#allocation67_spill] sm:$0xff] %v9003_v29  ;;  %v4787_v7 = vadd.f32 %v8701_v48, %v3825_v17 }
 0x42e   : > { %v3827_v13 = vpop.f32.mrf.mxu1 }
 0x42f   : > { %v4821_v20 = vrot.slane %v3827_v13, 1 }
 0x430   : > { %v3831_v27 = vpop.f32.mrf.mxu1 }
 0x431   : > { %v4837_v12 = vsel %vm2023_vm2, %v4805_v55, %v4821_v20  ;;  %v4853_v47 = vsel %vm2023_vm2, %v4821_v20, %v4805_v55  ;;  %v4788_v25 = vadd.f32 %v8730_v5, %v3831_v27 }
 0x432   : > { %v9013_v26 = vadd.f32 %v4837_v12, %v4786_v19  ;;  %v3833_v36 = vpop.f32.mrf.mxu1  ;;  %v4883_v48 = vsel %vm283_vm3, %v4853_v47, 0.0  ;;  %v9033_v47 = vpop.f32.mrf.mxu0 }
 0x433   : > { %v9019_v11 = vadd.f32 %v4883_v48, %v4787_v7  ;;  %v4806_v29 = vrot.slane %v3833_v36, 1 }
 0x434   : > { %9804 = vst [vmem:[#allocation58_spill] sm:$0xff] %v9013_v26  ;;  %v3837_v3 = vpop.f32.mrf.mxu1  ;;  %v9038_v26 = vpop.f32.mrf.mxu0 }
 0x435   : > { %9805 = vst [vmem:[#allocation64_spill] sm:$0xff] %v9019_v11  ;;  %v4789_v17 = vadd.f32 %v8727_v2, %v3837_v3 }
 0x436   : > { %v3839_v13 = vpop.f32.mrf.mxu1 }
 0x437   : > { %v4822_v55 = vrot.slane %v3839_v13, 1 }
 0x438   : > { %v3843_v20 = vpop.f32.mrf.mxu1 }
 0x439   : > { %v4838_v5 = vsel %vm2023_vm2, %v4806_v29, %v4822_v55  ;;  %v4854_v19 = vsel %vm2023_vm2, %v4822_v55, %v4806_v29  ;;  %v4790_v27 = vadd.f32 %v8743_v31, %v3843_v20  ;;  %v4938_v20 = vrot.slane %v8821_v22, 7 }
 0x43a   : > { %v9029_v12 = vadd.f32 %v4838_v5, %v4788_v25  ;;  %v3845_v7 = vpop.f32.mrf.mxu1  ;;  %v4885_v2 = vsel %vm283_vm3, %v4854_v19, 0.0  ;;  %v9049_v19 = vpop.f32.mrf.mxu0 }
 0x43b   : > { %v9035_v48 = vadd.f32 %v4885_v2, %v4789_v17  ;;  %v4807_v11 = vrot.slane %v3845_v7, 1  ;;  %v4922_v7 = vrot.slane %v8804_v8, 7  ;;  %v4924_v8 = vrot.slane %v8846_v21, 7 }
 0x43c   : > { %v3849_v36 = vpop.f32.mrf.mxu1  ;;  %v4925_v21 = vrot.slane %v8866_v57, 7 }
 0x43d   : > { %v4791_v3 = vadd.f32 %v8741_v44, %v3849_v36  ;;  %v4939_v36 = vrot.slane %v8841_v30, 7  ;;  %v4970_v22 = vsel %vm1894_vm1, %v4938_v20, %v4922_v7  ;;  %v4941_v30 = vrot.slane %v8881_v45, 7 }
 0x43e   : > { %v3851_v13 = vpop.f32.mrf.mxu1 }
 0x43f   : > { %v4823_v29 = vrot.slane %v3851_v13, 1 }
 0x440   : > { %v3855_v55 = vpop.f32.mrf.mxu1 }
 0x441   : > { %v4839_v31 = vsel %vm2023_vm2, %v4807_v11, %v4823_v29  ;;  %v4855_v25 = vsel %vm2023_vm2, %v4823_v29, %v4807_v11  ;;  %v4940_v55 = vrot.slane %v8861_v41, 7  ;;  %v4923_v11 = vrot.slane %v8826_v4, 7 }
 0x442   : > { %v9045_v5 = vadd.f32 %v4839_v31, %v4790_v27  ;;  %v3856_v17 = vpop.f32.mrf.mxu1  ;;  %v4887_v44 = vsel %vm283_vm3, %v4855_v25, 0.0  ;;  %v9806_v29 = vrot.slane %v8789_v58, 7  ;;  %v9807_v31 = vrot.slane %v8774_v63, 7  ;;  %v9067_v25 = vpop.f32.mrf.mxu0 }
 0x443   : > { %v9051_v2 = vadd.f32 %v4887_v44, %v4791_v3  ;;  %v4954_v41 = vsel %vm1894_vm1, %v4922_v7, %v4938_v20  ;;  %v4971_v4 = vsel %vm1894_vm1, %v4939_v36, %v4923_v11  ;;  %v4942_v17 = vrot.slane %v8901_v34, 7 }
 0x444   : > { %v3859_v13 = vpop.f32.mrf.mxu1  ;;  %v4953_v3 = vsel %vm1894_vm1, %v9807_v31, %v9806_v29  ;;  %v4988_v63 = vsel %vm280_vm0, %v4970_v22, 0.0  ;;  %v4972_v44 = vsel %vm1894_vm1, %v4940_v55, %v4924_v8  ;;  %v5021_v20 = vadd.f32 %v4954_v41, %v8817_v61  ;;  %v9088_v29 = vpop.f32.mrf.mxu0 }
 0x445   : > { %v5019_v45 = vadd.f32 %v4953_v3, %v8785_v51  ;;  %v4926_v13 = vrot.slane %v8886_v23, 7  ;;  %v4990_v7 = vsel %vm280_vm0, %v4971_v4, 0.0  ;;  %v4955_v34 = vsel %vm1894_vm1, %v4923_v11, %v4939_v36 }
 0x446   : > { %v3860_v27 = vpop.f32.mrf.mxu1  ;;  %v4973_v22 = vsel %vm1894_vm1, %v4941_v30, %v4925_v21  ;;  %v5020_v57 = vadd.f32 %v4988_v63, %v8811_v59  ;;  %v4992_v51 = vsel %vm280_vm0, %v4972_v44, 0.0  ;;  %v4956_v23 = vsel %vm1894_vm1, %v4924_v8, %v4940_v55  ;;  %v9111_v63 = vpop.f32.mrf.mxu0 }
 0x447   : > { %v4974_v61 = vsel %vm1894_vm1, %v4942_v17, %v4926_v13  ;;  %v4957_v36 = vsel %vm1894_vm1, %v4925_v21, %v4941_v30  ;;  %v4943_v11 = vrot.slane %v8921_v62, 7  ;;  %v5022_v3 = vadd.f32 %v4990_v7, %v8833_v54 }
 0x448   : > { %v5663_v58 = vpop.f32.mrf.mxu1  ;;  %v5023_v41 = vadd.f32 %v4955_v34, %v8839_v46  ;;  %v4994_v59 = vsel %vm280_vm0, %v4973_v22, 0.0  ;;  %v4958_v4 = vsel %vm1894_vm1, %v4926_v13, %v4942_v17  ;;  %v5024_v8 = vadd.f32 %v4992_v51, %v8853_v49  ;;  %v9809_v34 = vld [vmem:[#allocation43_spill] sm:$0xff] }
 0x449   : > { %v5025_v58 = vadd.f32 %v4956_v23, %v8859_v15  ;;  %v4996_v30 = vsel %vm280_vm0, %v4974_v61, 0.0  ;;  %v4927_v62 = vrot.slane %v8906_v42, 7  ;;  %v5051_v54 = vadd.f32 %v5019_v45, %v8794_v35 }
 0x44a   : > { %v4201_v27 = vpop.f32.mrf.mxu1  ;;  %v9115_v46 = vadd.f32 %v5021_v20, %v8824_v9  ;;  %v5027_v44 = vadd.f32 %v4957_v36, %v8879_v32  ;;  %v9119_v21 = vadd.f32 %v5020_v57, %v8813_v60  ;;  %v5026_v49 = vadd.f32 %v4994_v59, %v8873_v37  ;;  %v9808_v37 = vld [vmem:[#allocation50_spill] sm:$0xff] }
 0x44b   : > { %v5029_v15 = vadd.f32 %v4958_v4, %v8899_v39  ;;  %v4975_v42 = vsel %vm1894_vm1, %v4943_v11, %v4927_v62  ;;  %v4959_v13 = vsel %vm1894_vm1, %v4927_v62, %v4943_v11  ;;  %v9128_v35 = vadd.f32 %v5023_v41, %v8844_v1  ;;  %v9138_v39 = vpop.f32.mrf.mxu0  ;;  %v9810_v1 = vld [vmem:[#allocation53_spill] sm:$0xff]  ;;  %v9814_v59 = vld [vmem:[#allocation46_spill] sm:$0xff] }
 0x44c   : > { %v5666_v31 = vpop.f32.mrf.mxu1  ;;  %v5028_v9 = vadd.f32 %v4996_v30, %v8893_v52  ;;  %v4944_v32 = vrot.slane %v8942_v33, 7  ;;  %v9133_v60 = vadd.f32 %v5022_v3, %v8835_v10  ;;  %v9136_v27 = vadd.f32 %v5025_v58, %v9808_v37  ;;  %v9811_v52 = vld [vmem:[#allocation48_spill] sm:$0xff]  ;;  %v9160_v41 = vld [vmem:[%s9572_s4] ss:$0 sm:$0xff] }
 0x44d   : > { %v9141_v22 = vadd.f32 %v5024_v8, %v9809_v34  ;;  %v9144_v57 = vadd.f32 %v5027_v44, %v9810_v1  ;;  %v4998_v33 = vsel %vm280_vm0, %v4975_v42, 0.0  ;;  %v5031_v51 = vadd.f32 %v4959_v13, %v9811_v52  ;;  %v9812_v10 = vld [vmem:[#allocation52_spill] sm:$0xff]  ;;  %v9813_v31 = vld [vmem:[#allocation39_spill] sm:$0xff]  ;;  %v9174_v13 = vpop.f32.mrf.mxu0 }
 0x44e   : > { %v4209_v55 = vpop.f32.mrf.mxu1  ;;  %v4928_v23 = vrot.slane %v9812_v10, 7  ;;  %v9151_v36 = vadd.f32 %v5029_v15, %v9813_v31  ;;  %v9163_v4 = vadd.f32 %v5026_v49, %v9814_v59  ;;  %v9815_v58 = vld [vmem:[#allocation40_spill] sm:$0xff]  ;;  %v4945_v52 = vrot.slane %v8974_v18, 7 }
 0x44f   : > { %v9816_v44 = vld [vmem:[#allocation36_spill] sm:$0xff] }
 0x450   : > { %v5669_v17 = vpop.f32.mrf.mxu1  ;;  %v4976_v55 = vsel %vm1894_vm1, %v4944_v32, %v4928_v23  ;;  %v9817_v15 = vld [vmem:[#allocation44_spill] sm:$0xff]  ;;  %v4960_v1 = vsel %vm1894_vm1, %v4928_v23, %v4944_v32  ;;  %v5821_v32 = vld [vmem:[%s6177_s30] sm:$0xff] }
 0x451   : > { %v5096_v20 = vrot.slane %v5669_v17, 1  ;;  %v9171_v17 = vadd.f32 %v5028_v9, %v9816_v44  ;;  %v5030_v42 = vadd.f32 %v4998_v33, %v9817_v15  ;;  %v5000_v33 = vsel %vm280_vm0, %v4976_v55, 0.0  ;;  %v9196_v55 = vpop.f32.mrf.mxu0 }
 0x452   : > { %v4217_v45 = vpop.f32.mrf.mxu1 }
 0x453   : > { %v5080_v7 = vrot.slane %v4217_v45, 1  ;;  %v9818_v45 = vld [vmem:[#allocation34_spill] sm:$0xff] }
 0x454   : > { %v5672_v61 = vpop.f32.mrf.mxu1 }
 0x455   : > { %v5112_v11 = vsel %vm2023_vm2, %v5080_v7, %v5096_v20  ;;  %v5128_v3 = vsel %vm2023_vm2, %v5096_v20, %v5080_v7  ;;  %v5097_v37 = vrot.slane %v5672_v61, 1  ;;  %v9819_v7 = vld [vmem:[#allocation51_spill] sm:$0xff] }
 0x456   : > { %v5145_v8 = vsel %vm283_vm3, %v5128_v3, 0.0  ;;  %v5176_v30 = vadd.f32 %v5112_v11, %v9815_v58  ;;  %v4227_v62 = vpop.f32.mrf.mxu1  ;;  %v9178_v34 = vadd.f32 %v5031_v51, %v9819_v7  ;;  %v4929_v11 = vrot.slane %v8958_v14, 7  ;;  %v9820_v3 = vld [vmem:[#allocation38_spill] sm:$0xff] }
 0x457   : > { %v5177_v49 = vadd.f32 %v5145_v8, %v9818_v45  ;;  %v5081_v20 = vrot.slane %v4227_v62, 1  ;;  %v5822_v58 = vld [vmem:[%s6177_s30 + $0x8] sm:$0xff]  ;;  %v5033_v45 = vadd.f32 %v4960_v1, %v8939_v40 }
 0x458   : > { %v5215_v9 = vadd.f32 %v9160_v41, %v5176_v30  ;;  %v5675_v10 = vpop.f32.mrf.mxu1  ;;  %v4977_v14 = vsel %vm1894_vm1, %v4945_v52, %v4929_v11  ;;  %v4961_v7 = vsel %vm1894_vm1, %v4929_v11, %v4945_v52 }
 0x459   : > { %v5216_v31 = vadd.f32 %v9160_v41, %v5177_v49  ;;  %v5113_v61 = vsel %vm2023_vm2, %v5081_v20, %v5097_v37  ;;  %v5129_v51 = vsel %vm2023_vm2, %v5097_v37, %v5081_v20  ;;  %v5098_v44 = vrot.slane %v5675_v10, 1  ;;  %v9821_v20 = vld [vmem:[#allocation42_spill] sm:$0xff] }
 0x45a   : > { %v5247_v23 = vadd.f32 %v5821_v32, %v5215_v9  ;;  %v5147_v18 = vsel %vm283_vm3, %v5129_v51, 0.0  ;;  %v5178_v59 = vadd.f32 %v5113_v61, %v9820_v3  ;;  %v4237_v8 = vpop.f32.mrf.mxu1  ;;  %v9822_v10 = vld [vmem:[#allocation54_spill] sm:$0xff]  ;;  %v5823_v61 = vld [vmem:[%s6177_s30 + $0x10] sm:$0xff]  ;;  %v9224_v32 = vpop.f32.mrf.mxu0 }
 0x45b   : > { %v5248_v30 = vadd.f32 %v5822_v58, %v5216_v31  ;;  %v5179_v62 = vadd.f32 %v5147_v18, %v5051_v54  ;;  %v5082_v15 = vrot.slane %v4237_v8, 1  ;;  %v9209_v54 = vadd.f32 %v5030_v42, %v9821_v20 }
 0x45c   : > { %5279 = vst [vmem:[%s9204_s11] sm:$0xff] %v5247_v23  ;;  %v5217_v49 = vadd.f32 %v9160_v41, %v5178_v59  ;;  %v5678_v37 = vpop.f32.mrf.mxu1  ;;  %v5032_v31 = vadd.f32 %v5000_v33, %v9822_v10  ;;  %v5824_v23 = vld [vmem:[%s6177_s30 + $0x18] sm:$0xff]  ;;  %v9229_v33 = vadd.f32 %v5033_v45, %v8953_v50  ;;  %v5002_v58 = vsel %vm280_vm0, %v4977_v14, 0.0  ;;  %v5825_v14 = vld [vmem:[%s6177_s30 + $0x20] sm:$0xff] }
 0x45d   : > { %5280 = vst [vmem:[%s9204_s11 + $0x8] sm:$0xff] %v5248_v30  ;;  %v5218_v40 = vadd.f32 %v9160_v41, %v5179_v62  ;;  %v5114_v1 = vsel %vm2023_vm2, %v5082_v15, %v5098_v44  ;;  %v5130_v9 = vsel %vm2023_vm2, %v5098_v44, %v5082_v15  ;;  %v5099_v59 = vrot.slane %v5678_v37, 1  ;;  %v9823_v30 = vld [vmem:[#allocation57_spill] sm:$0xff] }
 0x45e   : > { %v5249_v51 = vadd.f32 %v5823_v61, %v5217_v49  ;;  %v5149_v42 = vsel %vm283_vm3, %v5130_v9, 0.0  ;;  %v5180_v52 = vadd.f32 %v5114_v1, %v9119_v21  ;;  %v4247_v11 = vpop.f32.mrf.mxu1  ;;  %v5035_v62 = vadd.f32 %v4961_v7, %v9823_v30  ;;  %v5826_v1 = vld [vmem:[%s6177_s30 + $0x28] sm:$0xff] }
 0x45f   : > { %v5250_v18 = vadd.f32 %v5824_v23, %v5218_v40  ;;  %v5181_v3 = vadd.f32 %v5149_v42, %v9115_v46  ;;  %v5083_v8 = vrot.slane %v4247_v11, 1  ;;  %v4946_v15 = vrot.slane %v9006_v38, 7  ;;  %v9248_v40 = vpop.f32.mrf.mxu0  ;;  %v9824_v42 = vld [vmem:[#allocation55_spill] sm:$0xff]  ;;  %v9825_v23 = vld [vmem:[#allocation56_spill] sm:$0xff] }
 0x460   : > { %5281 = vst [vmem:[%s9204_s11 + $0x10] sm:$0xff] %v5249_v51  ;;  %v5219_v21 = vadd.f32 %v9160_v41, %v5180_v52  ;;  %v5681_v44 = vpop.f32.mrf.mxu1  ;;  %v4930_v45 = vrot.slane %v8990_v24, 7  ;;  %v5034_v24 = vadd.f32 %v5002_v58, %v9824_v42  ;;  %v9254_v52 = vadd.f32 %v5035_v62, %v8985_v6  ;;  %v5827_v58 = vld [vmem:[%s6177_s30 + $0x30] sm:$0xff] }
 0x461   : > { %5282 = vst [vmem:[%s9204_s11 + $0x18] sm:$0xff] %v5250_v18  ;;  %v5220_v46 = vadd.f32 %v9160_v41, %v5181_v3  ;;  %v5115_v49 = vsel %vm2023_vm2, %v5083_v8, %v5099_v59  ;;  %v5131_v50 = vsel %vm2023_vm2, %v5099_v59, %v5083_v8  ;;  %v5100_v61 = vrot.slane %v5681_v44, 1  ;;  %v9275_v44 = vpop.f32.mrf.mxu0 }
 0x462   : > { %v5251_v37 = vadd.f32 %v5825_v14, %v5219_v21  ;;  %v5151_v20 = vsel %vm283_vm3, %v5131_v50, 0.0  ;;  %v5182_v38 = vadd.f32 %v5115_v49, %v9133_v60  ;;  %v4257_v7 = vpop.f32.mrf.mxu1  ;;  %v9259_v18 = vadd.f32 %v5032_v31, %v9825_v23 }
 0x463   : > { %v5252_v9 = vadd.f32 %v5826_v1, %v5220_v46  ;;  %v5183_v10 = vadd.f32 %v5151_v20, %v9128_v35  ;;  %v5084_v51 = vrot.slane %v4257_v7, 1  ;;  %v4978_v3 = vsel %vm1894_vm1, %v4946_v15, %v4930_v45  ;;  %v5828_v46 = vld [vmem:[%s6177_s30 + $0x38] sm:$0xff]  ;;  %v9826_v7 = vld [vmem:[#allocation61_spill] sm:$0xff] }
 0x464   : > { %5283 = vst [vmem:[%s9204_s11 + $0x20] sm:$0xff] %v5251_v37  ;;  %v5221_v11 = vadd.f32 %v9160_v41, %v5182_v38  ;;  %v5684_v60 = vpop.f32.mrf.mxu1  ;;  %v4962_v8 = vsel %vm1894_vm1, %v4930_v45, %v4946_v15  ;;  %v5004_v15 = vsel %vm280_vm0, %v4978_v3, 0.0  ;;  %v4947_v45 = vrot.slane %v9038_v26, 7 }
 0x465   : > { %5284 = vst [vmem:[%s9204_s11 + $0x28] sm:$0xff] %v5252_v9  ;;  %v5222_v35 = vadd.f32 %v9160_v41, %v5183_v10  ;;  %v5116_v59 = vsel %vm2023_vm2, %v5084_v51, %v5100_v61  ;;  %v5132_v6 = vsel %vm2023_vm2, %v5100_v61, %v5084_v51  ;;  %v5101_v14 = vrot.slane %v5684_v60, 1  ;;  %v5829_v61 = vld [vmem:[%s6177_s30 + $0x40] sm:$0xff]  ;;  %v5830_v60 = vld [vmem:[%s6177_s30 + $0x48] sm:$0xff] }
 0x466   : > { %v5253_v30 = vadd.f32 %v5827_v58, %v5221_v11  ;;  %v5153_v31 = vsel %vm283_vm3, %v5132_v6, 0.0  ;;  %v5184_v62 = vadd.f32 %v5116_v59, %v9141_v22  ;;  %v4267_v21 = vpop.f32.mrf.mxu1  ;;  %v9285_v38 = vadd.f32 %v5034_v24, %v8969_v28  ;;  %v9299_v11 = vpop.f32.mrf.mxu0  ;;  %v9827_v6 = vld [vmem:[#allocation59_spill] sm:$0xff] }
 0x467   : > { %v5254_v49 = vadd.f32 %v5828_v46, %v5222_v35  ;;  %v5185_v50 = vadd.f32 %v5153_v31, %v9136_v27  ;;  %v5085_v37 = vrot.slane %v4267_v21, 1  ;;  %v5037_v1 = vadd.f32 %v4962_v8, %v9826_v7 }
 0x468   : > { %5285 = vst [vmem:[%s9204_s11 + $0x30] sm:$0xff] %v5253_v30  ;;  %v5223_v20 = vadd.f32 %v9160_v41, %v5184_v62  ;;  %v5687_v22 = vpop.f32.mrf.mxu1  ;;  %v4931_v26 = vrot.slane %v9022_v0, 7  ;;  %v5036_v0 = vadd.f32 %v5004_v15, %v9827_v6  ;;  %v4948_v31 = vrot.slane %v9111_v63, 7  ;;  %v9322_v15 = vpop.f32.mrf.mxu0 }
 0x469   : > { %5286 = vst [vmem:[%s9204_s11 + $0x38] sm:$0xff] %v5254_v49  ;;  %v5224_v27 = vadd.f32 %v9160_v41, %v5185_v50  ;;  %v5117_v9 = vsel %vm2023_vm2, %v5085_v37, %v5101_v14  ;;  %v5133_v10 = vsel %vm2023_vm2, %v5101_v14, %v5085_v37  ;;  %v5102_v35 = vrot.slane %v5687_v22, 1  ;;  %v5831_v49 = vld [vmem:[%s6177_s30 + $0x50] sm:$0xff] }
 0x46a   : > { %v5255_v51 = vadd.f32 %v5829_v61, %v5223_v20  ;;  %v5155_v28 = vsel %vm283_vm3, %v5133_v10, 0.0  ;;  %v5186_v42 = vadd.f32 %v5117_v9, %v9163_v4  ;;  %v4277_v24 = vpop.f32.mrf.mxu1  ;;  %v4979_v8 = vsel %vm1894_vm1, %v4947_v45, %v4931_v26  ;;  %v9828_v10 = vld [vmem:[#allocation60_spill] sm:$0xff] }
 0x46b   : > { %v5256_v23 = vadd.f32 %v5830_v60, %v5224_v27  ;;  %v5187_v3 = vadd.f32 %v5155_v28, %v9144_v57  ;;  %v5086_v59 = vrot.slane %v4277_v24, 1  ;;  %v4963_v58 = vsel %vm1894_vm1, %v4931_v26, %v4947_v45  ;;  %v5832_v45 = vld [vmem:[%s6177_s30 + $0x58] sm:$0xff] }
 0x46c   : > { %5287 = vst [vmem:[%s9204_s11 + $0x40] sm:$0xff] %v5255_v51  ;;  %v5225_v4 = vadd.f32 %v9160_v41, %v5186_v42  ;;  %v5690_v30 = vpop.f32.mrf.mxu1  ;;  %v4932_v46 = vrot.slane %v9067_v25, 7  ;;  %v9327_v25 = vadd.f32 %v5037_v1, %v9017_v16  ;;  %v5006_v9 = vsel %vm280_vm0, %v4979_v8, 0.0  ;;  %v5833_v42 = vld [vmem:[%s6177_s30 + $0x60] sm:$0xff] }
 0x46d   : > { %5288 = vst [vmem:[%s9204_s11 + $0x48] sm:$0xff] %v5256_v23  ;;  %v5226_v57 = vadd.f32 %v9160_v41, %v5187_v3  ;;  %v5118_v62 = vsel %vm2023_vm2, %v5086_v59, %v5102_v35  ;;  %v5134_v21 = vsel %vm2023_vm2, %v5102_v35, %v5086_v59  ;;  %v5103_v7 = vrot.slane %v5690_v30, 1  ;;  %v9348_v35 = vpop.f32.mrf.mxu0  ;;  %v5834_v59 = vld [vmem:[%s6177_s30 + $0x68] sm:$0xff]  ;;  %v9829_v30 = vld [vmem:[#allocation63_spill] sm:$0xff] }
 0x46e   : > { %v5257_v50 = vadd.f32 %v5831_v49, %v5225_v4  ;;  %v5157_v14 = vsel %vm283_vm3, %v5134_v21, 0.0  ;;  %v5188_v63 = vadd.f32 %v5118_v62, %v9171_v17  ;;  %v4287_v37 = vpop.f32.mrf.mxu1  ;;  %v5039_v26 = vadd.f32 %v4963_v58, %v9828_v10 }
 0x46f   : > { %v5258_v20 = vadd.f32 %v5832_v45, %v5226_v57  ;;  %v5189_v22 = vadd.f32 %v5157_v14, %v9151_v36  ;;  %v5087_v27 = vrot.slane %v4287_v37, 1  ;;  %v4980_v51 = vsel %vm1894_vm1, %v4948_v31, %v4932_v46  ;;  %v5835_v37 = vld [vmem:[%s6177_s30 + $0x70] sm:$0xff] }
 0x470   : > { %5289 = vst [vmem:[%s9204_s11 + $0x50] sm:$0xff] %v5257_v50  ;;  %v5227_v17 = vadd.f32 %v9160_v41, %v5188_v63  ;;  %v5693_v61 = vpop.f32.mrf.mxu1  ;;  %v4964_v28 = vsel %vm1894_vm1, %v4932_v46, %v4948_v31  ;;  %v5038_v31 = vadd.f32 %v5006_v9, %v9829_v30  ;;  %v5008_v57 = vsel %vm280_vm0, %v4980_v51, 0.0  ;;  %v9830_v46 = vld [vmem:[#allocation67_spill] sm:$0xff] }
 0x471   : > { %5290 = vst [vmem:[%s9204_s11 + $0x58] sm:$0xff] %v5258_v20  ;;  %v5228_v36 = vadd.f32 %v9160_v41, %v5189_v22  ;;  %v5119_v16 = vsel %vm2023_vm2, %v5087_v27, %v5103_v7  ;;  %v5135_v1 = vsel %vm2023_vm2, %v5103_v7, %v5087_v27  ;;  %v5104_v58 = vrot.slane %v5693_v61, 1  ;;  %v9372_v22 = vpop.f32.mrf.mxu0  ;;  %v5836_v7 = vld [vmem:[%s6177_s30 + $0x78] sm:$0xff] }
 0x472   : > { %v5259_v24 = vadd.f32 %v5833_v42, %v5227_v17  ;;  %v5159_v60 = vsel %vm283_vm3, %v5135_v1, 0.0  ;;  %v5190_v23 = vadd.f32 %v5119_v16, %v9209_v54  ;;  %v4297_v3 = vpop.f32.mrf.mxu1  ;;  %v5068_v21 = vadd.f32 %v5036_v0, %v9001_v56  ;;  %v5837_v42 = vld [vmem:[%s6177_s30 + $0x80] sm:$0xff] }
 0x473   : > { %v5260_v6 = vadd.f32 %v5834_v59, %v5228_v36  ;;  %v5191_v8 = vadd.f32 %v5159_v60, %v9178_v34  ;;  %v5088_v4 = vrot.slane %v4297_v3, 1  ;;  %v5041_v49 = vadd.f32 %v4964_v28, %v9830_v46  ;;  %v5838_v3 = vld [vmem:[%s6177_s30 + $0x88] sm:$0xff]  ;;  %v5839_v46 = vld [vmem:[%s6177_s30 + $0x90] sm:$0xff] }
 0x474   : > { %5291 = vst [vmem:[%s9204_s11 + $0x60] sm:$0xff] %v5259_v24  ;;  %v5229_v62 = vadd.f32 %v9160_v41, %v5190_v23  ;;  %v5696_v54 = vpop.f32.mrf.mxu1  ;;  %v9366_v63 = vadd.f32 %v5039_v26, %v9049_v19  ;;  %v9831_v19 = vld [vmem:[#allocation65_spill] sm:$0xff]  ;;  %v4949_v61 = vrot.slane %v9224_v32, 7  ;;  %v4933_v28 = vrot.slane %v9174_v13, 7  ;;  %v9395_v23 = vpop.f32.mrf.mxu0 }
 0x475   : > { %5292 = vst [vmem:[%s9204_s11 + $0x68] sm:$0xff] %v5260_v6  ;;  %v5230_v50 = vadd.f32 %v9160_v41, %v5191_v8  ;;  %v5120_v34 = vsel %vm2023_vm2, %v5088_v4, %v5104_v58  ;;  %v5136_v14 = vsel %vm2023_vm2, %v5104_v58, %v5088_v4  ;;  %v5105_v10 = vrot.slane %v5696_v54, 1 }
 0x476   : > { %v5261_v45 = vadd.f32 %v5835_v37, %v5229_v62  ;;  %v5161_v56 = vsel %vm283_vm3, %v5136_v14, 0.0  ;;  %v5192_v0 = vadd.f32 %v5120_v34, %v9259_v18  ;;  %v4307_v20 = vpop.f32.mrf.mxu1  ;;  %v5040_v26 = vadd.f32 %v5008_v57, %v9831_v19  ;;  %v9417_v14 = vpop.f32.mrf.mxu0  ;;  %v5840_v37 = vld [vmem:[%s6177_s30 + $0x98] sm:$0xff] }
 0x477   : > { %v5262_v27 = vadd.f32 %v5836_v7, %v5230_v50  ;;  %v5193_v9 = vadd.f32 %v5161_v56, %v9229_v33  ;;  %v5089_v17 = vrot.slane %v4307_v20, 1  ;;  %v5070_v18 = vadd.f32 %v5038_v31, %v9033_v47  ;;  %v9832_v7 = vld [vmem:[#allocation64_spill] sm:$0xff] }
 0x478   : > { %5293 = vst [vmem:[%s9204_s11 + $0x70] sm:$0xff] %v5261_v45  ;;  %v5231_v51 = vadd.f32 %v9160_v41, %v5192_v0  ;;  %v5699_v36 = vpop.f32.mrf.mxu1  ;;  %v9382_v16 = vadd.f32 %v5041_v49, %v9138_v39  ;;  %v4981_v13 = vsel %vm1894_vm1, %v4949_v61, %v4933_v28  ;;  %v4950_v4 = vrot.slane %v9322_v15, 7 }
 0x479   : > { %5294 = vst [vmem:[%s9204_s11 + $0x78] sm:$0xff] %v5262_v27  ;;  %v5232_v1 = vadd.f32 %v9160_v41, %v5193_v9  ;;  %v5121_v33 = vsel %vm2023_vm2, %v5089_v17, %v5105_v10  ;;  %v5137_v32 = vsel %vm2023_vm2, %v5105_v10, %v5089_v17  ;;  %v5106_v8 = vrot.slane %v5699_v36, 1 }
 0x47a   : > { %v5263_v24 = vadd.f32 %v5837_v42, %v5231_v51  ;;  %v5163_v47 = vsel %vm283_vm3, %v5137_v32, 0.0  ;;  %v5194_v39 = vadd.f32 %v5121_v33, %v9285_v38  ;;  %v4317_v60 = vpop.f32.mrf.mxu1  ;;  %v5072_v31 = vadd.f32 %v5040_v26, %v9088_v29  ;;  %v5841_v51 = vld [vmem:[%s6177_s30 + $0xa0] sm:$0xff]  ;;  %v5842_v32 = vld [vmem:[%s6177_s30 + $0xa8] sm:$0xff] }
 0x47b   : > { %v5264_v59 = vadd.f32 %v5838_v3, %v5232_v1  ;;  %v5195_v6 = vadd.f32 %v5163_v47, %v9254_v52  ;;  %v5090_v58 = vrot.slane %v4317_v60, 1  ;;  %v4965_v57 = vsel %vm1894_vm1, %v4933_v28, %v4949_v61 }
 0x47c   : > { %5295 = vst [vmem:[%s9204_s11 + $0x80] sm:$0xff] %v5263_v24  ;;  %v5233_v30 = vadd.f32 %v9160_v41, %v5194_v39  ;;  %v5702_v38 = vpop.f32.mrf.mxu1  ;;  %v4934_v15 = vrot.slane %v9275_v44, 7  ;;  %v5010_v44 = vsel %vm280_vm0, %v4981_v13, 0.0  ;;  %v5043_v27 = vadd.f32 %v4965_v57, %v9832_v7  ;;  %v9833_v39 = vld [vmem:[#allocation58_spill] sm:$0xff] }
 0x47d   : > { %5296 = vst [vmem:[%s9204_s11 + $0x88] sm:$0xff] %v5264_v59  ;;  %v5234_v52 = vadd.f32 %v9160_v41, %v5195_v6  ;;  %v5122_v62 = vsel %vm2023_vm2, %v5090_v58, %v5106_v8  ;;  %v5138_v54 = vsel %vm2023_vm2, %v5106_v8, %v5090_v58  ;;  %v5107_v0 = vrot.slane %v5702_v38, 1  ;;  %v5846_v7 = vld [vmem:[%s6177_s30 + $0xc8] sm:$0xff] }
 0x47e   : > { %v5265_v49 = vadd.f32 %v5839_v46, %v5233_v30  ;;  %v5165_v29 = vsel %vm283_vm3, %v5138_v54, 0.0  ;;  %v5196_v50 = vadd.f32 %v5122_v62, %v5068_v21  ;;  %v4327_v34 = vpop.f32.mrf.mxu1  ;;  %v4982_v9 = vsel %vm1894_vm1, %v4950_v4, %v4934_v15  ;;  %v5844_v62 = vld [vmem:[%s6177_s30 + $0xb8] sm:$0xff] }
 0x47f   : > { %v5266_v45 = vadd.f32 %v5840_v37, %v5234_v52  ;;  %v5197_v56 = vadd.f32 %v5165_v29, %v9327_v25  ;;  %v5091_v20 = vrot.slane %v4327_v34, 1  ;;  %v4935_v17 = vrot.slane %v9372_v22, 7 }
 0x480   : > { %5297 = vst [vmem:[%s9204_s11 + $0x90] sm:$0xff] %v5265_v49  ;;  %v5235_v21 = vadd.f32 %v9160_v41, %v5196_v50  ;;  %v5705_v10 = vpop.f32.mrf.mxu1  ;;  %v4951_v61 = vrot.slane %v9417_v14, 7  ;;  %v5042_v60 = vadd.f32 %v5010_v44, %v9833_v39  ;;  %v5075_v3 = vadd.f32 %v5043_v27, %v9248_v40 }
 0x481   : > { %5298 = vst [vmem:[%s9204_s11 + $0x98] sm:$0xff] %v5266_v45  ;;  %v5236_v25 = vadd.f32 %v9160_v41, %v5197_v56  ;;  %v5123_v19 = vsel %vm2023_vm2, %v5091_v20, %v5107_v0  ;;  %v5139_v26 = vsel %vm2023_vm2, %v5107_v0, %v5091_v20  ;;  %v5108_v24 = vrot.slane %v5705_v10, 1  ;;  %v5845_v56 = vld [vmem:[%s6177_s30 + $0xc0] sm:$0xff] }
 0x482   : > { %v5267_v36 = vadd.f32 %v5841_v51, %v5235_v21  ;;  %v5167_v1 = vsel %vm283_vm3, %v5139_v26, 0.0  ;;  %v5198_v33 = vadd.f32 %v5123_v19, %v5070_v18  ;;  %v4337_v22 = vpop.f32.mrf.mxu1  ;;  %v4966_v59 = vsel %vm1894_vm1, %v4934_v15, %v4950_v4  ;;  %v5843_v4 = vld [vmem:[%s6177_s30 + $0xb0] sm:$0xff] }
 0x483   : > { %v5268_v28 = vadd.f32 %v5842_v32, %v5236_v25  ;;  %v5199_v42 = vadd.f32 %v5167_v1, %v9366_v63  ;;  %v5092_v47 = vrot.slane %v4337_v22, 1  ;;  %v5012_v8 = vsel %vm280_vm0, %v4982_v9, 0.0 }
 0x484   : > { %5299 = vst [vmem:[%s9204_s11 + $0xa0] sm:$0xff] %v5267_v36  ;;  %v5237_v6 = vadd.f32 %v9160_v41, %v5198_v33  ;;  %v5708_v18 = vpop.f32.mrf.mxu1  ;;  %v4983_v13 = vsel %vm1894_vm1, %v4951_v61, %v4935_v17  ;;  %v5044_v29 = vadd.f32 %v5012_v8, %v9029_v12  ;;  %v5045_v50 = vadd.f32 %v4966_v59, %v9035_v48  ;;  %v5847_v33 = vld [vmem:[%s6177_s30 + $0xd0] sm:$0xff] }
 0x485   : > { %5300 = vst [vmem:[%s9204_s11 + $0xa8] sm:$0xff] %v5268_v28  ;;  %v5238_v63 = vadd.f32 %v9160_v41, %v5199_v42  ;;  %v5124_v58 = vsel %vm2023_vm2, %v5092_v47, %v5108_v24  ;;  %v5140_v40 = vsel %vm2023_vm2, %v5108_v24, %v5092_v47  ;;  %v5109_v46 = vrot.slane %v5708_v18, 1  ;;  %v5848_v28 = vld [vmem:[%s6177_s30 + $0xd8] sm:$0xff] }
 0x486   : > { %v5269_v30 = vadd.f32 %v5843_v4, %v5237_v6  ;;  %v5169_v38 = vsel %vm283_vm3, %v5140_v40, 0.0  ;;  %v5200_v57 = vadd.f32 %v5124_v58, %v5072_v31  ;;  %v4347_v52 = vpop.f32.mrf.mxu1  ;;  %v5074_v14 = vadd.f32 %v5042_v60, %v9196_v55 }
 0x487   : > { %v5270_v54 = vadd.f32 %v5844_v62, %v5238_v63  ;;  %v5201_v15 = vadd.f32 %v5169_v38, %v9382_v16  ;;  %v5093_v49 = vrot.slane %v4347_v52, 1  ;;  %v5014_v31 = vsel %vm280_vm0, %v4983_v13, 0.0  ;;  %v5849_v63 = vld [vmem:[%s6177_s30 + $0xe0] sm:$0xff]  ;;  %v5852_v52 = vld [vmem:[%s6177_s30 + $0xf8] sm:$0xff] }
 0x488   : > { %5301 = vst [vmem:[%s9204_s11 + $0xb0] sm:$0xff] %v5269_v30  ;;  %v5239_v34 = vadd.f32 %v9160_v41, %v5200_v57  ;;  %v5711_v37 = vpop.f32.mrf.mxu1  ;;  %v4967_v48 = vsel %vm1894_vm1, %v4935_v17, %v4951_v61  ;;  %v5077_v25 = vadd.f32 %v5045_v50, %v9348_v35  ;;  %v5046_v19 = vadd.f32 %v5014_v31, %v9045_v5  ;;  %v4132_v5 = vpop.f32.mrf.mxu0  ;;  %v5851_v57 = vld [vmem:[%s6177_s30 + $0xf0] sm:$0xff] }
 0x489   : > { %5302 = vst [vmem:[%s9204_s11 + $0xb8] sm:$0xff] %v5270_v54  ;;  %v5240_v45 = vadd.f32 %v9160_v41, %v5201_v15  ;;  %v5125_v16 = vsel %vm2023_vm2, %v5093_v49, %v5109_v46  ;;  %v5141_v12 = vsel %vm2023_vm2, %v5109_v46, %v5093_v49  ;;  %v5110_v21 = vrot.slane %v5711_v37, 1 }
 0x48a   : > { %v5271_v0 = vadd.f32 %v5845_v56, %v5239_v34  ;;  %v5171_v55 = vsel %vm283_vm3, %v5141_v12, 0.0  ;;  %v5202_v20 = vadd.f32 %v5125_v16, %v5074_v14  ;;  %v4357_v44 = vpop.f32.mrf.mxu1  ;;  %v5076_v26 = vadd.f32 %v5044_v29, %v9299_v11 }
 0x48b   : > { %v5272_v27 = vadd.f32 %v5846_v7, %v5240_v45  ;;  %v5203_v9 = vadd.f32 %v5171_v55, %v5075_v3  ;;  %v5094_v10 = vrot.slane %v4357_v44, 1  ;;  %v5047_v51 = vadd.f32 %v4967_v48, %v9051_v2 }
 0x48c   : > { %5303 = vst [vmem:[%s9204_s11 + $0xc0] sm:$0xff] %v5271_v0  ;;  %v5241_v17 = vadd.f32 %v9160_v41, %v5202_v20  ;;  %v5714_v61 = vpop.f32.mrf.mxu1  ;;  %v5078_v3 = vadd.f32 %v5046_v19, %v9395_v23  ;;  %v5850_v23 = vld [vmem:[%s6177_s30 + $0xe8] sm:$0xff] }
 0x48d   : > { %5304 = vst [vmem:[%s9204_s11 + $0xc8] sm:$0xff] %v5272_v27  ;;  %v5242_v36 = vadd.f32 %v9160_v41, %v5203_v9  ;;  %v5126_v1 = vsel %vm2023_vm2, %v5094_v10, %v5110_v21  ;;  %v5142_v35 = vsel %vm2023_vm2, %v5110_v21, %v5094_v10  ;;  %v5111_v47 = vrot.slane %v5714_v61, 1 }
 0x48e   : > { %v5273_v22 = vadd.f32 %v5847_v33, %v5241_v17  ;;  %v5173_v11 = vsel %vm283_vm3, %v5142_v35, 0.0  ;;  %v5204_v32 = vadd.f32 %v5126_v1, %v5076_v26  ;;  %v4367_v2 = vpop.f32.mrf.mxu1  ;;  %v5079_v59 = vadd.f32 %v5047_v51, %v4132_v5 }
 0x48f   : > { %v5274_v42 = vadd.f32 %v5848_v28, %v5242_v36  ;;  %v5205_v24 = vadd.f32 %v5173_v11, %v5077_v25  ;;  %v5095_v39 = vrot.slane %v4367_v2, 1 }
 0x490   : > { %5305 = vst [vmem:[%s9204_s11 + $0xd0] sm:$0xff] %v5273_v22  ;;  %v5243_v60 = vadd.f32 %v9160_v41, %v5204_v32 }
 0x491   : > { %5306 = vst [vmem:[%s9204_s11 + $0xd8] sm:$0xff] %v5274_v42  ;;  %v5244_v6 = vadd.f32 %v9160_v41, %v5205_v24  ;;  %v5127_v18 = vsel %vm2023_vm2, %v5095_v39, %v5111_v47  ;;  %v5143_v8 = vsel %vm2023_vm2, %v5111_v47, %v5095_v39 }
 0x492   : > { %v5275_v58 = vadd.f32 %v5849_v63, %v5243_v60  ;;  %v5175_v40 = vsel %vm283_vm3, %v5143_v8, 0.0  ;;  %v5206_v13 = vadd.f32 %v5127_v18, %v5078_v3 }
 0x493   : > { %v5276_v4 = vadd.f32 %v5850_v23, %v5244_v6  ;;  %v5207_v30 = vadd.f32 %v5175_v40, %v5079_v59 }
 0x494   : > { %5307 = vst [vmem:[%s9204_s11 + $0xe0] sm:$0xff] %v5275_v58  ;;  %v5245_v43 = vadd.f32 %v9160_v41, %v5206_v13 }
 0x495   : > { %5308 = vst [vmem:[%s9204_s11 + $0xe8] sm:$0xff] %v5276_v4  ;;  %v5246_v38 = vadd.f32 %v9160_v41, %v5207_v30 }
 0x496   : > { %v5277_v53 = vadd.f32 %v5851_v57, %v5245_v43 }
 0x497   : > { %v5278_v62 = vadd.f32 %v5852_v52, %v5246_v38 }
 0x498   : > { %5309 = vst [vmem:[%s9204_s11 + $0xf0] sm:$0xff] %v5277_v53 }
 0x499   : > { %5310 = vst [vmem:[%s9204_s11 + $0xf8] sm:$0xff] %v5278_v62 }
 0x49a   : > { %5946 = shalt.err (!%p5943_p9)
}
 0x49b   : > { %s5947_s30 = scalar_lea.hbm %s9520_s9, 4096  ;;  %s5951_s8 = scalar_lea.hbm %s9573_s5, 8192 }
 0x49c   : > { %p5948_p13 = scmp.ne.s32.totalorder %s9520_s9, %s5947_s30  ;;  %p5952_p4 = scmp.lt.s32.totalorder %s9520_s9, %s9573_s5 }
 0x49d   : > { %p5953_p8 = scmp.lt.s32.totalorder %s5951_s8, %s5947_s30 }
 0x49e   : > { %p5949_p5 = pnand %p5948_p13, %p9834_p10 }
 0x49f   : > { %p5954_p3 = por %p5953_p8, %p5952_p4 }
 0x4a0   : > { %p5950_p0 = pneg %p5949_p5 }
 0x4a2   : > { %p5955_p11 = pnand %p5954_p3, %p5950_p0 }
 0x4a4   : > { %5958 = shalt.err (!%p5955_p11)
}
 0x4a5   : > { %s6012_s12 = smov 128   ;;  %s6013_s6 = smov 8  }
 0x4a6   : > { %5725 = dma.vmem_to_hbm [thread:$0]  (%p9834_p10), %s9522_s28, 4096, %s9520_s9, %s5312_s22, %s6012_s12, %s6012_s12, %s6013_s6  }
 0x4a7 PF: > { %s5340_s7 = sand.u32 1, %s5989_s18   ;;  %p9835_p1 = scmp.ne.s32.totalorder %s9590_s25, 0 }
 0x4a8   : > { %p9836_p2 = scmp.ge.s32.totalorder %s6001_s21, 2  ;;  %s5341_s13 = scalar_lea.sflag [#allocation5], %s5340_s7 }
 0x4aa   : > { %p5739_p6 = pnand %p9836_p2, %p9835_p1 }
 0x4ac   : > { %p5740_p12 = pneg %p5739_p6 }
 0x4ae   : > { %5984 = dma.done.wait (%p5740_p12), %s5341_s13, 4096  }
 0x4af   : > { %5986 = vsyncadd (%p5740_p12), %s5341_s13, 4294963200  ;;  %p19_p7 = scmp.ge.s32.totalorder %s6116_s15, 4   ;;  %s9837_s18 = smov %s5993_s19 }
 0x4b0   : > { %s9838_s19 = smov %s5997_s20  ;;  %s9839_s20 = smov %s6132_s27 }
 0x4b1   : > { %s9840_s21 = smov %s6116_s15  ;;  %21 = sbr.rel (!%p19_p7) target bundleno = 6 (0x6), region = 95 }
 0x4b6   :  { %5346 = vsyncpa [#allocation4], 1 }
 0x4b7   :  { %5348 = vsyncpa [#allocation4 + $0x1], 1 }
 0x4b8   :  { %5349 = vsyncpa [#allocation7], 1 }
 0x4b9   :  { %5350 = vsyncpa [#allocation5], 1 }
 0x4ba   :  { %5352 = vsyncpa [#allocation5 + $0x1], 1 }

</bundles_post_ra>
